<compile_context>
chip_gen: v7x
topology: tpu7x:2x2x1
jax: 0.10.0
libtpu: 0.0.40
codegen_flags: <defaults>
</compile_context>

<pallas_src>
import math

import jax
import jax.numpy as jnp
from jax import lax
from jax.experimental import pallas as pl
from jax.experimental.pallas import tpu as pltpu


def _round_up(x, m):
    return (x + m - 1) // m * m


def _vmem_limit_bytes():
    """~3/4 of physical VMEM: ~96 MiB on v5e/v6e (128 MiB), ~48 MiB on v7x (64 MiB)."""
    try:
        cap = int(pltpu.get_tpu_info().vmem_capacity_bytes)
    except Exception:
        cap = 64 * 1024 * 1024
    return max(32 * 1024 * 1024, min(cap * 3 // 4, 100 * 1024 * 1024))


# ------------------------------ Pallas kernel ------------------------------ #

def _fused_double_conv_kernel(x_ref, w1_ref, b1_ref, w2_ref, b2_ref, o_ref,
                              y1p_ref):
    """conv3x3+BN+ReLU -> conv3x3+BN+ReLU for one image, fully in VMEM.

    x_ref:   (1, H+2, W+2, Cin)  bf16, already zero-padded spatially by 1.
    w1_ref:  (9*Cin, C1p)        bf16, BN scale folded in, Cout padded to C1p.
    b1_ref:  (1, C1p)            f32 folded bias.
    w2_ref:  (9*C1p, C2p)        bf16, Cin zero-padded to C1p, Cout to C2p.
    b2_ref:  (1, C2p)            f32 folded bias.
    o_ref:   (1, H, W, C2p)      f32 output block (lane-dense).
    y1p_ref: (H+2, W+2, C1p)     bf16 VMEM scratch for the layer-1 activation,
                                 zero ring = layer-2's conv padding.
    """
    H, W = o_ref.shape[1], o_ref.shape[2]
    Cin = x_ref.shape[3]
    C1p = y1p_ref.shape[2]
    C2p = o_ref.shape[3]

    xp = x_ref[0]                                     # (H+2, W+2, Cin) bf16

    # ---- layer 1: in-register im2col (9 taps folded into K) + MXU dot ----
    cols1 = jnp.concatenate(
        [xp[dy:dy + H, dx:dx + W, :] for dy in range(3) for dx in range(3)],
        axis=-1).reshape(H * W, 9 * Cin)
    y1 = jnp.dot(cols1, w1_ref[...], preferred_element_type=jnp.float32)
    y1 = jnp.maximum(y1 + b1_ref[...], 0.0).astype(jnp.bfloat16)

    # ---- stage layer-1 activation in VMEM with a zero halo ring ----
    y1p_ref[...] = jnp.zeros_like(y1p_ref)            # border = conv padding
    y1p_ref[1:H + 1, 1:W + 1, :] = y1.reshape(H, W, C1p)
    y1p = y1p_ref[...]

    # ---- layer 2: same im2col-in-register pattern on the staged activation ----
    cols2 = jnp.concatenate(
        [y1p[dy:dy + H, dx:dx + W, :] for dy in range(3) for dx in range(3)],
        axis=-1).reshape(H * W, 9 * C1p)
    y2 = jnp.dot(cols2, w2_ref[...], preferred_element_type=jnp.float32)
    y2 = jnp.maximum(y2 + b2_ref[...], 0.0)
    o_ref[0] = y2.reshape(H, W, C2p).astype(o_ref.dtype)


# ------------------------------ Host wrapper ------------------------------- #

def double_conv3x3_bn_relu(x, params):
    """Fused (conv3x3 + BN + ReLU) x 2.

    x: (N, H, W, Cin) f32 NHWC.  params: [(w, scale, bias)] * 2 with
    w: (3, 3, Cin, Cout) f32, scale/bias: (Cout,) f32 (BN folded).
    Returns (N, H, W, Cout2) f32.
    """
    (w1, s1, b1), (w2, s2, b2) = params
    N, H, W, Cin = x.shape
    C1 = w1.shape[-1]
    C2 = w2.shape[-1]
    C1p = _round_up(C1, 128)   # lane-dense intermediate / weight columns
    C2p = _round_up(C2, 128)   # lane-dense output stores

    # Fold BN scale into the weights; bias already holds beta + scale*(b - mean).
    w1f = (w1 * s1).reshape(9 * Cin, C1).astype(jnp.bfloat16)
    w1f = jnp.pad(w1f, ((0, 0), (0, C1p - C1)))
    b1f = jnp.pad(b1, (0, C1p - C1)).astype(jnp.float32).reshape(1, C1p)

    # Layer-2 weights: pad Cin (padded activation channels are exactly zero)
    # and Cout, then flatten taps into K with the same (tap, cin) ordering.
    w2f = jnp.pad(w2 * s2, ((0, 0), (0, 0), (0, C1p - C1), (0, C2p - C2)))
    w2f = w2f.reshape(9 * C1p, C2p).astype(jnp.bfloat16)
    b2f = jnp.pad(b2, (0, C2p - C2)).astype(jnp.float32).reshape(1, C2p)

    # bf16 BEFORE the (small) spatial pad: the only wrapper-side pass over x.
    xp = jnp.pad(x.astype(jnp.bfloat16), ((0, 0), (1, 1), (1, 1), (0, 0)))

    flops = 2 * N * H * W * (9 * Cin * C1p + 9 * C1p * C2p)
    bytes_accessed = (xp.size * 2 + w1f.size * 2 + w2f.size * 2
                      + b1f.size * 4 + b2f.size * 4 + N * H * W * C2p * 4)

    out = pl.pallas_call(
        _fused_double_conv_kernel,
        out_shape=jax.ShapeDtypeStruct((N, H, W, C2p), jnp.float32),
        grid_spec=pltpu.PrefetchScalarGridSpec(
            num_scalar_prefetch=0,
            grid=(N,),
            in_specs=[
                pl.BlockSpec((1, H + 2, W + 2, Cin), lambda n: (n, 0, 0, 0)),
                pl.BlockSpec((9 * Cin, C1p), lambda n: (0, 0)),   # resident
                pl.BlockSpec((1, C1p), lambda n: (0, 0)),
                pl.BlockSpec((9 * C1p, C2p), lambda n: (0, 0)),   # resident
                pl.BlockSpec((1, C2p), lambda n: (0, 0)),
            ],
            out_specs=pl.BlockSpec((1, H, W, C2p), lambda n: (n, 0, 0, 0)),
            scratch_shapes=[pltpu.VMEM((H + 2, W + 2, C1p), jnp.bfloat16)],
        ),
        compiler_params=pltpu.CompilerParams(
            dimension_semantics=("parallel",),
            vmem_limit_bytes=_vmem_limit_bytes(),
        ),
        cost_estimate=pl.CostEstimate(
            flops=int(flops), transcendentals=0,
            bytes_accessed=int(bytes_accessed)),
    )(xp, w1f, b1f, w2f, b2f)

    return out[..., :C2]


# -------------------------------- Parameters -------------------------------- #

def init_conv_block_params(key, in_c, out_c):
    """Two (conv3x3 + BN + ReLU) layers; returns (key, [(w, scale, bias)])."""
    params = []
    c = in_c
    for _ in range(2):
        key, kw, kb = jax.random.split(key, 3)
        w = jax.random.normal(kw, (3, 3, c, out_c), jnp.float32) \
            * math.sqrt(2.0 / (9 * c))
        conv_b = 0.01 * jax.random.normal(kb, (out_c,), jnp.float32)
        # BatchNorm2d deterministic defaults: gamma=1, beta=0, mean=0, var=1.
        gamma = jnp.ones((out_c,), jnp.float32)
        beta = jnp.zeros((out_c,), jnp.float32)
        mean = jnp.zeros((out_c,), jnp.float32)
        var = jnp.ones((out_c,), jnp.float32)
        scale = gamma / jnp.sqrt(var + 1e-5)
        bias = beta + scale * (conv_b - mean)
        params.append((w, scale, bias))
        c = out_c
    return key, params


# --------------------------------- Forward ---------------------------------- #

def conv_block_forward(params, x_nchw):
    """Matches conv_block.forward: NCHW in / NCHW out."""
    x = jnp.transpose(x_nchw, (0, 2, 3, 1))          # -> NHWC
    y = double_conv3x3_bn_relu(x, params)
    return jnp.transpose(y, (0, 3, 1, 2))            # -> NCHW


def conv_block_reference(params, x_nhwc):
    """Pure-JAX reference (f32 path) for validation."""
    y = x_nhwc
    for w, scale, bias in params:
        conv = lax.conv_general_dilated(
            y, w, window_strides=(1, 1), padding="SAME",
            dimension_numbers=("NHWC", "HWIO", "NHWC"))
        y = jnp.maximum(conv * scale + bias, 0.0)
    return y


# ----------------------------------- Main ------------------------------------ #

if __name__ == "__main__":
    in_c, out_c = 16, 32
    N, H, W = 2, 16, 16

    key = jax.random.PRNGKey(0)
    key, params = init_conv_block_params(key, in_c, out_c)
    key, kx = jax.random.split(key)
    x = jax.random.normal(kx, (N, in_c, H, W), jnp.float32)

    out = jax.jit(conv_block_forward)(params, x)
    out = jax.block_until_ready(out)
    assert out.shape == (N, out_c, H, W), out.shape
    assert bool(jnp.all(jnp.isfinite(out)))

    # Loose tolerance: MXU operands and the fused layer-1 activation are bf16.
    ref = conv_block_reference(params, jnp.transpose(x, (0, 2, 3, 1)))
    ref = jnp.transpose(ref, (0, 3, 1, 2))
    assert bool(jnp.allclose(out, ref, rtol=5e-2, atol=5e-2)), \
        float(jnp.max(jnp.abs(out - ref)))

    print("KERNEL_OK")
</pallas_src>

<mosaic_0001>
module attributes {stable_mosaic.version = 11 : i64} {
  func.func @_fused_double_conv_kernel(%arg0: i32, %arg1: memref<1x18x18x16xbf16, #tpu.memory_space<vmem>>, %arg2: memref<144x128xbf16, #tpu.memory_space<vmem>>, %arg3: memref<1x128xf32, #tpu.memory_space<vmem>>, %arg4: memref<1152x128xbf16, #tpu.memory_space<vmem>>, %arg5: memref<1x128xf32, #tpu.memory_space<vmem>>, %arg6: memref<1x16x16x128xf32, #tpu.memory_space<vmem>>, %arg7: memref<18x18x128xbf16, #tpu.memory_space<vmem>>) attributes {dimension_semantics = [#tpu.dimension_semantics<parallel>], iteration_bounds = array<i64: 2>, scalar_prefetch = 0 : i64, scratch_operands = 1 : i64, tpu.core_type = #tpu.core_type<tc>, window_params = [{transform_indices = @transform_0, window_bounds = array<i64: 1, 18, 18, 16>}, {pipeline_mode = #tpu.pipeline_mode<synchronous>, transform_indices = @transform_1, window_bounds = array<i64: 144, 128>}, {pipeline_mode = #tpu.pipeline_mode<synchronous>, transform_indices = @transform_2, window_bounds = array<i64: 1, 128>}, {pipeline_mode = #tpu.pipeline_mode<synchronous>, transform_indices = @transform_3, window_bounds = array<i64: 1152, 128>}, {pipeline_mode = #tpu.pipeline_mode<synchronous>, transform_indices = @transform_4, window_bounds = array<i64: 1, 128>}, {transform_indices = @transform_5, window_bounds = array<i64: 1, 16, 16, 128>}]} {
    %c0 = arith.constant 0 : index
    %c0_0 = arith.constant 0 : index
    %c0_1 = arith.constant 0 : index
    %c0_2 = arith.constant 0 : index
    %0 = vector.load %arg1[%c0, %c0_0, %c0_1, %c0_2] : memref<1x18x18x16xbf16, #tpu.memory_space<vmem>>, vector<1x18x18x16xbf16>
    %1 = vector.shape_cast %0 : vector<1x18x18x16xbf16> to vector<18x18x16xbf16>
    %2 = vector.extract_strided_slice %1 {offsets = [0, 0, 0], sizes = [16, 16, 16], strides = [1, 1, 1]} : vector<18x18x16xbf16> to vector<16x16x16xbf16>
    %3 = vector.extract_strided_slice %1 {offsets = [0, 1, 0], sizes = [16, 16, 16], strides = [1, 1, 1]} : vector<18x18x16xbf16> to vector<16x16x16xbf16>
    %4 = vector.extract_strided_slice %1 {offsets = [0, 2, 0], sizes = [16, 16, 16], strides = [1, 1, 1]} : vector<18x18x16xbf16> to vector<16x16x16xbf16>
    %5 = vector.extract_strided_slice %1 {offsets = [1, 0, 0], sizes = [16, 16, 16], strides = [1, 1, 1]} : vector<18x18x16xbf16> to vector<16x16x16xbf16>
    %6 = vector.extract_strided_slice %1 {offsets = [1, 1, 0], sizes = [16, 16, 16], strides = [1, 1, 1]} : vector<18x18x16xbf16> to vector<16x16x16xbf16>
    %7 = vector.extract_strided_slice %1 {offsets = [1, 2, 0], sizes = [16, 16, 16], strides = [1, 1, 1]} : vector<18x18x16xbf16> to vector<16x16x16xbf16>
    %8 = vector.extract_strided_slice %1 {offsets = [2, 0, 0], sizes = [16, 16, 16], strides = [1, 1, 1]} : vector<18x18x16xbf16> to vector<16x16x16xbf16>
    %9 = vector.extract_strided_slice %1 {offsets = [2, 1, 0], sizes = [16, 16, 16], strides = [1, 1, 1]} : vector<18x18x16xbf16> to vector<16x16x16xbf16>
    %10 = vector.extract_strided_slice %1 {offsets = [2, 2, 0], sizes = [16, 16, 16], strides = [1, 1, 1]} : vector<18x18x16xbf16> to vector<16x16x16xbf16>
    %11 = tpu.concatenate %2, %3, %4, %5, %6, %7, %8, %9, %10 in 2 : vector<16x16x16xbf16>, vector<16x16x16xbf16>, vector<16x16x16xbf16>, vector<16x16x16xbf16>, vector<16x16x16xbf16>, vector<16x16x16xbf16>, vector<16x16x16xbf16>, vector<16x16x16xbf16>, vector<16x16x16xbf16> -> vector<16x16x144xbf16>
    %12 = vector.shape_cast %11 : vector<16x16x144xbf16> to vector<256x144xbf16>
    %c0_3 = arith.constant 0 : index
    %c0_4 = arith.constant 0 : index
    %13 = vector.load %arg2[%c0_3, %c0_4] : memref<144x128xbf16, #tpu.memory_space<vmem>>, vector<144x128xbf16>
    %cst = arith.constant dense<0.000000e+00> : vector<256x128xf32>
    %14 = tpu.matmul %12, %13, %cst {dimension_numbers = #tpu.dot_dimension_numbers<[1], [0], [0], [1], [0, 0, 1, 1], [], []>} : vector<256x144xbf16>, vector<144x128xbf16>, vector<256x128xf32> -> vector<256x128xf32>
    %c0_5 = arith.constant 0 : index
    %c0_6 = arith.constant 0 : index
    %15 = vector.load %arg3[%c0_5, %c0_6] : memref<1x128xf32, #tpu.memory_space<vmem>>, vector<1x128xf32>
    %16 = vector.broadcast %15 : vector<1x128xf32> to vector<256x128xf32>
    %17 = arith.addf %14, %16 : vector<256x128xf32>
    %cst_7 = arith.constant 0.000000e+00 : f32
    %18 = vector.broadcast %cst_7 : f32 to vector<256x128xf32>
    %19 = arith.maximumf %17, %18 : vector<256x128xf32>
    %20 = arith.truncf %19 : vector<256x128xf32> to vector<256x128xbf16>
    %cst_8 = arith.constant 0.000000e+00 : bf16
    %21 = vector.broadcast %cst_8 : bf16 to vector<18x18x128xbf16>
    %c0_9 = arith.constant 0 : index
    %c0_10 = arith.constant 0 : index
    %c0_11 = arith.constant 0 : index
    %22 = vector.load %arg7[%c0_9, %c0_10, %c0_11] : memref<18x18x128xbf16, #tpu.memory_space<vmem>>, vector<18x18x128xbf16>
    tpu.vector_store %arg7[%c0_9, %c0_10, %c0_11], %21 {strides = array<i32>} : memref<18x18x128xbf16, #tpu.memory_space<vmem>>, vector<18x18x128xbf16>,
    %23 = vector.shape_cast %20 : vector<256x128xbf16> to vector<16x16x128xbf16>
    %c1 = arith.constant 1 : index
    %c1_12 = arith.constant 1 : index
    %c0_13 = arith.constant 0 : index
    %24 = vector.load %arg7[%c1, %c1_12, %c0_13] : memref<18x18x128xbf16, #tpu.memory_space<vmem>>, vector<16x16x128xbf16>
    tpu.vector_store %arg7[%c1, %c1_12, %c0_13], %23 {strides = array<i32>} : memref<18x18x128xbf16, #tpu.memory_space<vmem>>, vector<16x16x128xbf16>,
    %c0_14 = arith.constant 0 : index
    %c0_15 = arith.constant 0 : index
    %c0_16 = arith.constant 0 : index
    %25 = vector.load %arg7[%c0_14, %c0_15, %c0_16] : memref<18x18x128xbf16, #tpu.memory_space<vmem>>, vector<18x18x128xbf16>
    %26 = vector.extract_strided_slice %25 {offsets = [0, 0, 0], sizes = [16, 16, 128], strides = [1, 1, 1]} : vector<18x18x128xbf16> to vector<16x16x128xbf16>
    %27 = vector.extract_strided_slice %25 {offsets = [0, 1, 0], sizes = [16, 16, 128], strides = [1, 1, 1]} : vector<18x18x128xbf16> to vector<16x16x128xbf16>
    %28 = vector.extract_strided_slice %25 {offsets = [0, 2, 0], sizes = [16, 16, 128], strides = [1, 1, 1]} : vector<18x18x128xbf16> to vector<16x16x128xbf16>
    %29 = vector.extract_strided_slice %25 {offsets = [1, 0, 0], sizes = [16, 16, 128], strides = [1, 1, 1]} : vector<18x18x128xbf16> to vector<16x16x128xbf16>
    %30 = vector.extract_strided_slice %25 {offsets = [1, 1, 0], sizes = [16, 16, 128], strides = [1, 1, 1]} : vector<18x18x128xbf16> to vector<16x16x128xbf16>
    %31 = vector.extract_strided_slice %25 {offsets = [1, 2, 0], sizes = [16, 16, 128], strides = [1, 1, 1]} : vector<18x18x128xbf16> to vector<16x16x128xbf16>
    %32 = vector.extract_strided_slice %25 {offsets = [2, 0, 0], sizes = [16, 16, 128], strides = [1, 1, 1]} : vector<18x18x128xbf16> to vector<16x16x128xbf16>
    %33 = vector.extract_strided_slice %25 {offsets = [2, 1, 0], sizes = [16, 16, 128], strides = [1, 1, 1]} : vector<18x18x128xbf16> to vector<16x16x128xbf16>
    %34 = vector.extract_strided_slice %25 {offsets = [2, 2, 0], sizes = [16, 16, 128], strides = [1, 1, 1]} : vector<18x18x128xbf16> to vector<16x16x128xbf16>
    %35 = tpu.concatenate %26, %27, %28, %29, %30, %31, %32, %33, %34 in 2 : vector<16x16x128xbf16>, vector<16x16x128xbf16>, vector<16x16x128xbf16>, vector<16x16x128xbf16>, vector<16x16x128xbf16>, vector<16x16x128xbf16>, vector<16x16x128xbf16>, vector<16x16x128xbf16>, vector<16x16x128xbf16> -> vector<16x16x1152xbf16>
    %36 = vector.shape_cast %35 : vector<16x16x1152xbf16> to vector<256x1152xbf16>
    %c0_17 = arith.constant 0 : index
    %c0_18 = arith.constant 0 : index
    %37 = vector.load %arg4[%c0_17, %c0_18] : memref<1152x128xbf16, #tpu.memory_space<vmem>>, vector<1152x128xbf16>
    %cst_19 = arith.constant dense<0.000000e+00> : vector<256x128xf32>
    %38 = tpu.matmul %36, %37, %cst_19 {dimension_numbers = #tpu.dot_dimension_numbers<[1], [0], [0], [1], [0, 0, 1, 1], [], []>} : vector<256x1152xbf16>, vector<1152x128xbf16>, vector<256x128xf32> -> vector<256x128xf32>
    %c0_20 = arith.constant 0 : index
    %c0_21 = arith.constant 0 : index
    %39 = vector.load %arg5[%c0_20, %c0_21] : memref<1x128xf32, #tpu.memory_space<vmem>>, vector<1x128xf32>
    %40 = vector.broadcast %39 : vector<1x128xf32> to vector<256x128xf32>
    %41 = arith.addf %38, %40 : vector<256x128xf32>
    %cst_22 = arith.constant 0.000000e+00 : f32
    %42 = vector.broadcast %cst_22 : f32 to vector<256x128xf32>
    %43 = arith.maximumf %41, %42 : vector<256x128xf32>
    %44 = vector.shape_cast %43 : vector<256x128xf32> to vector<16x16x128xf32>
    %c0_23 = arith.constant 0 : index
    %c0_24 = arith.constant 0 : index
    %c0_25 = arith.constant 0 : index
    %c0_26 = arith.constant 0 : index
    %45 = vector.load %arg6[%c0_23, %c0_24, %c0_25, %c0_26] : memref<1x16x16x128xf32, #tpu.memory_space<vmem>>, vector<1x16x16x128xf32>
    %46 = vector.shape_cast %45 : vector<1x16x16x128xf32> to vector<16x16x128xf32>
    %47 = vector.shape_cast %44 : vector<16x16x128xf32> to vector<1x16x16x128xf32>
    tpu.vector_store %arg6[%c0_23, %c0_24, %c0_25, %c0_26], %47 {strides = array<i32>} : memref<1x16x16x128xf32, #tpu.memory_space<vmem>>, vector<1x16x16x128xf32>,
    return
  }
  func.func @transform_0(%arg0: i32) -> (i32, i32, i32, i32) {
    %c0_i32 = arith.constant 0 : i32
    %c0_i32_0 = arith.constant 0 : i32
    %c0_i32_1 = arith.constant 0 : i32
    %c0_i32_2 = arith.constant 0 : i32
    return %arg0, %c0_i32, %c0_i32_0, %c0_i32_1 : i32, i32, i32, i32
  }
  func.func @transform_1(%arg0: i32) -> (i32, i32) {
    %c0_i32 = arith.constant 0 : i32
    %c0_i32_0 = arith.constant 0 : i32
    %c0_i32_1 = arith.constant 0 : i32
    return %c0_i32, %c0_i32_0 : i32, i32
  }
  func.func @transform_2(%arg0: i32) -> (i32, i32) {
    %c0_i32 = arith.constant 0 : i32
    %c0_i32_0 = arith.constant 0 : i32
    %c0_i32_1 = arith.constant 0 : i32
    return %c0_i32, %c0_i32_0 : i32, i32
  }
  func.func @transform_3(%arg0: i32) -> (i32, i32) {
    %c0_i32 = arith.constant 0 : i32
    %c0_i32_0 = arith.constant 0 : i32
    %c0_i32_1 = arith.constant 0 : i32
    return %c0_i32, %c0_i32_0 : i32, i32
  }
  func.func @transform_4(%arg0: i32) -> (i32, i32) {
    %c0_i32 = arith.constant 0 : i32
    %c0_i32_0 = arith.constant 0 : i32
    %c0_i32_1 = arith.constant 0 : i32
    return %c0_i32, %c0_i32_0 : i32, i32
  }
  func.func @transform_5(%arg0: i32) -> (i32, i32, i32, i32) {
    %c0_i32 = arith.constant 0 : i32
    %c0_i32_0 = arith.constant 0 : i32
    %c0_i32_1 = arith.constant 0 : i32
    %c0_i32_2 = arith.constant 0 : i32
    return %arg0, %c0_i32, %c0_i32_0, %c0_i32_1 : i32, i32, i32, i32
  }
}

</mosaic_0001>

<bundles_post_ra>
// kernel: conv_block_forward.1
= control target key start
LH: loop header
LB: loop body
LE: loop exit
PB: predicated region body
PF: predicated region fallthrough
CT: control target
= control target key end

     0   :  { %s5102_s18 = smov 0   ;;  %s6871_s0 = inlined_call_operand.vmem [shape: bf16[2,18,18,16], index: 0, kind: input, shape index: {}]   ;;  %s6872_s1 = inlined_call_operand.vmem [shape: bf16[144,128], index: 1, kind: input, shape index: {}]   ;;  %s6873_s2 = inlined_call_operand.vmem [shape: f32[1,128], index: 2, kind: input, shape index: {}]   ;;  %s6874_s3 = inlined_call_operand.vmem [shape: bf16[1152,128], index: 3, kind: input, shape index: {}]   ;;  %s6875_s4 = inlined_call_operand.vmem [shape: f32[1,128], index: 4, kind: input, shape index: {}]   ;;  %s6876_s5 = inlined_call_operand.vmem [shape: f32[2,16,16,128], index: 5, kind: output, shape index: {}]  }
   0x1 LB: > { %s4107_s19 = sadd.s32 4294967295, %s5062_s18   ;;  %p4111_p0 = scmp.ge.s32.totalorder %s5062_s18, 1  ;;  %s5062_s18 = sphi %s5102_s18, %s15_s18  }
   0x2   : > { %p187_p1 = scmp.lt.s32.totalorder %s5062_s18, 3 }
   0x4   : > { %p188_p2 = pnand %p4111_p0, %p187_p1 }
   0x6   : > { %191 = sbr.rel (%p188_p2) target bundleno = 1093 (0x445), region = 40 }
   0xd   : > { %p5112_p3 = scmp.lt.s32.totalorder %s4107_s19, 1  ;;  %v5064_v0 = vmov 0   ;;  %v4908_v1 = vld [vmem:[%s6872_s1] sm:$0xff]   ;;  %v4909_v2 = vld [vmem:[%s6872_s1 + $0x8] sm:$0xff]   ;;  %vm633_vm0 = vcmask 1046528   ;;  %v4910_v3 = vld [vmem:[%s6872_s1 + $0x10] sm:$0xff]  }
   0xe   : > { %1294 = vmatprep.subr.bf16.mxu0 %v5064_v0  ;;  %1503 = vst [vmem:[#allocation2] sm:$0xf] %v5064_v0  ;;  %1504 = vst [vmem:[#allocation2 + $0x4] sm:$0xf] %v5064_v0  ;;  %vm408_vm1 = vsmask.f32 7424 }
   0xf   : > { %1505 = vst [vmem:[#allocation2 + $0x8] sm:$0x1] %v5064_v0  ;;  %1506 = vst [vmem:[#allocation2 + $0xc] sm:$0xf] %v5064_v0  ;;  %s6971_s19 = smov (!%p5112_p3, %s4107_s19), 1  ;;  %1295 = vmatpush1.bf16.msra.mxu0 %v4908_v1  ;;  %s5065_s6 = smov 48  }
  0x10   : > { %1507 = vst [vmem:[#allocation2 + $0x10] sm:$0xf] %v5064_v0  ;;  %1508 = vst [vmem:[#allocation2 + $0x14] sm:$0x1] %v5064_v0  ;;  %s4873_s23 = smul.u32 216, %s6971_s19  ;;  %1296 = vmatprep.subr.bf16.mxu0 %v5064_v0  ;;  %v4913_v8 = vld [vmem:[%s6872_s1 + $0x18] sm:$0xff]  }
  0x11   : > { %1509 = vst [vmem:[#allocation2 + $0x18] sm:$0xf] %v5064_v0  ;;  %1510 = vst [vmem:[#allocation2 + $0x1c] sm:$0xf] %v5064_v0  ;;  %s5066_s9 = smov 96   ;;  %s5067_s10 = smov 32  }
  0x12   : > { %1511 = vst [vmem:[#allocation2 + $0x20] sm:$0x1] %v5064_v0  ;;  %1512 = vst [vmem:[#allocation2 + $0x24] sm:$0xf] %v5064_v0  ;;  %s5188_s28 = scalar_lea.vmem %s6871_s0, %s4873_s23  ;;  %v4914_v29 = vld [vmem:[%s6872_s1 + $0x20] sm:$0xff]   ;;  %s5068_s13 = smov 80  }
  0x13   : > { %1513 = vst [vmem:[#allocation2 + $0x28] sm:$0xf] %v5064_v0  ;;  %1514 = vst [vmem:[#allocation2 + $0x2c] sm:$0x1] %v5064_v0  ;;  %v5194_v4 = vld [vmem:[%s5188_s28 + $0xc] sm:$0xff]   ;;  %1297 = vmatpush1.bf16.msra.mxu0 %v4909_v2  ;;  %v5199_v5 = vld [vmem:[%s5188_s28] sm:$0xff]  }
  0x14   : > { %1515 = vst [vmem:[#allocation2 + $0x30] sm:$0xf] %v5064_v0  ;;  %1516 = vst [vmem:[#allocation2 + $0x34] sm:$0xf] %v5064_v0  ;;  %719 = vrot.lane.b32.xlu1 %v5194_v4, %s5065_s6  ;;  %1298 = vmatprep.subr.bf16.mxu0 %v5064_v0  ;;  %v5204_v7 = vld [vmem:[%s5188_s28 + $0x18] sm:$0xff]   ;;  %v634_v9 = vrot.slane %v5199_v5, 1 }
  0x15   : > { %1517 = vst [vmem:[#allocation2 + $0x38] sm:$0x1] %v5064_v0  ;;  %1518 = vst [vmem:[#allocation2 + $0x3c] sm:$0xf] %v5064_v0  ;;  %v637_v12 = vrot.slane %v5194_v4, 1  ;;  %v422_v13 = vshrl.u32 %v5194_v4, 16 }
  0x16   : > { %1519 = vst [vmem:[#allocation2 + $0x40] sm:$0xf] %v5064_v0  ;;  %1520 = vst [vmem:[#allocation2 + $0x44] sm:$0x1] %v5064_v0  ;;  %v424_v14 = vshll.u32 %v5194_v4, 16  ;;  %v410_v15 = vshrl.u32 %v5199_v5, 16 }
  0x17   : > { %1521 = vst [vmem:[#allocation2 + $0x48] sm:$0xf] %v5064_v0  ;;  %1522 = vst [vmem:[#allocation2 + $0x4c] sm:$0xf] %v5064_v0  ;;  %v412_v16 = vshll.u32 %v5199_v5, 16  ;;  %1299 = vmatpush1.bf16.msra.mxu0 %v4910_v3  ;;  %v436_v26 = vshll.u32 %v5204_v7, 16 }
  0x18   : > { %1523 = vst [vmem:[#allocation2 + $0x50] sm:$0x1] %v5064_v0  ;;  %1524 = vst [vmem:[#allocation2 + $0x54] sm:$0xf] %v5064_v0  ;;  %838 = vrot.lane.b32.xlu1 %v5204_v7, %s5066_s9  ;;  %1300 = vmatprep.subr.bf16.mxu0 %v5064_v0  ;;  %v426_v21 = vrot.slane %v424_v14, 1  ;;  %v5225_v27 = vld [vmem:[%s5188_s28 + $0x24] sm:$0xff]  }
  0x19   : > { %1525 = vst [vmem:[#allocation2 + $0x58] sm:$0xf] %v5064_v0  ;;  %1526 = vst [vmem:[#allocation2 + $0x5c] sm:$0x1] %v5064_v0  ;;  %v414_v25 = vrot.slane %v412_v16, 1  ;;  %v434_v32 = vshrl.u32 %v5204_v7, 16 }
  0x1a   : > { %1527 = vst [vmem:[#allocation2 + $0x60] sm:$0xf] %v5064_v0  ;;  %1528 = vst [vmem:[#allocation2 + $0x64] sm:$0xf] %v5064_v0  ;;  %v427_v28 = vor.u32 %v426_v21, %v422_v13  ;;  %v448_v33 = vshll.u32 %v5225_v27, 16  ;;  %v438_v36 = vrot.slane %v436_v26, 1 }
  0x1b   : > { %1529 = vst [vmem:[#allocation2 + $0x68] sm:$0x1] %v5064_v0  ;;  %1530 = vst [vmem:[#allocation2 + $0x6c] sm:$0xf] %v5064_v0  ;;  %1301 = vmatpush1.bf16.msra.mxu0 %v4913_v8  ;;  %v415_v34 = vor.u32 %v414_v25, %v410_v15  ;;  %s5069_s14 = smov 64   ;;  %v640_v38 = vrot.slane %v5204_v7, 1 }
  0x1c   : > { %1531 = vst [vmem:[#allocation2 + $0x70] sm:$0xf] %v5064_v0  ;;  %1532 = vst [vmem:[#allocation2 + $0x74] sm:$0x1] %v5064_v0  ;;  %721 = vrot.lane.b32.xlu1 %v5204_v7, %s5065_s6  ;;  %1302 = vmatprep.subr.bf16.mxu0 %v5064_v0  ;;  %v446_v40 = vshrl.u32 %v5225_v27, 16  ;;  %v450_v41 = vrot.slane %v448_v33, 1  ;;  %v439_v44 = vor.u32 %v438_v36, %v434_v32 }
  0x1d   : > { %1533 = vst [vmem:[#allocation2 + $0x78] sm:$0xf] %v5064_v0  ;;  %1534 = vst [vmem:[#allocation2 + $0x7c] sm:$0xf] %v5064_v0  ;;  %s5070_s15 = smov 16   ;;  %s5071_s16 = smov 112  }
  0x1e   : > { %1535 = vst [vmem:[#allocation2 + $0x80] sm:$0x1] %v5064_v0  ;;  %1536 = vst [vmem:[#allocation2 + $0x84] sm:$0xf] %v5064_v0  ;;  %v451_v47 = vor.u32 %v450_v41, %v446_v40  ;;  %v4915_v51 = vld [vmem:[%s6872_s1 + $0x28] sm:$0xff]   ;;  %v5260_v52 = vld [vmem:[%s5188_s28 + $0x30] sm:$0xff]  }
  0x1f   : > { %1537 = vst [vmem:[#allocation2 + $0x88] sm:$0xf] %v5064_v0  ;;  %1538 = vst [vmem:[#allocation2 + $0x8c] sm:$0x1] %v5064_v0  ;;  %1303 = vmatpush1.bf16.msra.mxu0 %v4914_v29  ;;  %v4917_v53 = vld [vmem:[%s6872_s1 + $0x30] sm:$0xff]   ;;  %v4919_v55 = vld [vmem:[%s6872_s1 + $0x38] sm:$0xff]  }
  0x20   : > { %1539 = vst [vmem:[#allocation2 + $0x90] sm:$0xf] %v5064_v0  ;;  %1540 = vst [vmem:[#allocation2 + $0x94] sm:$0xf] %v5064_v0  ;;  %1304 = vmatprep.subr.bf16.mxu0 %v5064_v0  ;;  %v460_v56 = vshll.u32 %v5260_v52, 16  ;;  %vm920_vm2 = vcmask 130048  }
  0x21   : > { %1541 = vst [vmem:[#allocation2 + $0x98] sm:$0x1] %v5064_v0  ;;  %1542 = vst [vmem:[#allocation2 + $0x9c] sm:$0xf] %v5064_v0  ;;  %v643_v57 = vrot.slane %v5225_v27, 1  ;;  %v458_v59 = vshrl.u32 %v5260_v52, 16 }
  0x22   : > { %1543 = vst [vmem:[#allocation2 + $0xa0] sm:$0xf] %v5064_v0  ;;  %1544 = vst [vmem:[#allocation2 + $0xa4] sm:$0x1] %v5064_v0  ;;  %v5282_v60 = vld [vmem:[%s5188_s28 + $0x3c] sm:$0xff]   ;;  %v462_v62 = vrot.slane %v460_v56, 1 }
  0x23   : > { %1545 = vst [vmem:[#allocation2 + $0xa8] sm:$0xf] %v5064_v0  ;;  %1546 = vst [vmem:[#allocation2 + $0xac] sm:$0xf] %v5064_v0  ;;  %1305 = vmatpush1.bf16.msra.mxu0 %v4915_v51  ;;  %v4920_v61 = vld [vmem:[%s6872_s1 + $0x40] sm:$0xff]   ;;  %v472_v2 = vshll.u32 %v5282_v60, 16 }
  0x24   : > { %1547 = vst [vmem:[#allocation2 + $0xb0] sm:$0x1] %v5064_v0  ;;  %1548 = vst [vmem:[#allocation2 + $0xb4] sm:$0xf] %v5064_v0  ;;  %1306 = vmatprep.subr.bf16.mxu0 %v5064_v0  ;;  %vm953_vm3 = vcmask 261120   ;;  %vm986_vm4 = vcmask 392192  }
  0x25   : > { %1549 = vst [vmem:[#allocation2 + $0xb8] sm:$0xf] %v5064_v0  ;;  %1550 = vst [vmem:[#allocation2 + $0xbc] sm:$0x1] %v5064_v0  ;;  %vm1019_vm5 = vcmask 523264   ;;  %vm1052_vm6 = vcmask 654336  }
  0x26   : > { %1551 = vst [vmem:[#allocation2 + $0xc0] sm:$0xf] %v5064_v0  ;;  %1552 = vst [vmem:[#allocation2 + $0xc4] sm:$0xf] %v5064_v0  ;;  %vm1085_vm7 = vcmask 785408   ;;  %vm1118_vm8 = vcmask 916480  }
  0x27   : > { %1553 = vst [vmem:[#allocation2 + $0xc8] sm:$0x1] %v5064_v0  ;;  %1554 = vst [vmem:[#allocation2 + $0xcc] sm:$0xf] %v5064_v0  ;;  %1307 = vmatpush1.bf16.msra.mxu0 %v4917_v53  ;;  %vm1961_vm9 = vcmask 1043456   ;;  %vm1968_vm13 = vcmask 1040384  }
  0x28   : > { %1555 = vst [vmem:[#allocation2 + $0xd0] sm:$0xf] %v5064_v0  ;;  %1556 = vst [vmem:[#allocation2 + $0xd4] sm:$0x1] %v5064_v0  ;;  %1308 = vmatprep.subr.bf16.mxu0 %v5064_v0  ;;  %vm1962_vm10 = vsmask.f32 7938 }
  0x29   : > { %v4892_v6 = vld [vmem:[%s5188_s28 + $0x8] ss:$0 sps:$4 sm:$0x11]   ;;  %v4894_v11 = vld [vmem:[%s5188_s28 + $0x14] ss:$0 sps:$4 sm:$0x11]   ;;  %vm5867_vm14 = vmand %vm1961_vm9, %vm1962_vm10 }
  0x2a   : > { %v635_v10 = vrot.slane %v4892_v6, 1  ;;  %v638_v18 = vrot.slane %v4894_v11, 1  ;;  %v429_v19 = vshll.u32 %v4894_v11, 16  ;;  %v417_v20 = vshll.u32 %v4892_v6, 16  ;;  %s4320_s17 = sshll.u32 %s6971_s19, 8 }
  0x2b   : > { %v4895_v22 = vld [vmem:[%s5188_s28 + $0x20] ss:$0 sps:$4 sm:$0x11]   ;;  %v5233_v30 = vld [vmem:[%s5188_s28 + $0x2c] ss:$0 sps:$4 sm:$0x11]   ;;  %1309 = vmatpush1.bf16.msra.mxu0 %v4919_v55  ;;  %v463_v6 = vor.u32 %v462_v62, %v458_v59  ;;  %s6773_s22 = scalar_lea.vmem %s6876_s5, %s4320_s17 }
  0x2c   : > { %v636_v17 = vsel %vm633_vm0, %v634_v9, %v635_v10  ;;  %v639_v23 = vsel %vm633_vm0, %v637_v12, %v638_v18  ;;  %v431_v24 = vrot.slane %v429_v19, 1  ;;  %v419_v35 = vrot.slane %v417_v20, 1  ;;  %v4899_v54 = vld [vmem:[%s5188_s28 + $0x38] ss:$0 sps:$4 sm:$0x11]   ;;  %1310 = vmatprep.subr.bf16.mxu0 %v5064_v0  ;;  %v5315_v18 = vld [vmem:[%s5188_s28 + $0x48] sm:$0xff]  }
  0x2d   : > { %682 = vrot.lane.b32.xlu0 %v636_v17, %s5067_s10  ;;  %v441_v37 = vshll.u32 %v4895_v22, 16  ;;  %v641_v39 = vrot.slane %v4895_v22, 1  ;;  %v453_v42 = vshll.u32 %v5233_v30, 16  ;;  %v644_v58 = vrot.slane %v5233_v30, 1 }
  0x2e   : > { %v432_v31 = vsel %vm408_vm1, %v427_v28, %v431_v24  ;;  %v420_v43 = vsel %vm408_vm1, %v415_v34, %v419_v35  ;;  %v465_v63 = vshll.u32 %v4899_v54, 16  ;;  %v4901_v1 = vld [vmem:[%s5188_s28 + $0x44] ss:$0 sps:$4 sm:$0x11]   ;;  %v646_v0 = vrot.slane %v5260_v52, 1  ;;  %v5328_v24 = vld [vmem:[%s5188_s28 + $0x54] sm:$0xff]  }
  0x2f   : > { %766 = vrot.lane.b32.xlu1 %v432_v31, %s5069_s14  ;;  %v443_v45 = vrot.slane %v441_v37, 1  ;;  %v642_v46 = vsel %vm633_vm0, %v640_v38, %v641_v39  ;;  %v455_v48 = vrot.slane %v453_v42, 1  ;;  %1311 = vmatpush1.bf16.msra.mxu0 %v4920_v61  ;;  %v5295_v3 = vsel %vm633_vm0, %v643_v57, %v644_v58  ;;  %v4905_v25 = vld [vmem:[%s5188_s28 + $0x5c] ss:$0 sps:$4 sm:$0x11]  }
  0x30   : > { %4161 = vmatprep.mubr.msk.bf16.mxu0 %vm920_vm2, %v642_v46  ;;  %v467_v8 = vrot.slane %v465_v63, 1  ;;  %v647_v9 = vrot.slane %v4899_v54, 1  ;;  %v470_v10 = vshrl.u32 %v5282_v60, 16  ;;  %v474_v11 = vrot.slane %v472_v2, 1 }
  0x31   : > { %801 = vrot.lane.b32.xlu0 %v639_v23, %s5068_s13  ;;  %v444_v49 = vsel %vm408_vm1, %v439_v44, %v443_v45  ;;  %v456_v50 = vsel %vm408_vm1, %v451_v47, %v455_v48  ;;  %v477_v12 = vshll.u32 %v4901_v1, 16  ;;  %v649_v19 = vrot.slane %v5282_v60, 1  ;;  %v4907_v48 = vld [vmem:[%s5188_s28 + $0x68] ss:$0 sps:$4 sm:$0x11]  }
  0x32   : > { %v468_v13 = vsel %vm408_vm1, %v463_v6, %v467_v8  ;;  %v5307_v14 = vsel %vm633_vm0, %v646_v0, %v647_v9  ;;  %v475_v15 = vor.u32 %v474_v11, %v470_v10  ;;  %v650_v20 = vrot.slane %v4901_v1, 1  ;;  %v5405_v9 = vld [vmem:[%s5188_s28 + $0x78] sm:$0xff]   ;;  %v4918_v11 = vld [vmem:[%s5188_s28 + $0x80] ss:$0 sps:$4 sm:$0x11]  }
  0x33   : > { %603 = vrot.lane.b32.xlu1 %v432_v31, %s5070_s15  ;;  %v479_v16 = vrot.slane %v477_v12, 1  ;;  %v482_v21 = vshrl.u32 %v5315_v18, 16  ;;  %v484_v22 = vshll.u32 %v5315_v18, 16  ;;  %v496_v29 = vshll.u32 %v5328_v24, 16 }
  0x34   : > { %v501_v30 = vshll.u32 %v4905_v25, 16  ;;  %v652_v32 = vrot.slane %v5315_v18, 1  ;;  %v494_v34 = vshrl.u32 %v5328_v24, 16  ;;  %v5341_v35 = vsel %vm633_vm0, %v649_v19, %v650_v20 }
  0x35   : > { %684 = vrot.lane.b32.xlu0 %v639_v23, %s5067_s10  ;;  %v480_v17 = vsel %vm408_vm1, %v475_v15, %v479_v16  ;;  %v4903_v23 = vld [vmem:[%s5188_s28 + $0x50] ss:$0 sps:$4 sm:$0x11]   ;;  %v486_v26 = vrot.slane %v484_v22, 1  ;;  %v498_v37 = vrot.slane %v496_v29, 1  ;;  %v655_v44 = vrot.slane %v5328_v24, 1 }
  0x36   : > { %v489_v28 = vshll.u32 %v4903_v23, 16  ;;  %v653_v33 = vrot.slane %v4903_v23, 1  ;;  %v503_v38 = vrot.slane %v501_v30, 1  ;;  %v656_v45 = vrot.slane %v4905_v25, 1  ;;  %v5417_v15 = vld [vmem:[%s5188_s28 + $0x84] sm:$0xff]  }
  0x37   : > { %803 = vrot.lane.b32.xlu1 %v642_v46, %s5068_s13  ;;  %v487_v36 = vor.u32 %v486_v26, %v482_v21  ;;  %v499_v41 = vor.u32 %v498_v37, %v494_v34  ;;  %v513_v53 = vshll.u32 %v4907_v48, 16  ;;  %v659_v58 = vrot.slane %v4907_v48, 1  ;;  %v5425_v23 = vld [vmem:[%s5188_s28 + $0x8c] ss:$0 sps:$4 sm:$0x11]  }
  0x38   : > { %v491_v31 = vrot.slane %v489_v28, 1  ;;  %v5351_v40 = vsel %vm633_vm0, %v652_v32, %v653_v33  ;;  %v5385_v61 = vsel %vm633_vm0, %v655_v44, %v656_v45  ;;  %v532_v12 = vshll.u32 %v5405_v9, 16 }
  0x39   : > { %601 = vrot.lane.b32.xlu0 %v420_v43, %s5070_s15  ;;  %v504_v42 = vsel %vm408_vm1, %v499_v41, %v503_v38  ;;  %v5359_v43 = vld [vmem:[%s5188_s28 + $0x60] sm:$0xff]   ;;  %v515_v56 = vrot.slane %v513_v53, 1  ;;  %v530_v19 = vshrl.u32 %v5405_v9, 16  ;;  %v537_v21 = vshll.u32 %v4918_v11, 16 }
  0x3a   : > { %v492_v39 = vsel %vm408_vm1, %v487_v36, %v491_v31  ;;  %v508_v47 = vshll.u32 %v5359_v43, 16  ;;  %v658_v57 = vrot.slane %v5359_v43, 1  ;;  %v534_v20 = vrot.slane %v532_v12, 1 }
  0x3b   : > { %887 = vrot.lane.b32.xlu1 %v456_v50, %s5071_s16  ;;  %v544_v25 = vshll.u32 %v5417_v15, 16  ;;  %v539_v30 = vrot.slane %v537_v21, 1  ;;  %v664_v32 = vrot.slane %v5405_v9, 1  ;;  %v665_v33 = vrot.slane %v4918_v11, 1 }
  0x3c   : > { %v510_v51 = vrot.slane %v508_v47, 1  ;;  %v5395_v6 = vsel %vm633_vm0, %v658_v57, %v659_v58  ;;  %v535_v29 = vor.u32 %v534_v20, %v530_v19  ;;  %v542_v34 = vshrl.u32 %v5417_v15, 16  ;;  %v5482_v19 = vld [vmem:[%s5188_s28 + $0x9c] sm:$0xff]  }
  0x3d   : > { %885 = vrot.lane.b32.xlu0 %v444_v49, %s5071_s16  ;;  %v546_v36 = vrot.slane %v544_v25, 1  ;;  %v549_v37 = vshll.u32 %v5425_v23, 16  ;;  %v668_v21 = vrot.slane %v5425_v23, 1  ;;  %v568_v23 = vshll.u32 %v5482_v19, 16 }
  0x3e   : > { %vm1637_vm11 = vsmask.f32 256  ;;  %vm1638_vm12 = vsmask.f32 4368 }
  0x3f   : > { %686 = vrot.lane.b32.xlu1 %v642_v46, %s5067_s10  ;;  %v506_v46 = vshrl.u32 %v5359_v43, 16  ;;  %v547_v44 = vor.u32 %v546_v36, %v542_v34  ;;  %v551_v45 = vrot.slane %v549_v37, 1  ;;  %vm5872_vm15 = vmor %vm1637_vm11, %vm1638_vm12 }
  0x41   : > { %768 = vrot.lane.b32.xlu0 %v444_v49, %s5069_s14  ;;  %v511_v62 = vor.u32 %v510_v51, %v506_v46  ;;  %v552_v53 = vsel %vm408_vm1, %v547_v44, %v551_v45  ;;  %v570_v44 = vrot.slane %v568_v23, 1 }
  0x43   : > { %770 = vrot.lane.b32.xlu1 %v456_v50, %s5069_s14  ;;  %v516_v2 = vsel %vm408_vm1, %v511_v62, %v515_v56 }
  0x45   : > { %840 = vrot.lane.b32.xlu0 %v5225_v27, %s5066_s9 }
  0x47   : > { %842 = vrot.lane.b32.xlu1 %v5260_v52, %s5066_s9 }
  0x49   : > { %605 = vrot.lane.b32.xlu0 %v444_v49, %s5070_s15  ;;  %v5372_v49 = vld [vmem:[%s5188_s28 + $0x6c] sm:$0xff]  }
  0x4a   : > { %v520_v54 = vshll.u32 %v5372_v49, 16  ;;  %v518_v59 = vshrl.u32 %v5372_v49, 16 }
  0x4b   : > { %607 = vrot.lane.b32.xlu1 %v456_v50, %s5070_s15  ;;  %v4912_v50 = vld [vmem:[%s5188_s28 + $0x74] ss:$0 sps:$4 sm:$0x11]  }
  0x4c   : > { %v525_v55 = vshll.u32 %v4912_v50, 16  ;;  %v522_v63 = vrot.slane %v520_v54, 1 }
  0x4d   : > { %723 = vrot.lane.b32.xlu0 %v5225_v27, %s5065_s6 }
  0x4e   : > { %v527_v1 = vrot.slane %v525_v55, 1  ;;  %v523_v8 = vor.u32 %v522_v63, %v518_v59  ;;  %v5463_v63 = vld [vmem:[%s5188_s28 + $0x90] sm:$0xff]  }
  0x4f   : > { %725 = vrot.lane.b32.xlu1 %v5260_v52, %s5065_s6  ;;  %v556_v11 = vshll.u32 %v5463_v63, 16 }
  0x50   : > { %v528_v0 = vsel %vm408_vm1, %v523_v8, %v527_v1 }
  0x51   : > { %805 = vrot.lane.b32.xlu0 %v5295_v3, %s5068_s13  ;;  %v558_v25 = vrot.slane %v556_v11, 1 }
  0x53   : > { %807 = vrot.lane.b32.xlu1 %v5307_v14, %s5068_s13 }
  0x55   : > { %889 = vrot.lane.b32.xlu0 %v468_v13, %s5071_s16 }
  0x57   : > { %891 = vrot.lane.b32.xlu1 %v480_v17, %s5071_s16 }
  0x59   : > { %688 = vrot.lane.b32.xlu0 %v5295_v3, %s5067_s10 }
  0x5b   : > { %690 = vrot.lane.b32.xlu1 %v5307_v14, %s5067_s10 }
  0x5d   : > { %772 = vrot.lane.b32.xlu0 %v468_v13, %s5069_s14 }
  0x5f   : > { %774 = vrot.lane.b32.xlu1 %v480_v17, %s5069_s14 }
  0x61   : > { %844 = vrot.lane.b32.xlu0 %v5282_v60, %s5066_s9 }
  0x63   : > { %846 = vrot.lane.b32.xlu1 %v5315_v18, %s5066_s9 }
  0x65   : > { %609 = vrot.lane.b32.xlu0 %v468_v13, %s5070_s15  ;;  %v661_v13 = vrot.slane %v5372_v49, 1 }
  0x67   : > { %611 = vrot.lane.b32.xlu1 %v480_v17, %s5070_s15  ;;  %v662_v17 = vrot.slane %v4912_v50, 1 }
  0x69   : > { %727 = vrot.lane.b32.xlu0 %v5282_v60, %s5065_s6  ;;  %v5429_v28 = vsel %vm633_vm0, %v661_v13, %v662_v17 }
  0x6b   : > { %729 = vrot.lane.b32.xlu1 %v5315_v18, %s5065_s6 }
  0x6d   : > { %809 = vrot.lane.b32.xlu0 %v5341_v35, %s5068_s13 }
  0x6f   : > { %811 = vrot.lane.b32.xlu1 %v5351_v40, %s5068_s13 }
  0x71   : > { %893 = vrot.lane.b32.xlu0 %v492_v39, %s5071_s16 }
  0x73   : > { %895 = vrot.lane.b32.xlu1 %v504_v42, %s5071_s16 }
  0x75   : > { %692 = vrot.lane.b32.xlu0 %v5341_v35, %s5067_s10 }
  0x77   : > { %694 = vrot.lane.b32.xlu1 %v5351_v40, %s5067_s10 }
  0x79   : > { %776 = vrot.lane.b32.xlu0 %v492_v39, %s5069_s14 }
  0x7b   : > { %778 = vrot.lane.b32.xlu1 %v504_v42, %s5069_s14 }
  0x7d   : > { %848 = vrot.lane.b32.xlu0 %v5328_v24, %s5066_s9 }
  0x7f   : > { %850 = vrot.lane.b32.xlu1 %v5359_v43, %s5066_s9 }
  0x81   : > { %613 = vrot.lane.b32.xlu0 %v492_v39, %s5070_s15  ;;  %v540_v39 = vsel %vm408_vm1, %v535_v29, %v539_v30 }
  0x83   : > { %615 = vrot.lane.b32.xlu1 %v504_v42, %s5070_s15  ;;  %v5442_v42 = vsel %vm633_vm0, %v664_v32, %v665_v33 }
  0x85   : > { %731 = vrot.lane.b32.xlu0 %v5328_v24, %s5065_s6 }
  0x86   : > { %v720_v10 = vpop.permute.xlu1 %719 }
  0x87   : > { %733 = vrot.lane.b32.xlu1 %v5359_v43, %s5065_s6 }
  0x89   : > { %813 = vrot.lane.b32.xlu0 %v5385_v61, %s5068_s13 }
  0x8a   : > { %v839_v16 = vpop.permute.xlu1 %838 }
  0x8b   : > { %815 = vrot.lane.b32.xlu1 %v5395_v6, %s5068_s13 }
  0x8d   : > { %897 = vrot.lane.b32.xlu0 %v516_v2, %s5071_s16 }
  0x8e   : > { %v722_v26 = vpop.permute.xlu1 %721 }
  0x8f   : > { %899 = vrot.lane.b32.xlu1 %v528_v0, %s5071_s16 }
  0x91   : > { %696 = vrot.lane.b32.xlu0 %v5385_v61, %s5067_s10 }
  0x93   : > { %698 = vrot.lane.b32.xlu1 %v5395_v6, %s5067_s10 }
  0x95   : > { %780 = vrot.lane.b32.xlu0 %v516_v2, %s5069_s14 }
  0x97   : > { %782 = vrot.lane.b32.xlu1 %v528_v0, %s5069_s14 }
  0x99   : > { %852 = vrot.lane.b32.xlu0 %v5372_v49, %s5066_s9 }
  0x9b   : > { %854 = vrot.lane.b32.xlu1 %v5405_v9, %s5066_s9 }
  0x9d   : > { %617 = vrot.lane.b32.xlu0 %v516_v2, %s5070_s15 }
  0x9f   : > { %v683_v22 = vpop.permute.xlu0 %682  ;;  %619 = vrot.lane.b32.xlu1 %v528_v0, %s5070_s15 }
  0xa1   : > { %735 = vrot.lane.b32.xlu0 %v5372_v49, %s5065_s6  ;;  %v767_v38 = vpop.permute.xlu1 %766 }
  0xa3   : > { %v802_v31 = vpop.permute.xlu0 %801  ;;  %737 = vrot.lane.b32.xlu1 %v5405_v9, %s5065_s6 }
  0xa5   : > { %817 = vrot.lane.b32.xlu0 %v5429_v28, %s5068_s13  ;;  %v604_v46 = vpop.permute.xlu1 %603 }
  0xa6   : > { %v924_v51 = vsel %vm920_vm2, %v5194_v4, %v604_v46 }
  0xa7   : > { %v685_v41 = vpop.permute.xlu0 %684  ;;  %819 = vrot.lane.b32.xlu1 %v5442_v42, %s5068_s13 }
  0xa8   : > { %v957_v57 = vsel %vm953_vm3, %v924_v51, %v685_v41  ;;  %v566_v41 = vshrl.u32 %v5482_v19, 16 }
  0xa9   : > { %901 = vrot.lane.b32.xlu0 %v540_v39, %s5071_s16  ;;  %v990_v1 = vsel %vm986_vm4, %v957_v57, %v722_v26 }
  0xab   : > { %v602_v47 = vpop.permute.xlu0 %601  ;;  %903 = vrot.lane.b32.xlu1 %v552_v53, %s5071_s16 }
  0xac   : > { %v922_v48 = vsel %vm920_vm2, %v5199_v5, %v602_v47  ;;  %v804_v5 = vpop.permute.xlu1 %803 }
  0xad   : > { %v955_v50 = vsel %vm953_vm3, %v922_v48, %v683_v22  ;;  %700 = vrot.lane.b32.xlu0 %v5429_v28, %s5067_s10  ;;  %v554_v22 = vshrl.u32 %v5463_v63, 16 }
  0xae   : > { %v988_v54 = vsel %vm986_vm4, %v955_v50, %v720_v10  ;;  %v4924_v10 = vld [vmem:[%s5188_s28 + $0x98] ss:$0 sps:$4 sm:$0x11]  }
  0xaf   : > { %v886_v55 = vpop.permute.xlu0 %885  ;;  %v1021_v56 = vsel %vm1019_vm5, %v988_v54, %v767_v38  ;;  %702 = vrot.lane.b32.xlu1 %v5442_v42, %s5067_s10  ;;  %v561_v26 = vshll.u32 %v4924_v10, 16  ;;  %v559_v34 = vor.u32 %v558_v25, %v554_v22  ;;  %v571_v54 = vor.u32 %v570_v44, %v566_v41  ;;  %v5550_v22 = vld [vmem:[%s5188_s28 + $0xb4] sm:$0xff]  }
  0xb0   : > { %v1054_v4 = vsel %vm1052_vm6, %v1021_v56, %v802_v31  ;;  %v888_v62 = vpop.permute.xlu1 %887  ;;  %v5495_v31 = vld [vmem:[%s5188_s28 + $0xa4] ss:$0 sps:$4 sm:$0x11]  }
  0xb1   : > { %784 = vrot.lane.b32.xlu0 %v540_v39, %s5069_s14  ;;  %v1087_v58 = vsel %vm1085_vm7, %v1054_v4, %v839_v16  ;;  %v563_v36 = vrot.slane %v561_v26, 1  ;;  %v573_v45 = vshll.u32 %v5495_v31, 16  ;;  %v674_v26 = vrot.slane %v5495_v31, 1 }
  0xb2   : > { %v1120_v59 = vsel %vm1118_vm8, %v1087_v58, %v886_v55  ;;  %v592_v31 = vshll.u32 %v5550_v22, 16 }
  0xb3   : > { %1327 = vmatmul.mubr.bf16.vlgmr.msra.gmra.mrb[0].mxu0 %v1120_v59  ;;  %v769_v2 = vpop.permute.xlu0 %768  ;;  %786 = vrot.lane.b32.xlu1 %v552_v53, %s5069_s14  ;;  %v564_v46 = vsel %vm408_vm1, %v559_v34, %v563_v36  ;;  %v5563_v36 = vld [vmem:[%s5188_s28 + $0xbc] ss:$0 sps:$4 sm:$0x11]  }
  0xb4   : > { %v1023_v8 = vsel %vm1019_vm5, %v990_v1, %v769_v2  ;;  %4162 = vmatprep.mubr.msk.bf16.mxu0 %vm920_vm2, %v5295_v3  ;;  %v687_v0 = vpop.permute.xlu1 %686  ;;  %v667_v3 = vrot.slane %v5417_v15, 1 }
  0xb5   : > { %856 = vrot.lane.b32.xlu0 %v5417_v15, %s5066_s9  ;;  %v1056_v12 = vsel %vm1052_vm6, %v1023_v8, %v804_v5  ;;  %v575_v5 = vrot.slane %v573_v45, 1  ;;  %v590_v45 = vshrl.u32 %v5550_v22, 16 }
  0xb6   : > { %v5499_v32 = vsel %vm633_vm0, %v667_v3, %v668_v21  ;;  %v673_v21 = vrot.slane %v5482_v19, 1 }
  0xb7   : > { %v841_v13 = vpop.permute.xlu0 %840  ;;  %858 = vrot.lane.b32.xlu1 %v5463_v63, %s5066_s9  ;;  %v576_v59 = vsel %vm408_vm1, %v571_v54, %v575_v5 }
  0xb8   : > { %v1089_v16 = vsel %vm1085_vm7, %v1056_v12, %v841_v13  ;;  %v771_v20 = vpop.permute.xlu1 %770  ;;  %v4928_v12 = vld [vmem:[%s5188_s28 + $0xb0] ss:$0 sps:$4 sm:$0x11]  }
  0xb9   : > { %621 = vrot.lane.b32.xlu0 %v540_v39, %s5070_s15  ;;  %v1123_v17 = vsel %vm1118_vm8, %v1089_v16, %v888_v62  ;;  %v671_v39 = vrot.slane %v4924_v10, 1  ;;  %v585_v23 = vshll.u32 %v4928_v12, 16  ;;  %v677_v44 = vrot.slane %v4928_v12, 1 }
  0xbb   : > { %1335 = vmatmul.mubr.bf16.gmra.mrb[4].mxu0 %v1123_v17  ;;  %v606_v29 = vpop.permute.xlu0 %605  ;;  %623 = vrot.lane.b32.xlu1 %v552_v53, %s5070_s15 }
  0xbc   : > { %v926_v30 = vsel %vm920_vm2, %v5204_v7, %v606_v29  ;;  %4163 = vmatprep.mubr.msk.bf16.mxu0 %vm920_vm2, %v5307_v14  ;;  %v843_v33 = vpop.permute.xlu1 %842  ;;  %v670_v14 = vrot.slane %v5463_v63, 1 }
  0xbd   : > { %739 = vrot.lane.b32.xlu0 %v5417_v15, %s5065_s6  ;;  %v959_v7 = vsel %vm953_vm3, %v926_v30, %v687_v0 }
  0xbe   : > { %v5516_v53 = vsel %vm633_vm0, %v670_v14, %v671_v39  ;;  %v587_v14 = vrot.slane %v585_v23, 1  ;;  %v680_v23 = vrot.slane %v5563_v36, 1 }
  0xbf   : > { %v724_v37 = vpop.permute.xlu0 %723  ;;  %741 = vrot.lane.b32.xlu1 %v5463_v63, %s5065_s6 }
  0xc0   : > { %v992_v38 = vsel %vm986_vm4, %v959_v7, %v724_v37  ;;  %v608_v47 = vpop.permute.xlu1 %607  ;;  %v5567_v7 = vsel %vm633_vm0, %v673_v21, %v674_v26  ;;  %v679_v26 = vrot.slane %v5550_v22, 1 }
  0xc1   : > { %821 = vrot.lane.b32.xlu0 %v5499_v32, %s5068_s13  ;;  %v1025_v48 = vsel %vm1019_vm5, %v992_v38, %v771_v20  ;;  %v928_v58 = vsel %vm920_vm2, %v5225_v27, %v608_v47  ;;  %v5533_v27 = vld [vmem:[%s5188_s28 + $0xa8] sm:$0xff]   ;;  %v597_v47 = vshll.u32 %v5563_v36, 16 }
  0xc2   : > { %v580_v13 = vshll.u32 %v5533_v27, 16  ;;  %v578_v29 = vshrl.u32 %v5533_v27, 16  ;;  %v676_v41 = vrot.slane %v5533_v27, 1  ;;  %v5630_v36 = vsel %vm633_vm0, %v679_v26, %v680_v23  ;;  %v4944_v23 = vld [vmem:[%s6874_s3 + $0x58] sm:$0xff]  }
  0xc3   : > { %v806_v50 = vpop.permute.xlu0 %805  ;;  %823 = vrot.lane.b32.xlu1 %v5516_v53, %s5068_s13 }
  0xc4   : > { %v1058_v51 = vsel %vm1052_vm6, %v1025_v48, %v806_v50  ;;  %v726_v55 = vpop.permute.xlu1 %725  ;;  %v582_v30 = vrot.slane %v580_v13, 1 }
  0xc5   : > { %905 = vrot.lane.b32.xlu0 %v564_v46, %s5071_s16  ;;  %v1091_v56 = vsel %vm1085_vm7, %v1058_v51, %v843_v33 }
  0xc6   : > { %v583_v38 = vor.u32 %v582_v30, %v578_v29  ;;  %v5615_v29 = vld [vmem:[%s5188_s28 + $0xcc] sm:$0xff]  }
  0xc7   : > { %v890_v57 = vpop.permute.xlu0 %889  ;;  %907 = vrot.lane.b32.xlu1 %v576_v59, %s5071_s16 }
  0xc8   : > { %v1126_v4 = vsel %vm1118_vm8, %v1091_v56, %v890_v57  ;;  %v808_v62 = vpop.permute.xlu1 %807  ;;  %v588_v48 = vsel %vm408_vm1, %v583_v38, %v587_v14  ;;  %v599_v57 = vrot.slane %v597_v47, 1  ;;  %v5626_v14 = vld [vmem:[%s5188_s28 + $0xd4] ss:$0 sps:$4 sm:$0x11]   ;;  %v874_v47 = vshrl.u32 %v5615_v29, 16 }
  0xc9   : > { %704 = vrot.lane.b32.xlu0 %v5499_v32, %s5067_s10  ;;  %1343 = vmatmul.mubr.bf16.gmra.mrb[8].mxu0 %v1126_v4 }
  0xca   : > { %4164 = vmatprep.mubr.msk.bf16.mxu0 %vm920_vm2, %v5341_v35 }
  0xcb   : > { %v689_v1 = vpop.permute.xlu0 %688  ;;  %706 = vrot.lane.b32.xlu1 %v5516_v53, %s5067_s10 }
  0xcc   : > { %v961_v2 = vsel %vm953_vm3, %v928_v58, %v689_v1  ;;  %v892_v8 = vpop.permute.xlu1 %891 }
  0xcd   : > { %788 = vrot.lane.b32.xlu0 %v564_v46, %s5069_s14  ;;  %v994_v0 = vsel %vm986_vm4, %v961_v2, %v726_v55  ;;  %v5584_v55 = vsel %vm633_vm0, %v676_v41, %v677_v44 }
  0xcf   : > { %v773_v10 = vpop.permute.xlu0 %772  ;;  %790 = vrot.lane.b32.xlu1 %v576_v59, %s5069_s14 }
  0xd0   : > { %v1027_v11 = vsel %vm1019_vm5, %v994_v0, %v773_v10  ;;  %v691_v35 = vpop.permute.xlu1 %690 }
  0xd1   : > { %860 = vrot.lane.b32.xlu0 %v5482_v19, %s5066_s9  ;;  %v1060_v16 = vsel %vm1052_vm6, %v1027_v11, %v808_v62 }
  0xd3   : > { %v845_v17 = vpop.permute.xlu0 %844  ;;  %862 = vrot.lane.b32.xlu1 %v5533_v27, %s5066_s9 }
  0xd4   : > { %v1093_v3 = vsel %vm1085_vm7, %v1060_v16, %v845_v17  ;;  %v775_v25 = vpop.permute.xlu1 %774  ;;  %v4932_v16 = vld [vmem:[%s5188_s28 + $0xc8] ss:$0 sps:$4 sm:$0x11]  }
  0xd5   : > { %625 = vrot.lane.b32.xlu0 %v564_v46, %s5070_s15  ;;  %v1129_v20 = vsel %vm1118_vm8, %v1093_v3, %v892_v8  ;;  %v594_v46 = vrot.slane %v592_v31, 1  ;;  %v762_v31 = vshll.u32 %v4932_v16, 16 }
  0xd6   : > { %1351 = vmatmul.mubr.bf16.gmra.mrb[12].mxu0 %v1129_v20 }
  0xd7   : > { %v610_v33 = vpop.permute.xlu0 %609  ;;  %4165 = vmatprep.mubr.msk.bf16.mxu0 %vm920_vm2, %v5351_v40  ;;  %627 = vrot.lane.b32.xlu1 %v576_v59, %s5070_s15  ;;  %v595_v56 = vor.u32 %v594_v46, %v590_v45  ;;  %v764_v41 = vrot.slane %v762_v31, 1  ;;  %v799_v46 = vrot.slane %v4932_v16, 1  ;;  %v4946_v31 = vld [vmem:[%s6874_s3 + $0x18] sm:$0xff]  }
  0xd8   : > { %v930_v34 = vsel %vm920_vm2, %v5260_v52, %v610_v33  ;;  %v847_v37 = vpop.permute.xlu1 %846 }
  0xd9   : > { %743 = vrot.lane.b32.xlu0 %v5482_v19, %s5065_s6  ;;  %v963_v40 = vsel %vm953_vm3, %v930_v34, %v691_v35  ;;  %v600_v2 = vsel %vm408_vm1, %v595_v56, %v599_v57 }
  0xdb   : > { %v728_v39 = vpop.permute.xlu0 %727  ;;  %745 = vrot.lane.b32.xlu1 %v5533_v27, %s5065_s6 }
  0xdc   : > { %v996_v52 = vsel %vm986_vm4, %v963_v40, %v728_v39  ;;  %v612_v50 = vpop.permute.xlu1 %611  ;;  %v876_v40 = vshll.u32 %v5615_v29, 16 }
  0xdd   : > { %825 = vrot.lane.b32.xlu0 %v5567_v7, %s5068_s13  ;;  %v1029_v51 = vsel %vm1019_vm5, %v996_v52, %v775_v25  ;;  %v932_v1 = vsel %vm920_vm2, %v5282_v60, %v612_v50  ;;  %v4931_v60 = vld [vmem:[%s5188_s28 + $0xc0] sm:$0xff]   ;;  %v881_v50 = vshll.u32 %v5626_v14, 16 }
  0xde   : > { %v757_v17 = vshll.u32 %v4931_v60, 16  ;;  %v755_v33 = vshrl.u32 %v4931_v60, 16  ;;  %v798_v45 = vrot.slane %v4931_v60, 1 }
  0xdf   : > { %v810_v54 = vpop.permute.xlu0 %809  ;;  %827 = vrot.lane.b32.xlu1 %v5584_v55, %s5068_s13 }
  0xe0   : > { %v1062_v5 = vsel %vm1052_vm6, %v1029_v51, %v810_v54  ;;  %v730_v4 = vpop.permute.xlu1 %729  ;;  %v759_v34 = vrot.slane %v757_v17, 1  ;;  %v4940_v17 = vld [vmem:[%s6874_s3 + $0x50] sm:$0xff]  }
  0xe1   : > { %909 = vrot.lane.b32.xlu0 %v588_v48, %s5071_s16  ;;  %v1095_v58 = vsel %vm1085_vm7, %v1062_v5, %v847_v37 }
  0xe2   : > { %v760_v52 = vor.u32 %v759_v34, %v755_v33  ;;  %v4945_v33 = vld [vmem:[%s6874_s3 + $0x108] sm:$0xff]  }
  0xe3   : > { %v894_v59 = vpop.permute.xlu0 %893  ;;  %911 = vrot.lane.b32.xlu1 %v600_v2, %s5071_s16 }
  0xe4   : > { %v1132_v62 = vsel %vm1118_vm8, %v1095_v58, %v894_v59  ;;  %v812_v8 = vpop.permute.xlu1 %811  ;;  %v765_v51 = vsel %vm408_vm1, %v760_v52, %v764_v41  ;;  %v883_v59 = vrot.slane %v881_v50, 1  ;;  %v4952_v50 = vld [vmem:[%s6874_s3 + $0x68] sm:$0xff]  }
  0xe5   : > { %708 = vrot.lane.b32.xlu0 %v5567_v7, %s5067_s10  ;;  %1359 = vmatmul.mubr.bf16.gmra.mrb[16].mxu0 %v1132_v62  ;;  %v4935_v62 = vld [vmem:[%s6874_s3 + $0x40] sm:$0xff]  }
  0xe6   : > { %4166 = vmatprep.mubr.msk.bf16.mxu0 %vm920_vm2, %v5385_v61  ;;  %4353 = vmatprep.subr.bf16.mxu1 %v4935_v62  ;;  %v4963_v62 = vld [vmem:[#allocation2] sm:$0xff]  }
  0xe7   : > { %v693_v0 = vpop.permute.xlu0 %692  ;;  %710 = vrot.lane.b32.xlu1 %v5584_v55, %s5067_s10 }
  0xe8   : > { %v965_v10 = vsel %vm953_vm3, %v932_v1, %v693_v0  ;;  %v896_v11 = vpop.permute.xlu1 %895 }
  0xe9   : > { %792 = vrot.lane.b32.xlu0 %v588_v48, %s5069_s14  ;;  %v998_v35 = vsel %vm986_vm4, %v965_v10, %v730_v4  ;;  %v5645_v4 = vsel %vm633_vm0, %v798_v45, %v799_v46  ;;  %v4950_v45 = vld [vmem:[%s6874_s3 + $0x20] sm:$0xff]  }
  0xeb   : > { %v777_v12 = vpop.permute.xlu0 %776  ;;  %794 = vrot.lane.b32.xlu1 %v600_v2, %s5069_s14 }
  0xec   : > { %v1031_v13 = vsel %vm1019_vm5, %v998_v35, %v777_v12  ;;  %v695_v61 = vpop.permute.xlu1 %694 }
  0xed   : > { %864 = vrot.lane.b32.xlu0 %v5550_v22, %s5066_s9  ;;  %v1064_v3 = vsel %vm1052_vm6, %v1031_v13, %v812_v8  ;;  %v4937_v8 = vld [vmem:[%s6874_s3 + $0x48] sm:$0xff]  }
  0xef   : > { %v849_v20 = vpop.permute.xlu0 %848  ;;  %866 = vrot.lane.b32.xlu1 %v4931_v60, %s5066_s9 }
  0xf0   : > { %v1097_v21 = vsel %vm1085_vm7, %v1064_v3, %v849_v20  ;;  %v779_v30 = vpop.permute.xlu1 %778  ;;  %v4942_v20 = vld [vmem:[%s6874_s3 + $0x10] sm:$0xff]  }
  0xf1   : > { %629 = vrot.lane.b32.xlu0 %v588_v48, %s5070_s15  ;;  %v1135_v25 = vsel %vm1118_vm8, %v1097_v21, %v896_v11  ;;  %v878_v48 = vrot.slane %v876_v40, 1 }
  0xf2   : > { %1367 = vmatmul.mubr.bf16.gmra.mrb[20].mxu0 %v1135_v25 }
  0xf3   : > { %v614_v37 = vpop.permute.xlu0 %613  ;;  %4167 = vmatprep.mubr.msk.bf16.mxu0 %vm920_vm2, %v5395_v6  ;;  %631 = vrot.lane.b32.xlu1 %v600_v2, %s5070_s15  ;;  %v879_v58 = vor.u32 %v878_v48, %v874_v47  ;;  %v4936_v2 = vld [vmem:[%s6874_s3] sm:$0xff]   ;;  %v4951_v47 = vld [vmem:[%s6874_s3 + $0x158] sm:$0xff]  }
  0xf4   : > { %v934_v38 = vsel %vm920_vm2, %v5315_v18, %v614_v37  ;;  %v851_v39 = vpop.permute.xlu1 %850  ;;  %4354 = vmatpush3.bf16.msra.mxu1 %v4936_v2 }
  0xf5   : > { %747 = vrot.lane.b32.xlu0 %v5550_v22, %s5065_s6  ;;  %v967_v6 = vsel %vm953_vm3, %v934_v38, %v695_v61  ;;  %v884_v12 = vsel %vm408_vm1, %v879_v58, %v883_v59  ;;  %4355 = vmatprep.subr.bf16.mxu1 %v4937_v8  ;;  %v4956_v58 = vld [vmem:[%s6874_s3 + $0x70] sm:$0xff]   ;;  %v4957_v59 = vld [vmem:[%s6874_s3 + $0x120] sm:$0xff]  }
  0xf6   : > { %v4958_v8 = vld [vmem:[%s6874_s3 + $0x30] sm:$0xff]  }
  0xf7   : > { %v732_v44 = vpop.permute.xlu0 %731  ;;  %749 = vrot.lane.b32.xlu1 %v4931_v60, %s5065_s6  ;;  %v4938_v60 = vld [vmem:[%s6874_s3 + $0x8] sm:$0xff]  }
  0xf8   : > { %v1000_v18 = vsel %vm986_vm4, %v967_v6, %v732_v44  ;;  %v616_v54 = vpop.permute.xlu1 %615  ;;  %4356 = vmatpush3.bf16.msra.mxu1 %v4938_v60  ;;  %v4948_v6 = vld [vmem:[%s6874_s3 + $0x60] sm:$0xff]   ;;  %v4949_v44 = vld [vmem:[%s6874_s3 + $0x110] sm:$0xff]   ;;  %v4959_v60 = vld [vmem:[%s6874_s3 + $0x168] sm:$0xff]  }
  0xf9   : > { %829 = vrot.lane.b32.xlu0 %v5630_v36, %s5068_s13  ;;  %v1033_v5 = vsel %vm1019_vm5, %v1000_v18, %v779_v30  ;;  %v936_v35 = vsel %vm920_vm2, %v5328_v24, %v616_v54  ;;  %v4939_v24 = vld [vmem:[%s6874_s3 + $0x140] sm:$0xff]   ;;  %4357 = vmatprep.subr.bf16.mxu1 %v4940_v17  ;;  %v4943_v30 = vld [vmem:[%s6874_s3 + $0x148] sm:$0xff]  }
  0xfa   : > { %4577 = vmatprep.subr.bf16.mxu0 %v4939_v24 }
  0xfb   : > { %v814_v56 = vpop.permute.xlu0 %813  ;;  %831 = vrot.lane.b32.xlu1 %v5645_v4, %s5068_s13 }
  0xfc   : > { %v1066_v57 = vsel %vm1052_vm6, %v1033_v5, %v814_v56  ;;  %v734_v1 = vpop.permute.xlu1 %733  ;;  %4358 = vmatpush3.bf16.msra.mxu1 %v4942_v20  ;;  %v4955_v56 = vld [vmem:[%s6874_s3 + $0x160] sm:$0xff]  }
  0xfd   : > { %913 = vrot.lane.b32.xlu0 %v765_v51, %s5071_s16  ;;  %v1099_v0 = vsel %vm1085_vm7, %v1066_v57, %v851_v39  ;;  %4359 = vmatprep.subr.bf16.mxu1 %v4944_v23  ;;  %v4947_v39 = vld [vmem:[%s6874_s3 + $0x150] sm:$0xff]  }
  0xff   : > { %v898_v10 = vpop.permute.xlu0 %897  ;;  %915 = vrot.lane.b32.xlu1 %v884_v12, %s5071_s16  ;;  %v4960_v12 = vld [vmem:[%s6874_s3 + $0x78] sm:$0xff]  }
 0x100   : > { %v1138_v11 = vsel %vm1118_vm8, %v1099_v0, %v898_v10  ;;  %v816_v13 = vpop.permute.xlu1 %815  ;;  %4360 = vmatpush3.bf16.msra.mxu1 %v4946_v31  ;;  %v4964_v10 = vld [vmem:[#allocation2 + $0x8] ss:$0 sps:$4 sm:$0x11]  }
 0x101   : > { %712 = vrot.lane.b32.xlu0 %v5630_v36, %s5067_s10  ;;  %1375 = vmatmul.mubr.bf16.gmra.mrb[24].mxu0 %v1138_v11  ;;  %v2279_v11 = vshll.u32 %v4963_v62, 16  ;;  %v2284_v24 = vshll.u32 %v4964_v10, 16 }
 0x102   : > { %4168 = vmatprep.mubr.msk.bf16.mxu0 %vm920_vm2, %v5429_v28  ;;  %v4941_v28 = vld [vmem:[%s6874_s3 + $0x100] sm:$0xff]   ;;  %4361 = vmatprep.subr.bf16.mxu1 %v4948_v6 }
 0x103   : > { %v697_v61 = vpop.permute.xlu0 %696  ;;  %4578 = vmatpush3.bf16.msra.mxu0 %v4941_v28 }
 0x104   : > { %v969_v16 = vsel %vm953_vm3, %v936_v35, %v697_v61  ;;  %v900_v3 = vpop.permute.xlu1 %899  ;;  %4579 = vmatprep.subr.bf16.mxu0 %v4943_v30  ;;  %4362 = vmatpush3.bf16.msra.mxu1 %v4950_v45  ;;  %v2277_v61 = vshrl.u32 %v4963_v62, 16  ;;  %v4965_v30 = vld [vmem:[%s6874_s3 + $0x170] sm:$0xff]  }
 0x105   : > { %796 = vrot.lane.b32.xlu0 %v765_v51, %s5069_s14  ;;  %v1002_v21 = vsel %vm986_vm4, %v969_v16, %v734_v1  ;;  %4363 = vmatprep.subr.bf16.mxu1 %v4952_v50  ;;  %v2281_v16 = vrot.slane %v2279_v11, 1 }
 0x107   : > { %v781_v25 = vpop.permute.xlu0 %780  ;;  %4580 = vmatpush3.bf16.msra.mxu0 %v4945_v33 }
 0x108   : > { %v1035_v26 = vsel %vm1019_vm5, %v1002_v21, %v781_v25  ;;  %v699_v34 = vpop.permute.xlu1 %698  ;;  %4581 = vmatprep.subr.bf16.mxu0 %v4947_v39  ;;  %v2282_v21 = vor.u32 %v2281_v16, %v2277_v61  ;;  %v2286_v25 = vrot.slane %v2284_v24, 1 }
 0x109   : > { %868 = vrot.lane.b32.xlu0 %v5615_v29, %s5066_s9  ;;  %v1068_v37 = vsel %vm1052_vm6, %v1035_v26, %v816_v13  ;;  %v4961_v13 = vld [vmem:[%s6874_s3 + $0x128] sm:$0xff]  }
 0x10a   : > { %v2287_v33 = vsel %vm408_vm1, %v2282_v21, %v2286_v25 }
 0x10b   : > { %v853_v38 = vpop.permute.xlu0 %852  ;;  %4582 = vmatpush3.bf16.msra.mxu0 %v4949_v44  ;;  %3215 = vmatprep.mubr.bf16.mxu1 %v2287_v33 }
 0x10c   : > { %v1101_v40 = vsel %vm1085_vm7, %v1068_v37, %v853_v38  ;;  %v783_v41 = vpop.permute.xlu1 %782  ;;  %4583 = vmatprep.subr.bf16.mxu0 %v4951_v47  ;;  %v4967_v37 = vld [vmem:[%s6874_s3 + $0x178] sm:$0xff]  }
 0x10d   : > { %v1141_v52 = vsel %vm1118_vm8, %v1101_v40, %v900_v3  ;;  %v4962_v3 = vld [vmem:[%s6874_s3 + $0x38] sm:$0xff]  }
 0x10e   : > { %1383 = vmatmul.mubr.bf16.gmra.mrb[28].mxu0 %v1141_v52 }
 0x10f   : > { %v618_v18 = vpop.permute.xlu0 %617  ;;  %4169 = vmatprep.mubr.msk.bf16.mxu0 %vm920_vm2, %v5442_v42  ;;  %v4953_v42 = vld [vmem:[%s6874_s3 + $0x118] sm:$0xff]  }
 0x110   : > { %v938_v46 = vsel %vm920_vm2, %v5359_v43, %v618_v18  ;;  %v855_v48 = vpop.permute.xlu1 %854  ;;  %v4954_v43 = vld [vmem:[%s6874_s3 + $0x28] sm:$0xff]   ;;  %4584 = vmatpush3.bf16.msra.mxu0 %v4953_v42 }
 0x111   : > { %v971_v51 = vsel %vm953_vm3, %v938_v46, %v699_v34  ;;  %4364 = vmatpush3.bf16.msra.mxu1 %v4954_v43  ;;  %4585 = vmatprep.subr.bf16.mxu0 %v4955_v56  ;;  %v4966_v34 = vld [vmem:[%s6874_s3 + $0x130] sm:$0xff]  }
 0x112   : > { %4365 = vmatprep.subr.bf16.mxu1 %v4956_v58 }
 0x113   : > { %v736_v54 = vpop.permute.xlu0 %735 }
 0x114   : > { %v1004_v5 = vsel %vm986_vm4, %v971_v51, %v736_v54  ;;  %v620_v57 = vpop.permute.xlu1 %619  ;;  %4586 = vmatpush3.bf16.msra.mxu0 %v4957_v59 }
 0x115   : > { %v1037_v1 = vsel %vm1019_vm5, %v1004_v5, %v783_v41  ;;  %4366 = vmatpush3.bf16.msra.mxu1 %v4958_v8  ;;  %4587 = vmatprep.subr.bf16.mxu0 %v4959_v60  ;;  %v940_v26 = vsel %vm920_vm2, %v5372_v49, %v620_v57 }
 0x116   : > { %4367 = vmatprep.subr.bf16.mxu1 %v4960_v12 }
 0x117   : > { %v818_v2 = vpop.permute.xlu0 %817 }
 0x118   : > { %v1070_v0 = vsel %vm1052_vm6, %v1037_v1, %v818_v2  ;;  %v738_v35 = vpop.permute.xlu1 %737  ;;  %4588 = vmatpush3.bf16.msra.mxu0 %v4961_v13 }
 0x119   : > { %v1103_v17 = vsel %vm1085_vm7, %v1070_v0, %v855_v48  ;;  %4368 = vmatpush3.bf16.msra.mxu1 %v4962_v3  ;;  %4589 = vmatprep.subr.bf16.mxu0 %v4965_v30 }
 0x11b   : > { %v902_v28 = vpop.permute.xlu0 %901 }
 0x11c   : > { %v1144_v20 = vsel %vm1118_vm8, %v1103_v17, %v902_v28  ;;  %v820_v23 = vpop.permute.xlu1 %819  ;;  %3216 = vmatmul.mubr.bf16.vlgmr.msra.gmra.mrb[0].mxu1 %v4963_v62  ;;  %4590 = vmatpush3.bf16.msra.mxu0 %v4966_v34 }
 0x11d   : > { %1391 = vmatmul.mubr.bf16.gmra.mrb[32].mxu0 %v1144_v20  ;;  %4591 = vmatprep.subr.bf16.mxu0 %v4967_v37 }
 0x11e   : > { %4170 = vmatprep.mubr.msk.bf16.mxu0 %vm920_vm2, %v5499_v32  ;;  %v4970_v32 = vld [vmem:[%s6874_s3 + $0x138] sm:$0xff]  }
 0x11f   : > { %v701_v31 = vpop.permute.xlu0 %700 }
 0x120   : > { %v973_v49 = vsel %vm953_vm3, %v940_v26, %v701_v31  ;;  %v904_v38 = vpop.permute.xlu1 %903  ;;  %4592 = vmatpush3.bf16.msra.mxu0 %v4970_v32 }
 0x121   : > { %v1006_v40 = vsel %vm986_vm4, %v973_v49, %v738_v35 }
 0x123   : > { %v785_v39 = vpop.permute.xlu0 %784 }
 0x124   : > { %v1039_v52 = vsel %vm1019_vm5, %v1006_v40, %v785_v39  ;;  %v703_v41 = vpop.permute.xlu1 %702 }
 0x125   : > { %v1072_v6 = vsel %vm1052_vm6, %v1039_v52, %v820_v23 }
 0x127   : > { %v857_v44 = vpop.permute.xlu0 %856 }
 0x128   : > { %v1105_v18 = vsel %vm1085_vm7, %v1072_v6, %v857_v44  ;;  %v787_v46 = vpop.permute.xlu1 %786 }
 0x129   : > { %v1147_v45 = vsel %vm1118_vm8, %v1105_v18, %v904_v38 }
 0x12a   : > { %1399 = vmatmul.mubr.bf16.gmra.mrb[36].mxu0 %v1147_v45 }
 0x12b   : > { %v622_v47 = vpop.permute.xlu0 %621  ;;  %4171 = vmatprep.mubr.msk.bf16.mxu0 %vm920_vm2, %v5516_v53 }
 0x12c   : > { %v942_v48 = vsel %vm920_vm2, %v5405_v9, %v622_v47  ;;  %v859_v50 = vpop.permute.xlu1 %858 }
 0x12d   : > { %v975_v42 = vsel %vm953_vm3, %v942_v48, %v703_v41 }
 0x12f   : > { %v740_v51 = vpop.permute.xlu0 %739 }
 0x130   : > { %v1008_v54 = vsel %vm986_vm4, %v975_v42, %v740_v51  ;;  %v624_v43 = vpop.permute.xlu1 %623 }
 0x131   : > { %v1041_v5 = vsel %vm1019_vm5, %v1008_v54, %v787_v46  ;;  %v944_v9 = vsel %vm920_vm2, %v5417_v15, %v624_v43  ;;  %v917_v43 = vrot.slane %v5615_v29, 1  ;;  %v4981_v29 = vld [vmem:[%s6874_s3 + $0xc0] sm:$0xff]  }
 0x132   : > { %4465 = vmatprep.subr.bf16.mxu1 %v4981_v29  ;;  %v1977_v29 = vld [vmem:[#allocation2 + $0x20] sm:$0x1] }
 0x133   : > { %v822_v56 = vpop.permute.xlu0 %821 }
 0x134   : > { %v1074_v57 = vsel %vm1052_vm6, %v1041_v5, %v822_v56  ;;  %v742_v58 = vpop.permute.xlu1 %741  ;;  %v918_v5 = vrot.slane %v5626_v14, 1  ;;  %v4982_v14 = vld [vmem:[%s6874_s3 + $0x80] sm:$0xff]  }
 0x135   : > { %v1107_v59 = vsel %vm1085_vm7, %v1074_v57, %v859_v50  ;;  %4466 = vmatpush3.bf16.msra.mxu1 %v4982_v14 }
 0x137   : > { %v906_v62 = vpop.permute.xlu0 %905 }
 0x138   : > { %v1150_v53 = vsel %vm1118_vm8, %v1107_v59, %v906_v62  ;;  %v824_v1 = vpop.permute.xlu1 %823 }
 0x139   : > { %1407 = vmatmul.mubr.bf16.gmra.mrb[40].mxu0 %v1150_v53 }
 0x13a   : > { %4172 = vmatprep.mubr.msk.bf16.mxu0 %vm920_vm2, %v5567_v7 }
 0x13b   : > { %v705_v2 = vpop.permute.xlu0 %704 }
 0x13c   : > { %v977_v8 = vsel %vm953_vm3, %v944_v9, %v705_v2  ;;  %v908_v0 = vpop.permute.xlu1 %907 }
 0x13d   : > { %v1010_v10 = vsel %vm986_vm4, %v977_v8, %v742_v58  ;;  %v919_v58 = vsel %vm633_vm0, %v917_v43, %v918_v5 }
 0x13f   : > { %v789_v11 = vpop.permute.xlu0 %788 }
 0x140   : > { %v1043_v60 = vsel %vm1019_vm5, %v1010_v10, %v789_v11  ;;  %v707_v35 = vpop.permute.xlu1 %706 }
 0x141   : > { %v1076_v12 = vsel %vm1052_vm6, %v1043_v60, %v824_v1 }
 0x143   : > { %v861_v13 = vpop.permute.xlu0 %860 }
 0x144   : > { %v1109_v15 = vsel %vm1085_vm7, %v1076_v12, %v861_v13  ;;  %v791_v16 = vpop.permute.xlu1 %790  ;;  %v5856_v12 = vld [vmem:[%s6873_s2] ss:$0 sm:$0xff] }
 0x145   : > { %v1153_v61 = vsel %vm1118_vm8, %v1109_v15, %v908_v0 }
 0x146   : > { %1415 = vmatmul.mubr.bf16.gmra.mrb[44].mxu0 %v1153_v61 }
 0x147   : > { %v626_v7 = vpop.permute.xlu0 %625  ;;  %4173 = vmatprep.mubr.msk.bf16.mxu0 %vm920_vm2, %v5584_v55 }
 0x148   : > { %v946_v24 = vsel %vm920_vm2, %v5463_v63, %v626_v7  ;;  %v863_v17 = vpop.permute.xlu1 %862 }
 0x149   : > { %v979_v28 = vsel %vm953_vm3, %v946_v24, %v707_v35 }
 0x14b   : > { %v744_v3 = vpop.permute.xlu0 %743 }
 0x14c   : > { %v1012_v20 = vsel %vm986_vm4, %v979_v28, %v744_v3  ;;  %v628_v21 = vpop.permute.xlu1 %627 }
 0x14d   : > { %v1045_v25 = vsel %vm1019_vm5, %v1012_v20, %v791_v16  ;;  %v948_v63 = vsel %vm920_vm2, %v5482_v19, %v628_v21  ;;  %v4985_v20 = vld [vmem:[%s6874_s3 + $0xc8] sm:$0xff]  }
 0x14e   : > { %v4986_v21 = vld [vmem:[%s6874_s3 + $0x88] sm:$0xff]   ;;  %4467 = vmatprep.subr.bf16.mxu1 %v4985_v20 }
 0x14f   : > { %v826_v26 = vpop.permute.xlu0 %825  ;;  %4468 = vmatpush3.bf16.msra.mxu1 %v4986_v21 }
 0x150   : > { %v1078_v30 = vsel %vm1052_vm6, %v1045_v25, %v826_v26  ;;  %v746_v23 = vpop.permute.xlu1 %745 }
 0x151   : > { %v1111_v33 = vsel %vm1085_vm7, %v1078_v30, %v863_v17 }
 0x153   : > { %v910_v34 = vpop.permute.xlu0 %909 }
 0x154   : > { %v1156_v55 = vsel %vm1118_vm8, %v1111_v33, %v910_v34  ;;  %v828_v31 = vpop.permute.xlu1 %827 }
 0x155   : > { %1423 = vmatmul.mubr.bf16.gmra.mrb[48].mxu0 %v1156_v55 }
 0x156   : > { %4174 = vmatprep.mubr.msk.bf16.mxu0 %vm920_vm2, %v5630_v36 }
 0x157   : > { %v709_v49 = vpop.permute.xlu0 %708 }
 0x158   : > { %v981_v37 = vsel %vm953_vm3, %v948_v63, %v709_v49  ;;  %v912_v38 = vpop.permute.xlu1 %911  ;;  %v1964_v49 = vld [vmem:[#allocation2 + $0xc] sm:$0xf] }
 0x159   : > { %v1014_v32 = vsel %vm986_vm4, %v981_v37, %v746_v23 }
 0x15b   : > { %v793_v40 = vpop.permute.xlu0 %792 }
 0x15c   : > { %v1047_v39 = vsel %vm1019_vm5, %v1014_v32, %v793_v40  ;;  %v711_v52 = vpop.permute.xlu1 %710  ;;  %v5044_v32 = vld [vmem:[#allocation2 + $0x8] ss:$0 sps:$4 sm:$0x11]  }
 0x15d   : > { %v1080_v41 = vsel %vm1052_vm6, %v1047_v39, %v828_v31 }
 0x15f   : > { %v865_v6 = vpop.permute.xlu0 %864 }
 0x160   : > { %v1113_v19 = vsel %vm1085_vm7, %v1080_v41, %v865_v6  ;;  %v795_v18 = vpop.permute.xlu1 %794 }
 0x161   : > { %v1159_v44 = vsel %vm1118_vm8, %v1113_v19, %v912_v38  ;;  %v2485_v19 = vrot.slane %v5044_v32, 1 }
 0x162   : > { %1431 = vmatmul.mubr.bf16.gmra.mrb[52].mxu0 %v1159_v44  ;;  %v1970_v44 = vld [vmem:[#allocation2 + $0x14] sm:$0x1] }
 0x163   : > { %v630_v36 = vpop.permute.xlu0 %629  ;;  %4175 = vmatprep.mubr.msk.bf16.mxu0 %vm920_vm2, %v5645_v4 }
 0x164   : > { %v950_v45 = vsel %vm920_vm2, %v5533_v27, %v630_v36  ;;  %v867_v46 = vpop.permute.xlu1 %866 }
 0x165   : > { %v983_v47 = vsel %vm953_vm3, %v950_v45, %v711_v52 }
 0x167   : > { %v748_v48 = vpop.permute.xlu0 %747 }
 0x168   : > { %v1016_v50 = vsel %vm986_vm4, %v983_v47, %v748_v48  ;;  %v632_v42 = vpop.permute.xlu1 %631 }
 0x169   : > { %v1049_v51 = vsel %vm1019_vm5, %v1016_v50, %v795_v18  ;;  %v952_v62 = vsel %vm920_vm2, %v5550_v22, %v632_v42 }
 0x16b   : > { %v830_v54 = vpop.permute.xlu0 %829 }
 0x16c   : > { %v1082_v56 = vsel %vm1052_vm6, %v1049_v51, %v830_v54  ;;  %v750_v4 = vpop.permute.xlu1 %749 }
 0x16d   : > { %v1115_v57 = vsel %vm1085_vm7, %v1082_v56, %v867_v46  ;;  %v1973_v56 = vld [vmem:[#allocation2 + $0x18] sm:$0xf] }
 0x16f   : > { %v914_v27 = vpop.permute.xlu0 %913 }
 0x170   : > { %v1162_v59 = vsel %vm1118_vm8, %v1115_v57, %v914_v27  ;;  %v832_v1 = vpop.permute.xlu1 %831 }
 0x171   : > { %1439 = vmatmul.mubr.bf16.gmra.mrb[56].mxu0 %v1162_v59  ;;  %v4989_v59 = vld [vmem:[%s6874_s3 + $0xd0] sm:$0xff]  }
 0x172   : > { %4176 = vmatprep.mubr.msk.bf16.mxu0 %vm920_vm2, %v919_v58  ;;  %vm5878_vm2 = vmand %vm1968_vm13, %vm1637_vm11  ;;  %4469 = vmatprep.subr.bf16.mxu1 %v4989_v59 }
 0x173   : > { %v713_v53 = vpop.permute.xlu0 %712 }
 0x174   : > { %v985_v9 = vsel %vm953_vm3, %v952_v62, %v713_v53  ;;  %v916_v10 = vpop.permute.xlu1 %915 }
 0x175   : > { %v1018_v2 = vsel %vm986_vm4, %v985_v9, %v750_v4 }
 0x177   : > { %v797_v22 = vpop.permute.xlu0 %796 }
 0x178   : > { %v1051_v8 = vsel %vm1019_vm5, %v1018_v2, %v797_v22  ;;  %v4992_v2 = vld [vmem:[%s6874_s3 + $0x90] sm:$0xff]  }
 0x179   : > { %v1084_v0 = vsel %vm1052_vm6, %v1051_v8, %v832_v1  ;;  %4470 = vmatpush3.bf16.msra.mxu1 %v4992_v2 }
 0x17b   : > { %v869_v11 = vpop.permute.xlu0 %868 }
 0x17c   : > { %v1117_v60 = vsel %vm1085_vm7, %v1084_v0, %v869_v11 }
 0x17d   : > { %v1165_v35 = vsel %vm1118_vm8, %v1117_v60, %v916_v10 }
 0x17e   : > { %1447 = vmatmul.mubr.bf16.gmra.mrb[60].mxu0 %v1165_v35 }
 0x186   : > { %v1328_v13 = vpop.f32.mrb[0].mxu0 }
 0x187   : > { %v1329_v15 = vadd.f32 %v5856_v12, %v1328_v13  ;;  %v1330_v61 = vpop.f32.mrb[1].mxu0 }
 0x188   : > { %v1331_v16 = vpop.f32.mrb[2].mxu0 }
 0x189   : > { %v1455_v7 = vmax.f32 %v1329_v15, 0.0  ;;  %v1332_v24 = vadd.f32 %v5856_v12, %v1331_v16  ;;  %v1333_v17 = vpop.f32.mrb[3].mxu0 }
 0x18b   : > { %v4321_v28 = vpack.c.bf16 %v1455_v7, %v1455_v7  ;;  %v1456_v3 = vmax.f32 %v1332_v24, 0.0 }
 0x18d   : > { %v1641_v25 = vshrl.u32 %v4321_v28, 16  ;;  %v4322_v26 = vpack.c.bf16 %v1456_v3, %v1456_v3  ;;  %v1644_v33 = vshll.u32 %v4321_v28, 16 }
 0x18e   : > { %v1336_v30 = vpop.f32.mrb[4].mxu0 }
 0x18f   : > { %v1643_v23 = vrot.slane %v1641_v25, 7  ;;  %v1649_v34 = vshrl.u32 %v4322_v26, 16  ;;  %v1337_v55 = vadd.f32 %v5856_v12, %v1336_v30  ;;  %v1338_v63 = vpop.f32.mrb[5].mxu0  ;;  %v1652_v39 = vshll.u32 %v4322_v26, 16 }
 0x190   : > { %v1339_v37 = vpop.f32.mrb[6].mxu0  ;;  %v1980_v63 = vld [vmem:[#allocation2 + $0x24] sm:$0xf] }
 0x191   : > { %v1646_v38 = vor.u32 %v1644_v33, %v1643_v23  ;;  %v1651_v40 = vrot.slane %v1649_v34, 7  ;;  %v1457_v52 = vmax.f32 %v1337_v55, 0.0  ;;  %v1341_v41 = vpop.f32.mrb[7].mxu0  ;;  %v1647_v6 = vrot.slane %v1643_v23, 4 }
 0x192   : > { %v1340_v18 = vadd.f32 %v5856_v12, %v1339_v37 }
 0x193   : > { %v1965_v36 = vsel %vm5867_vm14, %v1646_v38, %v1964_v49  ;;  %v1654_v45 = vor.u32 %v1652_v39, %v1651_v40  ;;  %v1656_v46 = vrot.slane %v1651_v40, 4  ;;  %v4323_v47 = vpack.c.bf16 %v1457_v52, %v1457_v52 }
 0x194   : > { %1966 = vst [vmem:[#allocation2 + $0xc] sm:$0xf] %v1965_v36  ;;  %v1458_v48 = vmax.f32 %v1340_v18, 0.0 }
 0x195   : > { %v1655_v50 = vsel %vm5872_vm15, %v1647_v6, %v1654_v45  ;;  %v1971_v42 = vsel %vm5878_vm2, %v1656_v46, %v1970_v44  ;;  %v1658_v51 = vshrl.u32 %v4323_v47, 16  ;;  %v1661_v5 = vshll.u32 %v4323_v47, 16  ;;  %v1984_v44 = vld [vmem:[#allocation2 + $0x2c] sm:$0x1] }
 0x196   : > { %1967 = vst [vmem:[#allocation2 + $0x10] sm:$0xf] %v1655_v50  ;;  %1972 = vst [vmem:[#allocation2 + $0x14] sm:$0x1] %v1971_v42  ;;  %v4324_v54 = vpack.c.bf16 %v1458_v48, %v1458_v48  ;;  %v4995_v42 = vld [vmem:[%s6874_s3 + $0xd8] sm:$0xff]  }
 0x197   : > { %v1660_v43 = vrot.slane %v1658_v51, 7  ;;  %4471 = vmatprep.subr.bf16.mxu1 %v4995_v42 }
 0x198   : > { %v1666_v4 = vshrl.u32 %v4324_v54, 16  ;;  %v1669_v58 = vshll.u32 %v4324_v54, 16 }
 0x199   : > { %v1663_v57 = vor.u32 %v1661_v5, %v1660_v43  ;;  %v1664_v14 = vrot.slane %v1660_v43, 4 }
 0x19a   : > { %v1668_v27 = vrot.slane %v1666_v4, 7  ;;  %v4996_v4 = vld [vmem:[%s6874_s3 + $0x98] sm:$0xff]  }
 0x19b   : > { %v1974_v62 = vsel %vm5867_vm14, %v1663_v57, %v1973_v56  ;;  %4472 = vmatpush3.bf16.msra.mxu1 %v4996_v4  ;;  %v1994_v4 = vld [vmem:[#allocation2 + $0x3c] sm:$0xf] }
 0x19c   : > { %1975 = vst [vmem:[#allocation2 + $0x18] sm:$0xf] %v1974_v62  ;;  %v1671_v53 = vor.u32 %v1669_v58, %v1668_v27  ;;  %v1673_v9 = vrot.slane %v1668_v27, 4  ;;  %v1344_v1 = vpop.f32.mrb[8].mxu0 }
 0x19d   : > { %v1345_v22 = vadd.f32 %v5856_v12, %v1344_v1  ;;  %v1346_v8 = vpop.f32.mrb[9].mxu0  ;;  %v4968_v0 = vld [vmem:[#allocation2 + $0xc] sm:$0xff]   ;;  %v4969_v35 = vld [vmem:[#allocation2 + $0x14] ss:$0 sps:$4 sm:$0x11]  }
 0x19e   : > { %v1672_v10 = vsel %vm5872_vm15, %v1664_v14, %v1671_v53  ;;  %v1978_v11 = vsel %vm5878_vm2, %v1673_v9, %v1977_v29  ;;  %v1347_v60 = vpop.f32.mrb[10].mxu0  ;;  %v2487_v16 = vrot.slane %v4968_v0, 1  ;;  %v2488_v7 = vrot.slane %v4969_v35, 1 }
 0x19f   : > { %1976 = vst [vmem:[#allocation2 + $0x1c] sm:$0xf] %v1672_v10  ;;  %1979 = vst [vmem:[#allocation2 + $0x20] sm:$0x1] %v1978_v11  ;;  %v1459_v13 = vmax.f32 %v1345_v22, 0.0  ;;  %v1348_v15 = vadd.f32 %v5856_v12, %v1347_v60  ;;  %v1349_v61 = vpop.f32.mrb[11].mxu0 }
 0x1a0   : > { %v2291_v24 = vshll.u32 %v4968_v0, 16  ;;  %v2296_v17 = vshll.u32 %v4969_v35, 16  ;;  %v5904_v20 = vsel %vm633_vm0, %v2487_v16, %v2488_v7  ;;  %v2289_v21 = vshrl.u32 %v4968_v0, 16  ;;  %v1987_v60 = vld [vmem:[#allocation2 + $0x30] sm:$0xf] }
 0x1a1   : > { %v4325_v28 = vpack.c.bf16 %v1459_v13, %v1459_v13  ;;  %v1460_v3 = vmax.f32 %v1348_v15, 0.0  ;;  %3537 = vmatprep.mubr.bf16.mxu0 %v5904_v20 }
 0x1a2   : > { %v2293_v25 = vrot.slane %v2291_v24, 1  ;;  %v2298_v33 = vrot.slane %v2296_v17, 1  ;;  %v1991_v17 = vld [vmem:[#allocation2 + $0x38] sm:$0x1] }
 0x1a3   : > { %v1675_v26 = vshrl.u32 %v4325_v28, 16  ;;  %v4326_v30 = vpack.c.bf16 %v1460_v3, %v1460_v3  ;;  %v1678_v55 = vshll.u32 %v4325_v28, 16 }
 0x1a4   : > { %v2294_v23 = vor.u32 %v2293_v25, %v2289_v21 }
 0x1a5   : > { %v1677_v34 = vrot.slane %v1675_v26, 7  ;;  %v1683_v49 = vshrl.u32 %v4326_v30, 16  ;;  %v1686_v52 = vshll.u32 %v4326_v30, 16 }
 0x1a6   : > { %v2299_v37 = vsel %vm408_vm1, %v2294_v23, %v2298_v33  ;;  %v4971_v38 = vld [vmem:[#allocation2 + $0x18] sm:$0xff]   ;;  %v4972_v41 = vld [vmem:[#allocation2 + $0x20] ss:$0 sps:$4 sm:$0x11]  }
 0x1a7   : > { %v1680_v40 = vor.u32 %v1678_v55, %v1677_v34  ;;  %v1685_v39 = vrot.slane %v1683_v49, 7  ;;  %3223 = vmatprep.mubr.bf16.mxu1 %v2299_v37  ;;  %3538 = vmatmul.mubr.bf16.vlgmr.msra.gmra.mrb[64].mxu0 %v2299_v37  ;;  %v1681_v6 = vrot.slane %v1677_v34, 4  ;;  %v2490_v18 = vrot.slane %v4971_v38, 1 }
 0x1a8   : > { %3224 = vmatmul.mubr.bf16.gmra.mrb[4].mxu1 %v4968_v0  ;;  %v2303_v36 = vshll.u32 %v4971_v38, 16  ;;  %v2491_v50 = vrot.slane %v4972_v41, 1  ;;  %v2301_v43 = vshrl.u32 %v4971_v38, 16  ;;  %v2308_v56 = vshll.u32 %v4972_v41, 16 }
 0x1a9   : > { %v1981_v45 = vsel %vm5867_vm14, %v1680_v40, %v1980_v63  ;;  %v1688_v46 = vor.u32 %v1686_v52, %v1685_v39  ;;  %v1690_v47 = vrot.slane %v1685_v39, 4  ;;  %v1352_v48 = vpop.f32.mrb[12].mxu0  ;;  %v5000_v40 = vld [vmem:[%s6874_s3 + $0xa0] sm:$0xff]  }
 0x1aa   : > { %1982 = vst [vmem:[#allocation2 + $0x24] sm:$0xf] %v1981_v45  ;;  %v1353_v51 = vadd.f32 %v5856_v12, %v1352_v48  ;;  %v1354_v54 = vpop.f32.mrb[13].mxu0  ;;  %v2305_v5 = vrot.slane %v2303_v36, 1  ;;  %v5922_v59 = vsel %vm633_vm0, %v2490_v18, %v2491_v50  ;;  %v2310_v9 = vrot.slane %v2308_v56, 1 }
 0x1ab   : > { %v1689_v57 = vsel %vm5872_vm15, %v1681_v6, %v1688_v46  ;;  %v1985_v27 = vsel %vm5878_vm2, %v1690_v47, %v1984_v44  ;;  %v1355_v58 = vpop.f32.mrb[14].mxu0  ;;  %3545 = vmatprep.mubr.bf16.mxu0 %v5922_v59 }
 0x1ac   : > { %1983 = vst [vmem:[#allocation2 + $0x28] sm:$0xf] %v1689_v57  ;;  %1986 = vst [vmem:[#allocation2 + $0x2c] sm:$0x1] %v1985_v27  ;;  %v1461_v62 = vmax.f32 %v1353_v51, 0.0  ;;  %v1356_v29 = vadd.f32 %v5856_v12, %v1355_v58  ;;  %v1357_v14 = vpop.f32.mrb[15].mxu0  ;;  %v2306_v53 = vor.u32 %v2305_v5, %v2301_v43 }
 0x1ae   : > { %v4327_v1 = vpack.c.bf16 %v1461_v62, %v1461_v62  ;;  %v1462_v2 = vmax.f32 %v1356_v29, 0.0  ;;  %v5927_v22 = vsel %vm408_vm1, %v2306_v53, %v2310_v9  ;;  %v1998_v9 = vld [vmem:[#allocation2 + $0x44] sm:$0x1] }
 0x1af   : > { %3231 = vmatprep.mubr.bf16.mxu1 %v5927_v22  ;;  %3546 = vmatmul.mubr.bf16.gmra.mrb[68].mxu0 %v5927_v22 }
 0x1b0   : > { %v1692_v8 = vshrl.u32 %v4327_v1, 16  ;;  %v4328_v0 = vpack.c.bf16 %v1462_v2, %v1462_v2  ;;  %3232 = vmatmul.mubr.bf16.gmra.mrb[8].mxu1 %v4971_v38  ;;  %v1695_v11 = vshll.u32 %v4327_v1, 16  ;;  %v4999_v38 = vld [vmem:[%s6874_s3 + $0xe0] sm:$0xff]  }
 0x1b1   : > { %4473 = vmatprep.subr.bf16.mxu1 %v4999_v38  ;;  %v2001_v38 = vld [vmem:[#allocation2 + $0x48] sm:$0xf] }
 0x1b2   : > { %v1694_v10 = vrot.slane %v1692_v8, 7  ;;  %v1700_v35 = vshrl.u32 %v4328_v0, 16  ;;  %v1703_v16 = vshll.u32 %v4328_v0, 16  ;;  %4474 = vmatpush3.bf16.msra.mxu1 %v5000_v40 }
 0x1b3   : > { %v4973_v13 = vld [vmem:[#allocation2 + $0x24] sm:$0xff]   ;;  %v4974_v7 = vld [vmem:[#allocation2 + $0x2c] ss:$0 sps:$4 sm:$0x11]  }
 0x1b4   : > { %v1697_v15 = vor.u32 %v1695_v11, %v1694_v10  ;;  %v1702_v61 = vrot.slane %v1700_v35, 7  ;;  %v1698_v24 = vrot.slane %v1694_v10, 4  ;;  %v2493_v28 = vrot.slane %v4973_v13, 1  ;;  %v6295_v32 = vld [vmem:[#allocation2 + $0x24] sm:$0xff]  }
 0x1b5   : > { %v2315_v3 = vshll.u32 %v4973_v13, 16  ;;  %v2494_v30 = vrot.slane %v4974_v7, 1  ;;  %v2313_v23 = vshrl.u32 %v4973_v13, 16  ;;  %v2320_v34 = vshll.u32 %v4974_v7, 16 }
 0x1b6   : > { %v1988_v21 = vsel %vm5867_vm14, %v1697_v15, %v1987_v60  ;;  %v1705_v25 = vor.u32 %v1703_v16, %v1702_v61  ;;  %v1707_v26 = vrot.slane %v1702_v61, 4  ;;  %v5004_v15 = vld [vmem:[%s6874_s3 + $0xa8] sm:$0xff]  }
 0x1b7   : > { %1989 = vst [vmem:[#allocation2 + $0x30] sm:$0xf] %v1988_v21  ;;  %v2317_v33 = vrot.slane %v2315_v3, 1  ;;  %v5938_v37 = vsel %vm633_vm0, %v2493_v28, %v2494_v30  ;;  %v2322_v6 = vrot.slane %v2320_v34, 1 }
 0x1b8   : > { %v1706_v55 = vsel %vm5872_vm15, %v1698_v24, %v1705_v25  ;;  %v1992_v63 = vsel %vm5878_vm2, %v1707_v26, %v1991_v17  ;;  %v1360_v49 = vpop.f32.mrb[16].mxu0  ;;  %3553 = vmatprep.mubr.bf16.mxu0 %v5938_v37 }
 0x1b9   : > { %1990 = vst [vmem:[#allocation2 + $0x34] sm:$0xf] %v1706_v55  ;;  %1993 = vst [vmem:[#allocation2 + $0x38] sm:$0x1] %v1992_v63  ;;  %v1361_v39 = vadd.f32 %v5856_v12, %v1360_v49  ;;  %v1362_v52 = vpop.f32.mrb[17].mxu0  ;;  %v2318_v41 = vor.u32 %v2317_v33, %v2313_v23 }
 0x1ba   : > { %v1363_v44 = vpop.f32.mrb[18].mxu0 }
 0x1bb   : > { %v1463_v18 = vmax.f32 %v1361_v39, 0.0  ;;  %v1364_v36 = vadd.f32 %v5856_v12, %v1363_v44  ;;  %v1365_v45 = vpop.f32.mrb[19].mxu0  ;;  %v5950_v46 = vsel %vm408_vm1, %v2318_v41, %v2322_v6 }
 0x1bc   : > { %3239 = vmatprep.mubr.bf16.mxu1 %v5950_v46  ;;  %3554 = vmatmul.mubr.bf16.gmra.mrb[72].mxu0 %v5950_v46 }
 0x1bd   : > { %v4329_v47 = vpack.c.bf16 %v1463_v18, %v1463_v18  ;;  %v1464_v48 = vmax.f32 %v1364_v36, 0.0  ;;  %3240 = vmatmul.mubr.bf16.gmra.mrb[12].mxu1 %v4973_v13  ;;  %v5003_v13 = vld [vmem:[%s6874_s3 + $0xe8] sm:$0xff]   ;;  %v2005_v36 = vld [vmem:[#allocation2 + $0x50] sm:$0x1] }
 0x1be   : > { %4475 = vmatprep.subr.bf16.mxu1 %v5003_v13  ;;  %v5011_v13 = vld [vmem:[%s6874_s3 + $0x200] sm:$0xff]  }
 0x1bf   : > { %v1709_v50 = vshrl.u32 %v4329_v47, 16  ;;  %v4330_v42 = vpack.c.bf16 %v1464_v48, %v1464_v48  ;;  %v1712_v43 = vshll.u32 %v4329_v47, 16  ;;  %4476 = vmatpush3.bf16.msra.mxu1 %v5004_v15  ;;  %4825 = vmatprep.subr.bf16.mxu0 %v5011_v13 }
 0x1c0   : > { %v4975_v51 = vld [vmem:[#allocation2 + $0x30] sm:$0xff]   ;;  %v4976_v56 = vld [vmem:[#allocation2 + $0x38] ss:$0 sps:$4 sm:$0x11]   ;;  %4826 = vmatpush3.bf16.msra.mxu0 %v5011_v13 }
 0x1c1   : > { %v1711_v54 = vrot.slane %v1709_v50, 7  ;;  %v1717_v5 = vshrl.u32 %v4330_v42, 16  ;;  %v2496_v57 = vrot.slane %v4975_v51, 1  ;;  %v2327_v27 = vshll.u32 %v4975_v51, 16 }
 0x1c2   : > { %v1720_v29 = vshll.u32 %v4330_v42, 16  ;;  %v2497_v14 = vrot.slane %v4976_v56, 1  ;;  %v2325_v1 = vshrl.u32 %v4975_v51, 16  ;;  %v2332_v8 = vshll.u32 %v4976_v56, 16 }
 0x1c3   : > { %v1714_v58 = vor.u32 %v1712_v43, %v1711_v54  ;;  %v1719_v62 = vrot.slane %v1717_v5, 7  ;;  %v1715_v53 = vrot.slane %v1711_v54, 4  ;;  %v2329_v2 = vrot.slane %v2327_v27, 1 }
 0x1c4   : > { %v5957_v35 = vsel %vm633_vm0, %v2496_v57, %v2497_v14  ;;  %v2334_v24 = vrot.slane %v2332_v8, 1 }
 0x1c5   : > { %v1995_v0 = vsel %vm5867_vm14, %v1714_v58, %v1994_v4  ;;  %v1722_v10 = vor.u32 %v1720_v29, %v1719_v62  ;;  %v1724_v11 = vrot.slane %v1719_v62, 4  ;;  %v1368_v60 = vpop.f32.mrb[20].mxu0  ;;  %3561 = vmatprep.mubr.bf16.mxu0 %v5957_v35  ;;  %v2330_v7 = vor.u32 %v2329_v2, %v2325_v1  ;;  %v5007_v58 = vld [vmem:[%s6874_s3 + $0xf0] sm:$0xff]  }
 0x1c6   : > { %1996 = vst [vmem:[#allocation2 + $0x3c] sm:$0xf] %v1995_v0  ;;  %v1369_v61 = vadd.f32 %v5856_v12, %v1368_v60  ;;  %v1370_v16 = vpop.f32.mrb[21].mxu0  ;;  %v5008_v62 = vld [vmem:[%s6874_s3 + $0xb0] sm:$0xff]   ;;  %4477 = vmatprep.subr.bf16.mxu1 %v5007_v58 }
 0x1c7   : > { %v1723_v17 = vsel %vm5872_vm15, %v1715_v53, %v1722_v10  ;;  %v1999_v28 = vsel %vm5878_vm2, %v1724_v11, %v1998_v9  ;;  %v1371_v3 = vpop.f32.mrb[22].mxu0  ;;  %v5973_v30 = vsel %vm408_vm1, %v2330_v7, %v2334_v24  ;;  %4478 = vmatpush3.bf16.msra.mxu1 %v5008_v62  ;;  %v5018_v62 = vld [vmem:[%s6874_s3 + $0x218] sm:$0xff]  }
 0x1c8   : > { %1997 = vst [vmem:[#allocation2 + $0x40] sm:$0xf] %v1723_v17  ;;  %2000 = vst [vmem:[#allocation2 + $0x44] sm:$0x1] %v1999_v28  ;;  %v1465_v21 = vmax.f32 %v1369_v61, 0.0  ;;  %v1372_v25 = vadd.f32 %v5856_v12, %v1371_v3  ;;  %v1373_v26 = vpop.f32.mrb[23].mxu0  ;;  %3247 = vmatprep.mubr.bf16.mxu1 %v5973_v30  ;;  %3562 = vmatmul.mubr.bf16.gmra.mrb[76].mxu0 %v5973_v30 }
 0x1c9   : > { %3248 = vmatmul.mubr.bf16.gmra.mrb[16].mxu1 %v4975_v51  ;;  %v2008_v3 = vld [vmem:[#allocation2 + $0x54] sm:$0xf]  ;;  %v5014_v26 = vld [vmem:[%s6874_s3 + $0x208] sm:$0xff]  }
 0x1ca   : > { %v4331_v23 = vpack.c.bf16 %v1465_v21, %v1465_v21  ;;  %v1466_v33 = vmax.f32 %v1372_v25, 0.0  ;;  %4827 = vmatprep.subr.bf16.mxu0 %v5014_v26 }
 0x1cb   : > { %4828 = vmatpush3.bf16.msra.mxu0 %v5014_v26 }
 0x1cc   : > { %v1726_v34 = vshrl.u32 %v4331_v23, 16  ;;  %v4332_v55 = vpack.c.bf16 %v1466_v33, %v1466_v33  ;;  %v1729_v49 = vshll.u32 %v4331_v23, 16 }
 0x1ce   : > { %v1728_v63 = vrot.slane %v1726_v34, 7  ;;  %v1734_v40 = vshrl.u32 %v4332_v55, 16  ;;  %v1737_v6 = vshll.u32 %v4332_v55, 16 }
 0x1cf   : > { %v4977_v39 = vld [vmem:[#allocation2 + $0x3c] sm:$0xff]   ;;  %v4978_v44 = vld [vmem:[#allocation2 + $0x44] ss:$0 sps:$4 sm:$0x11]  }
 0x1d0   : > { %v1731_v52 = vor.u32 %v1729_v49, %v1728_v63  ;;  %v1736_v41 = vrot.slane %v1734_v40, 7  ;;  %v1732_v18 = vrot.slane %v1728_v63, 4  ;;  %v2499_v45 = vrot.slane %v4977_v39, 1  ;;  %v2012_v49 = vld [vmem:[#allocation2 + $0x5c] sm:$0x1] }
 0x1d1   : > { %v2339_v47 = vshll.u32 %v4977_v39, 16  ;;  %v2500_v51 = vrot.slane %v4978_v44, 1  ;;  %v2337_v54 = vshrl.u32 %v4977_v39, 16  ;;  %v2344_v5 = vshll.u32 %v4978_v44, 16 }
 0x1d2   : > { %v2002_v48 = vsel %vm5867_vm14, %v1731_v52, %v2001_v38  ;;  %v1739_v50 = vor.u32 %v1737_v6, %v1736_v41  ;;  %v1741_v42 = vrot.slane %v1736_v41, 4 }
 0x1d3   : > { %2003 = vst [vmem:[#allocation2 + $0x48] sm:$0xf] %v2002_v48  ;;  %v2341_v43 = vrot.slane %v2339_v47, 1  ;;  %v5984_v27 = vsel %vm633_vm0, %v2499_v45, %v2500_v51  ;;  %v2346_v9 = vrot.slane %v2344_v5, 1  ;;  %v5013_v45 = vld [vmem:[%s6874_s3 + $0xb8] sm:$0xff]   ;;  %v5017_v51 = vld [vmem:[%s6874_s3 + $0x210] sm:$0xff]  }
 0x1d4   : > { %v1740_v56 = vsel %vm5872_vm15, %v1732_v18, %v1739_v50  ;;  %v2006_v4 = vsel %vm5878_vm2, %v1741_v42, %v2005_v36  ;;  %v1376_v57 = vpop.f32.mrb[24].mxu0  ;;  %3569 = vmatprep.mubr.bf16.mxu0 %v5984_v27  ;;  %v5012_v36 = vld [vmem:[%s6874_s3 + $0xf8] sm:$0xff]   ;;  %4829 = vmatprep.subr.bf16.mxu0 %v5017_v51 }
 0x1d5   : > { %2004 = vst [vmem:[#allocation2 + $0x4c] sm:$0xf] %v1740_v56  ;;  %2007 = vst [vmem:[#allocation2 + $0x50] sm:$0x1] %v2006_v4  ;;  %v1377_v29 = vadd.f32 %v5856_v12, %v1376_v57  ;;  %v1378_v14 = vpop.f32.mrb[25].mxu0  ;;  %v2342_v53 = vor.u32 %v2341_v43, %v2337_v54  ;;  %4479 = vmatprep.subr.bf16.mxu1 %v5012_v36  ;;  %4830 = vmatpush3.bf16.msra.mxu0 %v5017_v51  ;;  %v5025_v36 = vld [vmem:[%s6874_s3 + $0x230] sm:$0xff]  }
 0x1d6   : > { %v1379_v1 = vpop.f32.mrb[26].mxu0  ;;  %4480 = vmatpush3.bf16.msra.mxu1 %v5013_v45  ;;  %4831 = vmatprep.subr.bf16.mxu0 %v5018_v62 }
 0x1d7   : > { %v1467_v2 = vmax.f32 %v1377_v29, 0.0  ;;  %v1380_v8 = vadd.f32 %v5856_v12, %v1379_v1  ;;  %v1381_v0 = vpop.f32.mrb[27].mxu0  ;;  %v5996_v10 = vsel %vm408_vm1, %v2342_v53, %v2346_v9  ;;  %v5020_v53 = vld [vmem:[%s6874_s3 + $0x1c0] sm:$0xff]  }
 0x1d8   : > { %3255 = vmatprep.mubr.bf16.mxu1 %v5996_v10  ;;  %3570 = vmatmul.mubr.bf16.gmra.mrb[80].mxu0 %v5996_v10  ;;  %v5019_v9 = vld [vmem:[%s6874_s3 + $0x220] sm:$0xff]  }
 0x1d9   : > { %v4333_v11 = vpack.c.bf16 %v1467_v2, %v1467_v2  ;;  %v1468_v60 = vmax.f32 %v1380_v8, 0.0  ;;  %3256 = vmatmul.mubr.bf16.gmra.mrb[20].mxu1 %v4977_v39  ;;  %4689 = vmatprep.subr.bf16.mxu1 %v5020_v53 }
 0x1da   : > { %4832 = vmatpush3.bf16.msra.mxu0 %v5018_v62 }
 0x1db   : > { %v1743_v15 = vshrl.u32 %v4333_v11, 16  ;;  %v4334_v61 = vpack.c.bf16 %v1468_v60, %v1468_v60  ;;  %v1746_v24 = vshll.u32 %v4333_v11, 16  ;;  %v2015_v11 = vld [vmem:[#allocation2 + $0x60] sm:$0xf]  ;;  %4833 = vmatprep.subr.bf16.mxu0 %v5019_v9 }
 0x1dc   : > { %v4979_v16 = vld [vmem:[#allocation2 + $0x48] sm:$0xff]   ;;  %v4980_v28 = vld [vmem:[#allocation2 + $0x50] ss:$0 sps:$4 sm:$0x11]  }
 0x1dd   : > { %v1745_v7 = vrot.slane %v1743_v15, 7  ;;  %v1751_v17 = vshrl.u32 %v4334_v61, 16  ;;  %v2502_v21 = vrot.slane %v4979_v16, 1  ;;  %v2351_v25 = vshll.u32 %v4979_v16, 16 }
 0x1de   : > { %v1754_v34 = vshll.u32 %v4334_v61, 16  ;;  %v2503_v55 = vrot.slane %v4980_v28, 1  ;;  %v2349_v38 = vshrl.u32 %v4979_v16, 16  ;;  %v2356_v39 = vshll.u32 %v4980_v28, 16  ;;  %4834 = vmatpush3.bf16.msra.mxu0 %v5019_v9 }
 0x1df   : > { %v1748_v23 = vor.u32 %v1746_v24, %v1745_v7  ;;  %v1753_v33 = vrot.slane %v1751_v17, 7  ;;  %v1749_v63 = vrot.slane %v1745_v7, 4  ;;  %v2353_v40 = vrot.slane %v2351_v25, 1  ;;  %v2019_v17 = vld [vmem:[#allocation2 + $0x68] sm:$0x1] }
 0x1e0   : > { %v6009_v18 = vsel %vm633_vm0, %v2502_v21, %v2503_v55  ;;  %v2358_v42 = vrot.slane %v2356_v39, 1 }
 0x1e1   : > { %v2009_v52 = vsel %vm5867_vm14, %v1748_v23, %v2008_v3  ;;  %v1756_v41 = vor.u32 %v1754_v34, %v1753_v33  ;;  %v1758_v6 = vrot.slane %v1753_v33, 4  ;;  %v1384_v44 = vpop.f32.mrb[28].mxu0  ;;  %3577 = vmatprep.mubr.bf16.mxu0 %v6009_v18  ;;  %v2354_v50 = vor.u32 %v2353_v40, %v2349_v38  ;;  %v5022_v33 = vld [vmem:[%s6874_s3 + $0x228] sm:$0xff]  }
 0x1e2   : > { %2010 = vst [vmem:[#allocation2 + $0x54] sm:$0xf] %v2009_v52  ;;  %v1385_v47 = vadd.f32 %v5856_v12, %v1384_v44  ;;  %v1386_v48 = vpop.f32.mrb[29].mxu0  ;;  %4835 = vmatprep.subr.bf16.mxu0 %v5022_v33 }
 0x1e3   : > { %v1757_v54 = vsel %vm5872_vm15, %v1749_v63, %v1756_v41  ;;  %v2013_v43 = vsel %vm5878_vm2, %v1758_v6, %v2012_v49  ;;  %v1387_v5 = vpop.f32.mrb[30].mxu0  ;;  %v6028_v58 = vsel %vm408_vm1, %v2354_v50, %v2358_v42  ;;  %4836 = vmatpush3.bf16.msra.mxu0 %v5022_v33 }
 0x1e4   : > { %2011 = vst [vmem:[#allocation2 + $0x58] sm:$0xf] %v1757_v54  ;;  %2014 = vst [vmem:[#allocation2 + $0x5c] sm:$0x1] %v2013_v43  ;;  %v1469_v56 = vmax.f32 %v1385_v47, 0.0  ;;  %v1388_v4 = vadd.f32 %v5856_v12, %v1387_v5  ;;  %v1389_v57 = vpop.f32.mrb[31].mxu0  ;;  %3263 = vmatprep.mubr.bf16.mxu1 %v6028_v58  ;;  %3578 = vmatmul.mubr.bf16.gmra.mrb[84].mxu0 %v6028_v58 }
 0x1e5   : > { %3264 = vmatmul.mubr.bf16.gmra.mrb[24].mxu1 %v4979_v16  ;;  %4837 = vmatprep.subr.bf16.mxu0 %v5025_v36  ;;  %v5026_v43 = vld [vmem:[%s6874_s3 + $0x238] sm:$0xff]  }
 0x1e6   : > { %v4335_v29 = vpack.c.bf16 %v1469_v56, %v1469_v56  ;;  %v1470_v14 = vmax.f32 %v1388_v4, 0.0 }
 0x1e7   : > { %4838 = vmatpush3.bf16.msra.mxu0 %v5025_v36 }
 0x1e8   : > { %v1760_v1 = vshrl.u32 %v4335_v29, 16  ;;  %v4336_v2 = vpack.c.bf16 %v1470_v14, %v1470_v14  ;;  %v1763_v0 = vshll.u32 %v4335_v29, 16  ;;  %4839 = vmatprep.subr.bf16.mxu0 %v5026_v43 }
 0x1ea   : > { %v1762_v8 = vrot.slane %v1760_v1, 7  ;;  %v1768_v60 = vshrl.u32 %v4336_v2, 16  ;;  %v1771_v16 = vshll.u32 %v4336_v2, 16 }
 0x1eb   : > { %v4983_v13 = vld [vmem:[#allocation2 + $0x54] sm:$0xff]   ;;  %v4984_v7 = vld [vmem:[#allocation2 + $0x5c] ss:$0 sps:$4 sm:$0x11]   ;;  %4840 = vmatpush3.bf16.msra.mxu0 %v5026_v43 }
 0x1ec   : > { %v1765_v15 = vor.u32 %v1763_v0, %v1762_v8  ;;  %v1770_v61 = vrot.slane %v1768_v60, 7  ;;  %v1766_v24 = vrot.slane %v1762_v8, 4  ;;  %v2505_v28 = vrot.slane %v4983_v13, 1  ;;  %v2022_v0 = vld [vmem:[#allocation2 + $0x6c] sm:$0xf] }
 0x1ed   : > { %v2363_v3 = vshll.u32 %v4983_v13, 16  ;;  %v2506_v23 = vrot.slane %v4984_v7, 1  ;;  %v2361_v34 = vshrl.u32 %v4983_v13, 16  ;;  %v2368_v63 = vshll.u32 %v4984_v7, 16 }
 0x1ee   : > { %v2016_v21 = vsel %vm5867_vm14, %v1765_v15, %v2015_v11  ;;  %v1773_v25 = vor.u32 %v1771_v16, %v1770_v61  ;;  %v1775_v26 = vrot.slane %v1770_v61, 4 }
 0x1ef   : > { %2017 = vst [vmem:[#allocation2 + $0x60] sm:$0xf] %v2016_v21  ;;  %v2365_v55 = vrot.slane %v2363_v3, 1  ;;  %v6051_v39 = vsel %vm633_vm0, %v2505_v28, %v2506_v23  ;;  %v2370_v44 = vrot.slane %v2368_v63, 1  ;;  %v4369_v5 = vpop.f32.mrb[0].mxu1 }
 0x1f0   : > { %v1774_v49 = vsel %vm5872_vm15, %v1766_v24, %v1773_v25  ;;  %v2020_v38 = vsel %vm5878_vm2, %v1775_v26, %v2019_v17  ;;  %v1392_v40 = vpop.f32.mrb[32].mxu0  ;;  %3585 = vmatprep.mubr.bf16.mxu0 %v6051_v39  ;;  %v4370_v56 = vpop.f32.mrb[1].mxu1  ;;  %v2026_v17 = vld [vmem:[#allocation2 + $0x74] sm:$0x1] }
 0x1f1   : > { %2018 = vst [vmem:[#allocation2 + $0x64] sm:$0xf] %v1774_v49  ;;  %2021 = vst [vmem:[#allocation2 + $0x68] sm:$0x1] %v2020_v38  ;;  %v1393_v52 = vadd.f32 %v5856_v12, %v1392_v40  ;;  %v1394_v41 = vpop.f32.mrb[33].mxu0  ;;  %v2366_v6 = vor.u32 %v2365_v55, %v2361_v34  ;;  %v6067_v62 = vadd.f32 %v4370_v56, %v4369_v5  ;;  %v4372_v29 = vpop.f32.mrb[2].mxu1 }
 0x1f2   : > { %v1395_v45 = vpop.f32.mrb[34].mxu0  ;;  %v4373_v53 = vpop.f32.mrb[3].mxu1  ;;  %v2029_v5 = vld [vmem:[#allocation2 + $0x78] sm:$0xf] }
 0x1f3   : > { %v1471_v47 = vmax.f32 %v1393_v52, 0.0  ;;  %v1396_v48 = vadd.f32 %v5856_v12, %v1395_v45  ;;  %v1397_v50 = vpop.f32.mrb[35].mxu0  ;;  %v6060_v42 = vsel %vm408_vm1, %v2366_v6, %v2370_v44 }
 0x1f4   : > { %3271 = vmatprep.mubr.bf16.mxu1 %v6060_v42  ;;  %3586 = vmatmul.mubr.bf16.gmra.mrb[88].mxu0 %v6060_v42 }
 0x1f5   : > { %v4337_v51 = vpack.c.bf16 %v1471_v47, %v1471_v47  ;;  %v1472_v54 = vmax.f32 %v1396_v48, 0.0  ;;  %3272 = vmatmul.mubr.bf16.gmra.mrb[28].mxu1 %v4983_v13  ;;  %v6073_v13 = vadd.f32 %v4373_v53, %v4372_v29 }
 0x1f7   : > { %v1777_v4 = vshrl.u32 %v4337_v51, 16  ;;  %v4338_v57 = vpack.c.bf16 %v1472_v54, %v1472_v54  ;;  %v1780_v1 = vshll.u32 %v4337_v51, 16 }
 0x1f8   : > { %v6069_v14 = vld [vmem:[#allocation2 + $0x60] sm:$0xff]   ;;  %v4988_v8 = vld [vmem:[#allocation2 + $0x68] ss:$0 sps:$4 sm:$0x11]  }
 0x1f9   : > { %v1779_v9 = vrot.slane %v1777_v4, 7  ;;  %v1785_v2 = vshrl.u32 %v4338_v57, 16  ;;  %v2508_v11 = vrot.slane %v6069_v14, 1  ;;  %v2375_v60 = vshll.u32 %v6069_v14, 16 }
 0x1fa   : > { %v1788_v16 = vshll.u32 %v4338_v57, 16  ;;  %v2509_v7 = vrot.slane %v4988_v8, 1  ;;  %v2373_v28 = vshrl.u32 %v6069_v14, 16  ;;  %v2380_v21 = vshll.u32 %v4988_v8, 16 }
 0x1fb   : > { %v1782_v15 = vor.u32 %v1780_v1, %v1779_v9  ;;  %v1787_v61 = vrot.slane %v1785_v2, 7  ;;  %v1783_v24 = vrot.slane %v1779_v9, 4  ;;  %v2377_v3 = vrot.slane %v2375_v60, 1  ;;  %v2033_v1 = vld [vmem:[#allocation2 + $0x80] sm:$0x1] }
 0x1fc   : > { %v6079_v34 = vsel %vm633_vm0, %v2508_v11, %v2509_v7  ;;  %v2382_v38 = vrot.slane %v2380_v21, 1  ;;  %v6111_v21 = vld [vmem:[%s6873_s2] ss:$0 sm:$0xff] }
 0x1fd   : > { %v2023_v25 = vsel %vm5867_vm14, %v1782_v15, %v2022_v0  ;;  %v1790_v26 = vor.u32 %v1788_v16, %v1787_v61  ;;  %v1792_v23 = vrot.slane %v1787_v61, 4  ;;  %v1400_v33 = vpop.f32.mrb[36].mxu0  ;;  %3593 = vmatprep.mubr.bf16.mxu0 %v6079_v34  ;;  %v2378_v49 = vor.u32 %v2377_v3, %v2373_v28 }
 0x1fe   : > { %2024 = vst [vmem:[#allocation2 + $0x6c] sm:$0xf] %v2023_v25  ;;  %v1401_v55 = vadd.f32 %v5856_v12, %v1400_v33  ;;  %v1402_v63 = vpop.f32.mrb[37].mxu0 }
 0x1ff   : > { %v1791_v40 = vsel %vm5872_vm15, %v1783_v24, %v1790_v26  ;;  %v2027_v52 = vsel %vm5878_vm2, %v1792_v23, %v2026_v17  ;;  %v1403_v41 = vpop.f32.mrb[38].mxu0  ;;  %v6089_v45 = vsel %vm408_vm1, %v2378_v49, %v2382_v38 }
 0x200   : > { %2025 = vst [vmem:[#allocation2 + $0x70] sm:$0xf] %v1791_v40  ;;  %2028 = vst [vmem:[#allocation2 + $0x74] sm:$0x1] %v2027_v52  ;;  %v1473_v6 = vmax.f32 %v1401_v55, 0.0  ;;  %v1404_v44 = vadd.f32 %v5856_v12, %v1403_v41  ;;  %v1405_v36 = vpop.f32.mrb[39].mxu0  ;;  %3279 = vmatprep.mubr.bf16.mxu1 %v6089_v45  ;;  %3594 = vmatmul.mubr.bf16.gmra.mrb[92].mxu0 %v6089_v45 }
 0x201   : > { %3280 = vmatmul.mubr.bf16.gmra.mrb[32].mxu1 %v6069_v14 }
 0x202   : > { %v4339_v47 = vpack.c.bf16 %v1473_v6, %v1473_v6  ;;  %v1474_v48 = vmax.f32 %v1404_v44, 0.0 }
 0x204   : > { %v1794_v50 = vshrl.u32 %v4339_v47, 16  ;;  %v4340_v51 = vpack.c.bf16 %v1474_v48, %v1474_v48  ;;  %v1797_v43 = vshll.u32 %v4339_v47, 16 }
 0x206   : > { %v1796_v54 = vrot.slane %v1794_v50, 7  ;;  %v1802_v56 = vshrl.u32 %v4340_v51, 16  ;;  %v1805_v29 = vshll.u32 %v4340_v51, 16 }
 0x207   : > { %v6094_v4 = vld [vmem:[#allocation2 + $0x6c] sm:$0xff]   ;;  %v4991_v53 = vld [vmem:[#allocation2 + $0x74] ss:$0 sps:$4 sm:$0x11]  }
 0x208   : > { %v1799_v12 = vor.u32 %v1797_v43, %v1796_v54  ;;  %v1804_v57 = vrot.slane %v1802_v56, 7  ;;  %v1800_v9 = vrot.slane %v1796_v54, 4  ;;  %v2511_v2 = vrot.slane %v6094_v4, 1  ;;  %v2036_v54 = vld [vmem:[#allocation2 + $0x84] sm:$0xf] }
 0x209   : > { %v2387_v8 = vshll.u32 %v6094_v4, 16  ;;  %v2512_v15 = vrot.slane %v4991_v53, 1  ;;  %v2385_v61 = vshrl.u32 %v6094_v4, 16  ;;  %v2392_v7 = vshll.u32 %v4991_v53, 16 }
 0x20a   : > { %v2030_v0 = vsel %vm5867_vm14, %v1799_v12, %v2029_v5  ;;  %v1807_v11 = vor.u32 %v1805_v29, %v1804_v57  ;;  %v1809_v60 = vrot.slane %v1804_v57, 4 }
 0x20b   : > { %2031 = vst [vmem:[#allocation2 + $0x78] sm:$0xf] %v2030_v0  ;;  %v2389_v16 = vrot.slane %v2387_v8, 1  ;;  %v6106_v3 = vsel %vm633_vm0, %v2511_v2, %v2512_v15  ;;  %v2394_v33 = vrot.slane %v2392_v7, 1 }
 0x20c   : > { %v1808_v24 = vsel %vm5872_vm15, %v1800_v9, %v1807_v11  ;;  %v2034_v17 = vsel %vm5878_vm2, %v1809_v60, %v2033_v1  ;;  %v1408_v28 = vpop.f32.mrb[40].mxu0  ;;  %3601 = vmatprep.mubr.bf16.mxu0 %v6106_v3  ;;  %v2040_v9 = vld [vmem:[#allocation2 + $0x8c] sm:$0x1] }
 0x20d   : > { %2032 = vst [vmem:[#allocation2 + $0x7c] sm:$0xf] %v1808_v24  ;;  %2035 = vst [vmem:[#allocation2 + $0x80] sm:$0x1] %v2034_v17  ;;  %v1409_v25 = vadd.f32 %v6111_v21, %v1408_v28  ;;  %v1410_v26 = vpop.f32.mrb[41].mxu0  ;;  %v2390_v23 = vor.u32 %v2389_v16, %v2385_v61 }
 0x20e   : > { %v1411_v55 = vpop.f32.mrb[42].mxu0 }
 0x20f   : > { %v1475_v63 = vmax.f32 %v1409_v25, 0.0  ;;  %v1412_v49 = vadd.f32 %v6111_v21, %v1411_v55  ;;  %v1413_v38 = vpop.f32.mrb[43].mxu0  ;;  %v6117_v40 = vsel %vm408_vm1, %v2390_v23, %v2394_v33 }
 0x210   : > { %3287 = vmatprep.mubr.bf16.mxu1 %v6117_v40  ;;  %3602 = vmatmul.mubr.bf16.gmra.mrb[96].mxu0 %v6117_v40 }
 0x211   : > { %v4341_v52 = vpack.c.bf16 %v1475_v63, %v1475_v63  ;;  %v1476_v41 = vmax.f32 %v1412_v49, 0.0  ;;  %3288 = vmatmul.mubr.bf16.gmra.mrb[36].mxu1 %v6094_v4 }
 0x213   : > { %v1811_v6 = vshrl.u32 %v4341_v52, 16  ;;  %v4342_v44 = vpack.c.bf16 %v1476_v41, %v1476_v41  ;;  %v1814_v48 = vshll.u32 %v4341_v52, 16 }
 0x214   : > { %v6122_v36 = vld [vmem:[#allocation2 + $0x78] sm:$0xff]   ;;  %v4994_v51 = vld [vmem:[#allocation2 + $0x80] ss:$0 sps:$4 sm:$0x11]  }
 0x215   : > { %v1813_v47 = vrot.slane %v1811_v6, 7  ;;  %v1819_v50 = vshrl.u32 %v4342_v44, 16  ;;  %v2514_v43 = vrot.slane %v6122_v36, 1  ;;  %v2399_v5 = vshll.u32 %v6122_v36, 16 }
 0x216   : > { %v1822_v57 = vshll.u32 %v4342_v44, 16  ;;  %v2515_v29 = vrot.slane %v4994_v51, 1  ;;  %v2397_v1 = vshrl.u32 %v6122_v36, 16  ;;  %v2404_v8 = vshll.u32 %v4994_v51, 16 }
 0x217   : > { %v1816_v56 = vor.u32 %v1814_v48, %v1813_v47  ;;  %v1821_v12 = vrot.slane %v1819_v50, 7  ;;  %v1817_v53 = vrot.slane %v1813_v47, 4  ;;  %v2401_v2 = vrot.slane %v2399_v5, 1  ;;  %v2043_v47 = vld [vmem:[#allocation2 + $0x90] sm:$0xf] }
 0x218   : > { %v6130_v61 = vsel %vm633_vm0, %v2514_v43, %v2515_v29  ;;  %v2406_v17 = vrot.slane %v2404_v8, 1 }
 0x219   : > { %v2037_v0 = vsel %vm5867_vm14, %v1816_v56, %v2036_v54  ;;  %v1824_v11 = vor.u32 %v1822_v57, %v1821_v12  ;;  %v1826_v60 = vrot.slane %v1821_v12, 4  ;;  %v1416_v15 = vpop.f32.mrb[44].mxu0  ;;  %3609 = vmatprep.mubr.bf16.mxu0 %v6130_v61  ;;  %v2402_v24 = vor.u32 %v2401_v2, %v2397_v1  ;;  %v2047_v12 = vld [vmem:[#allocation2 + $0x98] sm:$0x1] }
 0x21a   : > { %2038 = vst [vmem:[#allocation2 + $0x84] sm:$0xf] %v2037_v0  ;;  %v1417_v16 = vadd.f32 %v6111_v21, %v1416_v15  ;;  %v1418_v7 = vpop.f32.mrb[45].mxu0 }
 0x21b   : > { %v1825_v28 = vsel %vm5872_vm15, %v1817_v53, %v1824_v11  ;;  %v2041_v25 = vsel %vm5878_vm2, %v1826_v60, %v2040_v9  ;;  %v1419_v26 = vpop.f32.mrb[46].mxu0  ;;  %v6140_v63 = vsel %vm408_vm1, %v2402_v24, %v2406_v17 }
 0x21c   : > { %2039 = vst [vmem:[#allocation2 + $0x88] sm:$0xf] %v1825_v28  ;;  %2042 = vst [vmem:[#allocation2 + $0x8c] sm:$0x1] %v2041_v25  ;;  %v1477_v23 = vmax.f32 %v1417_v16, 0.0  ;;  %v1420_v33 = vadd.f32 %v6111_v21, %v1419_v26  ;;  %v1421_v55 = vpop.f32.mrb[47].mxu0  ;;  %3295 = vmatprep.mubr.bf16.mxu1 %v6140_v63  ;;  %3610 = vmatmul.mubr.bf16.gmra.mrb[100].mxu0 %v6140_v63 }
 0x21d   : > { %3296 = vmatmul.mubr.bf16.gmra.mrb[40].mxu1 %v6122_v36 }
 0x21e   : > { %v4343_v49 = vpack.c.bf16 %v1477_v23, %v1477_v23  ;;  %v1478_v38 = vmax.f32 %v1420_v33, 0.0 }
 0x220   : > { %v1828_v52 = vshrl.u32 %v4343_v49, 16  ;;  %v4344_v41 = vpack.c.bf16 %v1478_v38, %v1478_v38  ;;  %v1831_v44 = vshll.u32 %v4343_v49, 16 }
 0x222   : > { %v1830_v6 = vrot.slane %v1828_v52, 7  ;;  %v1836_v48 = vshrl.u32 %v4344_v41, 16  ;;  %v1839_v43 = vshll.u32 %v4344_v41, 16 }
 0x223   : > { %v6145_v50 = vld [vmem:[#allocation2 + $0x84] sm:$0xff]   ;;  %v4998_v5 = vld [vmem:[#allocation2 + $0x8c] ss:$0 sps:$4 sm:$0x11]  }
 0x224   : > { %v1833_v51 = vor.u32 %v1831_v44, %v1830_v6  ;;  %v1838_v54 = vrot.slane %v1836_v48, 7  ;;  %v1834_v56 = vrot.slane %v1830_v6, 4  ;;  %v2517_v57 = vrot.slane %v6145_v50, 1 }
 0x225   : > { %v2411_v29 = vshll.u32 %v6145_v50, 16  ;;  %v2518_v2 = vrot.slane %v4998_v5, 1  ;;  %v2409_v8 = vshrl.u32 %v6145_v50, 16  ;;  %v2416_v11 = vshll.u32 %v4998_v5, 16 }
 0x226   : > { %v2044_v53 = vsel %vm5867_vm14, %v1833_v51, %v2043_v47  ;;  %v1841_v9 = vor.u32 %v1839_v43, %v1838_v54  ;;  %v1843_v1 = vrot.slane %v1838_v54, 4  ;;  %v2050_v43 = vld [vmem:[#allocation2 + $0x9c] sm:$0xf] }
 0x227   : > { %2045 = vst [vmem:[#allocation2 + $0x90] sm:$0xf] %v2044_v53  ;;  %v2413_v0 = vrot.slane %v2411_v29, 1  ;;  %v6157_v7 = vsel %vm633_vm0, %v2517_v57, %v2518_v2  ;;  %v2418_v25 = vrot.slane %v2416_v11, 1 }
 0x228   : > { %v1842_v60 = vsel %vm5872_vm15, %v1834_v56, %v1841_v9  ;;  %v2048_v15 = vsel %vm5878_vm2, %v1843_v1, %v2047_v12  ;;  %v1424_v16 = vpop.f32.mrb[48].mxu0  ;;  %3617 = vmatprep.mubr.bf16.mxu0 %v6157_v7  ;;  %v2054_v1 = vld [vmem:[#allocation2 + $0xa4] sm:$0x1] }
 0x229   : > { %2046 = vst [vmem:[#allocation2 + $0x94] sm:$0xf] %v1842_v60  ;;  %2049 = vst [vmem:[#allocation2 + $0x98] sm:$0x1] %v2048_v15  ;;  %v1425_v24 = vadd.f32 %v6111_v21, %v1424_v16  ;;  %v1426_v17 = vpop.f32.mrb[49].mxu0  ;;  %v2414_v28 = vor.u32 %v2413_v0, %v2409_v8 }
 0x22a   : > { %v1427_v26 = vpop.f32.mrb[50].mxu0 }
 0x22b   : > { %v1479_v23 = vmax.f32 %v1425_v24, 0.0  ;;  %v1428_v33 = vadd.f32 %v6111_v21, %v1427_v26  ;;  %v1429_v55 = vpop.f32.mrb[51].mxu0  ;;  %v6163_v49 = vsel %vm408_vm1, %v2414_v28, %v2418_v25 }
 0x22c   : > { %3303 = vmatprep.mubr.bf16.mxu1 %v6163_v49  ;;  %3618 = vmatmul.mubr.bf16.gmra.mrb[104].mxu0 %v6163_v49 }
 0x22d   : > { %v4345_v38 = vpack.c.bf16 %v1479_v23, %v1479_v23  ;;  %v1480_v52 = vmax.f32 %v1428_v33, 0.0  ;;  %3304 = vmatmul.mubr.bf16.gmra.mrb[44].mxu1 %v6145_v50 }
 0x22f   : > { %v1845_v41 = vshrl.u32 %v4345_v38, 16  ;;  %v4346_v6 = vpack.c.bf16 %v1480_v52, %v1480_v52  ;;  %v1848_v48 = vshll.u32 %v4345_v38, 16 }
 0x230   : > { %v6168_v44 = vld [vmem:[#allocation2 + $0x90] sm:$0xff]   ;;  %v5002_v54 = vld [vmem:[#allocation2 + $0x98] ss:$0 sps:$4 sm:$0x11]  }
 0x231   : > { %v1847_v47 = vrot.slane %v1845_v41, 7  ;;  %v1853_v51 = vshrl.u32 %v4346_v6, 16  ;;  %v2520_v5 = vrot.slane %v6168_v44, 1  ;;  %v2423_v56 = vshll.u32 %v6168_v44, 16 }
 0x232   : > { %v1856_v29 = vshll.u32 %v4346_v6, 16  ;;  %v2521_v53 = vrot.slane %v5002_v54, 1  ;;  %v2421_v2 = vshrl.u32 %v6168_v44, 16  ;;  %v2428_v0 = vshll.u32 %v5002_v54, 16 }
 0x233   : > { %v1850_v12 = vor.u32 %v1848_v48, %v1847_v47  ;;  %v1855_v57 = vrot.slane %v1853_v51, 7  ;;  %v1851_v9 = vrot.slane %v1847_v47, 4  ;;  %v2425_v8 = vrot.slane %v2423_v56, 1  ;;  %v2057_v56 = vld [vmem:[#allocation2 + $0xa8] sm:$0xf] }
 0x234   : > { %v6176_v24 = vsel %vm633_vm0, %v2520_v5, %v2521_v53  ;;  %v2430_v26 = vrot.slane %v2428_v0, 1 }
 0x235   : > { %v2051_v11 = vsel %vm5867_vm14, %v1850_v12, %v2050_v43  ;;  %v1858_v60 = vor.u32 %v1856_v29, %v1855_v57  ;;  %v1860_v15 = vrot.slane %v1855_v57, 4  ;;  %v1432_v16 = vpop.f32.mrb[52].mxu0  ;;  %3625 = vmatprep.mubr.bf16.mxu0 %v6176_v24  ;;  %v2426_v25 = vor.u32 %v2425_v8, %v2421_v2  ;;  %v2061_v8 = vld [vmem:[#allocation2 + $0xb0] sm:$0x1] }
 0x236   : > { %2052 = vst [vmem:[#allocation2 + $0x9c] sm:$0xf] %v2051_v11  ;;  %v1433_v17 = vadd.f32 %v6111_v21, %v1432_v16  ;;  %v1434_v28 = vpop.f32.mrb[53].mxu0 }
 0x237   : > { %v1859_v23 = vsel %vm5872_vm15, %v1851_v9, %v1858_v60  ;;  %v2055_v33 = vsel %vm5878_vm2, %v1860_v15, %v2054_v1  ;;  %v1435_v55 = vpop.f32.mrb[54].mxu0  ;;  %v6186_v6 = vsel %vm408_vm1, %v2426_v25, %v2430_v26 }
 0x238   : > { %2053 = vst [vmem:[#allocation2 + $0xa0] sm:$0xf] %v1859_v23  ;;  %2056 = vst [vmem:[#allocation2 + $0xa4] sm:$0x1] %v2055_v33  ;;  %v1481_v38 = vmax.f32 %v1433_v17, 0.0  ;;  %v1436_v52 = vadd.f32 %v6111_v21, %v1435_v55  ;;  %v1437_v41 = vpop.f32.mrb[55].mxu0  ;;  %3311 = vmatprep.mubr.bf16.mxu1 %v6186_v6  ;;  %3626 = vmatmul.mubr.bf16.gmra.mrb[108].mxu0 %v6186_v6 }
 0x239   : > { %3312 = vmatmul.mubr.bf16.gmra.mrb[48].mxu1 %v6168_v44 }
 0x23a   : > { %v4347_v47 = vpack.c.bf16 %v1481_v38, %v1481_v38  ;;  %v1482_v48 = vmax.f32 %v1436_v52, 0.0 }
 0x23c   : > { %v1862_v51 = vshrl.u32 %v4347_v47, 16  ;;  %v4348_v54 = vpack.c.bf16 %v1482_v48, %v1482_v48  ;;  %v1865_v5 = vshll.u32 %v4347_v47, 16 }
 0x23e   : > { %v1864_v43 = vrot.slane %v1862_v51, 7  ;;  %v1870_v12 = vshrl.u32 %v4348_v54, 16  ;;  %v1873_v9 = vshll.u32 %v4348_v54, 16 }
 0x23f   : > { %v6191_v57 = vld [vmem:[#allocation2 + $0x9c] sm:$0xff]   ;;  %v5006_v1 = vld [vmem:[#allocation2 + $0xa4] ss:$0 sps:$4 sm:$0x11]  }
 0x240   : > { %v1867_v29 = vor.u32 %v1865_v5, %v1864_v43  ;;  %v1872_v53 = vrot.slane %v1870_v12, 7  ;;  %v1868_v2 = vrot.slane %v1864_v43, 4  ;;  %v2523_v0 = vrot.slane %v6191_v57, 1 }
 0x241   : > { %v2435_v11 = vshll.u32 %v6191_v57, 16  ;;  %v2524_v17 = vrot.slane %v5006_v1, 1  ;;  %v2433_v28 = vshrl.u32 %v6191_v57, 16  ;;  %v2440_v26 = vshll.u32 %v5006_v1, 16 }
 0x242   : > { %v2058_v60 = vsel %vm5867_vm14, %v1867_v29, %v2057_v56  ;;  %v1875_v15 = vor.u32 %v1873_v9, %v1872_v53  ;;  %v1877_v16 = vrot.slane %v1872_v53, 4 }
 0x243   : > { %2059 = vst [vmem:[#allocation2 + $0xa8] sm:$0xf] %v2058_v60  ;;  %v2437_v25 = vrot.slane %v2435_v11, 1  ;;  %v6203_v38 = vsel %vm633_vm0, %v2523_v0, %v2524_v17  ;;  %v2442_v48 = vrot.slane %v2440_v26, 1  ;;  %v2064_v60 = vld [vmem:[#allocation2 + $0xb4] sm:$0xf] }
 0x244   : > { %v1876_v23 = vsel %vm5872_vm15, %v1868_v2, %v1875_v15  ;;  %v2062_v33 = vsel %vm5878_vm2, %v1877_v16, %v2061_v8  ;;  %v1440_v55 = vpop.f32.mrb[56].mxu0  ;;  %3633 = vmatprep.mubr.bf16.mxu0 %v6203_v38 }
 0x245   : > { %2060 = vst [vmem:[#allocation2 + $0xac] sm:$0xf] %v1876_v23  ;;  %2063 = vst [vmem:[#allocation2 + $0xb0] sm:$0x1] %v2062_v33  ;;  %v1441_v52 = vadd.f32 %v6111_v21, %v1440_v55  ;;  %v1442_v41 = vpop.f32.mrb[57].mxu0  ;;  %v2438_v47 = vor.u32 %v2437_v25, %v2433_v28 }
 0x246   : > { %v1443_v51 = vpop.f32.mrb[58].mxu0  ;;  %v2068_v33 = vld [vmem:[#allocation2 + $0xbc] sm:$0x1] }
 0x247   : > { %v1483_v54 = vmax.f32 %v1441_v52, 0.0  ;;  %v1444_v43 = vadd.f32 %v6111_v21, %v1443_v51  ;;  %v1445_v5 = vpop.f32.mrb[59].mxu0  ;;  %v6209_v56 = vsel %vm408_vm1, %v2438_v47, %v2442_v48 }
 0x248   : > { %3319 = vmatprep.mubr.bf16.mxu1 %v6209_v56  ;;  %3634 = vmatmul.mubr.bf16.gmra.mrb[112].mxu0 %v6209_v56 }
 0x249   : > { %v4349_v12 = vpack.c.bf16 %v1483_v54, %v1483_v54  ;;  %v1484_v29 = vmax.f32 %v1444_v43, 0.0  ;;  %3320 = vmatmul.mubr.bf16.gmra.mrb[52].mxu1 %v6191_v57 }
 0x24b   : > { %v1879_v53 = vshrl.u32 %v4349_v12, 16  ;;  %v4350_v9 = vpack.c.bf16 %v1484_v29, %v1484_v29  ;;  %v1882_v8 = vshll.u32 %v4349_v12, 16 }
 0x24c   : > { %v6214_v1 = vld [vmem:[#allocation2 + $0xa8] sm:$0xff]   ;;  %v5010_v11 = vld [vmem:[#allocation2 + $0xb0] ss:$0 sps:$4 sm:$0x11]  }
 0x24d   : > { %v1881_v2 = vrot.slane %v1879_v53, 7  ;;  %v1887_v0 = vshrl.u32 %v4350_v9, 16  ;;  %v2526_v15 = vrot.slane %v6214_v1, 1  ;;  %v2447_v16 = vshll.u32 %v6214_v1, 16 }
 0x24e   : > { %v1890_v25 = vshll.u32 %v4350_v9, 16  ;;  %v2527_v26 = vrot.slane %v5010_v11, 1  ;;  %v2445_v55 = vshrl.u32 %v6214_v1, 16  ;;  %v2452_v41 = vshll.u32 %v5010_v11, 16 }
 0x24f   : > { %v1884_v17 = vor.u32 %v1882_v8, %v1881_v2  ;;  %v1889_v28 = vrot.slane %v1887_v0, 7  ;;  %v1885_v23 = vrot.slane %v1881_v2, 4  ;;  %v2449_v52 = vrot.slane %v2447_v16, 1 }
 0x250   : > { %v6222_v43 = vsel %vm633_vm0, %v2526_v15, %v2527_v26  ;;  %v2454_v53 = vrot.slane %v2452_v41, 1 }
 0x251   : > { %v2065_v47 = vsel %vm5867_vm14, %v1884_v17, %v2064_v60  ;;  %v1892_v48 = vor.u32 %v1890_v25, %v1889_v28  ;;  %v1894_v51 = vrot.slane %v1889_v28, 4  ;;  %v1448_v54 = vpop.f32.mrb[60].mxu0  ;;  %3641 = vmatprep.mubr.bf16.mxu0 %v6222_v43  ;;  %v2450_v29 = vor.u32 %v2449_v52, %v2445_v55 }
 0x252   : > { %2066 = vst [vmem:[#allocation2 + $0xb4] sm:$0xf] %v2065_v47  ;;  %v1449_v5 = vadd.f32 %v6111_v21, %v1448_v54  ;;  %v1450_v12 = vpop.f32.mrb[61].mxu0  ;;  %v2075_v54 = vld [vmem:[#allocation2 + $0xc8] sm:$0x1] }
 0x253   : > { %v1893_v9 = vsel %vm5872_vm15, %v1885_v23, %v1892_v48  ;;  %v2069_v2 = vsel %vm5878_vm2, %v1894_v51, %v2068_v33  ;;  %v1451_v8 = vpop.f32.mrb[62].mxu0  ;;  %v6232_v60 = vsel %vm408_vm1, %v2450_v29, %v2454_v53  ;;  %v2071_v33 = vld [vmem:[#allocation2 + $0xc0] sm:$0xf] }
 0x254   : > { %2067 = vst [vmem:[#allocation2 + $0xb8] sm:$0xf] %v1893_v9  ;;  %2070 = vst [vmem:[#allocation2 + $0xbc] sm:$0x1] %v2069_v2  ;;  %v1485_v0 = vmax.f32 %v1449_v5, 0.0  ;;  %v1452_v11 = vadd.f32 %v6111_v21, %v1451_v8  ;;  %v1453_v15 = vpop.f32.mrb[63].mxu0  ;;  %3327 = vmatprep.mubr.bf16.mxu1 %v6232_v60  ;;  %3642 = vmatmul.mubr.bf16.gmra.mrb[116].mxu0 %v6232_v60 }
 0x255   : > { %3328 = vmatmul.mubr.bf16.gmra.mrb[56].mxu1 %v6214_v1 }
 0x256   : > { %v4351_v16 = vpack.c.bf16 %v1485_v0, %v1485_v0  ;;  %v1486_v17 = vmax.f32 %v1452_v11, 0.0 }
 0x258   : > { %v1896_v28 = vshrl.u32 %v4351_v16, 16  ;;  %v1899_v25 = vshll.u32 %v4351_v16, 16  ;;  %v4352_v26 = vpack.c.bf16 %v1486_v17, %v1486_v17 }
 0x25a   : > { %v1898_v23 = vrot.slane %v1896_v28, 7  ;;  %v1904_v55 = vshrl.u32 %v4352_v26, 16  ;;  %v1907_v52 = vshll.u32 %v4352_v26, 16  ;;  %v5045_v26 = vld [vmem:[#allocation2 + $0xc] sm:$0xff]  }
 0x25b   : > { %v6237_v21 = vld [vmem:[#allocation2 + $0xb4] sm:$0xff]   ;;  %v5016_v51 = vld [vmem:[#allocation2 + $0xbc] ss:$0 sps:$4 sm:$0x11]  }
 0x25c   : > { %v1901_v41 = vor.u32 %v1899_v25, %v1898_v23  ;;  %v1902_v47 = vrot.slane %v1898_v23, 4  ;;  %v1906_v48 = vrot.slane %v1904_v55, 7  ;;  %v2529_v5 = vrot.slane %v6237_v21, 1  ;;  %v5046_v23 = vld [vmem:[#allocation2] sm:$0xff]  }
 0x25d   : > { %v2459_v12 = vshll.u32 %v6237_v21, 16  ;;  %v2530_v2 = vrot.slane %v5016_v51, 1  ;;  %v2457_v8 = vshrl.u32 %v6237_v21, 16  ;;  %v2464_v11 = vshll.u32 %v5016_v51, 16 }
 0x25e   : > { %v2072_v29 = vsel %vm5867_vm14, %v1901_v41, %v2071_v33  ;;  %v1909_v53 = vor.u32 %v1907_v52, %v1906_v48  ;;  %v1911_v9 = vrot.slane %v1906_v48, 4  ;;  %v2484_v33 = vrot.slane %v5046_v23, 1 }
 0x25f   : > { %2073 = vst [vmem:[#allocation2 + $0xc0] sm:$0xf] %v2072_v29  ;;  %v2461_v0 = vrot.slane %v2459_v12, 1  ;;  %v6249_v17 = vsel %vm633_vm0, %v2529_v5, %v2530_v2  ;;  %v2466_v28 = vrot.slane %v2464_v11, 1  ;;  %v5027_v29 = vld [vmem:[%s6874_s3 + $0x1c8] sm:$0xff]  }
 0x260   : > { %v1910_v15 = vsel %vm5872_vm15, %v1902_v47, %v1909_v53  ;;  %v2076_v16 = vsel %vm5878_vm2, %v1911_v9, %v2075_v54  ;;  %3649 = vmatprep.mubr.bf16.mxu0 %v6249_v17  ;;  %v2486_v41 = vsel %vm633_vm0, %v2484_v33, %v2485_v19  ;;  %v5021_v47 = vld [vmem:[%s6874_s3 + $0x180] sm:$0xff]   ;;  %v5028_v11 = vld [vmem:[%s6874_s3 + $0x188] sm:$0xff]   ;;  %v5032_v19 = vld [vmem:[%s6874_s3 + $0x198] sm:$0xff]  }
 0x261   : > { %2074 = vst [vmem:[#allocation2 + $0xc4] sm:$0xf] %v1910_v15  ;;  %2077 = vst [vmem:[#allocation2 + $0xc8] sm:$0x1] %v2076_v16  ;;  %v2462_v31 = vor.u32 %v2461_v0, %v2457_v8  ;;  %v6273_v8 = vld [vmem:[#allocation2 + $0x18] sm:$0xff]   ;;  %v5029_v15 = vld [vmem:[%s6874_s3 + $0x1d0] sm:$0xff]  }
 0x263   : > { %v6253_v25 = vsel %vm408_vm1, %v2462_v31, %v2466_v28  ;;  %v5030_v31 = vld [vmem:[%s6874_s3 + $0x190] sm:$0xff]   ;;  %v5031_v28 = vld [vmem:[%s6874_s3 + $0x1d8] sm:$0xff]  }
 0x264   : > { %3335 = vmatprep.mubr.bf16.mxu1 %v6253_v25  ;;  %3650 = vmatmul.mubr.bf16.gmra.mrb[120].mxu0 %v6253_v25 }
 0x265   : > { %3336 = vmatmul.mubr.bf16.gmra.mrb[60].mxu1 %v6237_v21 }
 0x266   : > { %3376 = vmatprep.mubr.bf16.mxu1 %v5045_v26  ;;  %v5033_v26 = vld [vmem:[%s6874_s3 + $0x1e0] sm:$0xff]  }
 0x268   : > { %v6258_v55 = vld [vmem:[#allocation2 + $0xc0] sm:$0xff]   ;;  %v5024_v52 = vld [vmem:[#allocation2 + $0xc8] ss:$0 sps:$4 sm:$0x11]  }
 0x269   : > { %v2570_v48 = vrot.slane %v6258_v55, 1  ;;  %v2558_v51 = vshrl.u32 %v6258_v55, 16  ;;  %v2560_v54 = vshll.u32 %v6258_v55, 16  ;;  %v2571_v5 = vrot.slane %v5024_v52, 1 }
 0x26a   : > { %v2565_v12 = vshll.u32 %v5024_v52, 16 }
 0x26b   : > { %v2562_v53 = vrot.slane %v2560_v54, 1  ;;  %v6271_v9 = vsel %vm633_vm0, %v2570_v48, %v2571_v5 }
 0x26c   : > { %v2567_v2 = vrot.slane %v2565_v12, 1  ;;  %3657 = vmatprep.mubr.bf16.mxu0 %v6271_v9 }
 0x26d   : > { %3377 = vmatmul.mubr.bf16.vlgmr.msra.gmra.mrb[64].mxu1 %v2486_v41  ;;  %v2563_v0 = vor.u32 %v2562_v53, %v2558_v51  ;;  %v5035_v41 = vld [vmem:[%s6874_s3 + $0x1e8] sm:$0xff]  }
 0x26e   : > { %4690 = vmatpush3.bf16.msra.mxu1 %v5021_v47  ;;  %3384 = vmatprep.mubr.bf16.mxu1 %v6273_v8 }
 0x26f   : > { %4691 = vmatprep.subr.bf16.mxu1 %v5027_v29  ;;  %v6284_v16 = vsel %vm408_vm1, %v2563_v0, %v2567_v2  ;;  %v6319_v2 = vld [vmem:[#allocation2 + $0x30] sm:$0xff]   ;;  %v5036_v0 = vld [vmem:[%s6874_s3 + $0x1a8] sm:$0xff]  }
 0x270   : > { %3658 = vmatmul.mubr.bf16.gmra.mrb[124].mxu0 %v6284_v16 }
 0x271   : > { %4841 = vmatprep.mubr.bf16.mxu0 %v5922_v59 }
 0x272   : > { %4692 = vmatpush3.bf16.msra.mxu1 %v5028_v11 }
 0x273   : > { %4693 = vmatprep.subr.bf16.mxu1 %v5029_v15  ;;  %v5037_v15 = vld [vmem:[%s6874_s3 + $0x1f0] sm:$0xff]  }
 0x275   : > { %3385 = vmatmul.mubr.bf16.gmra.mrb[68].mxu1 %v5904_v20  ;;  %v5034_v20 = vld [vmem:[%s6874_s3 + $0x1a0] sm:$0xff]  }
 0x276   : > { %3392 = vmatprep.mubr.bf16.mxu1 %v6295_v32  ;;  %4694 = vmatpush3.bf16.msra.mxu1 %v5030_v31  ;;  %v5038_v31 = vld [vmem:[%s6874_s3 + $0x1b0] sm:$0xff]  }
 0x277   : > { %4695 = vmatprep.subr.bf16.mxu1 %v5031_v28 }
 0x278   : > { %4842 = vmatmul.mubr.bf16.vlgmr.msra.gmra.mrb[128].mxu0 %v5938_v37 }
 0x279   : > { %4845 = vmatprep.mubr.bf16.mxu0 %v5957_v35 }
 0x27a   : > { %v4593_v23 = vpop.f32.mrb[64].mxu0  ;;  %4696 = vmatpush3.bf16.msra.mxu1 %v5032_v19 }
 0x27b   : > { %v4375_v33 = vpop.f32.mrb[4].mxu1  ;;  %v4594_v52 = vpop.f32.mrb[65].mxu0  ;;  %4697 = vmatprep.subr.bf16.mxu1 %v5033_v26  ;;  %v5039_v26 = vld [vmem:[%s6874_s3 + $0x1f8] sm:$0xff]  }
 0x27c   : > { %v6312_v47 = vadd.f32 %v4594_v52, %v4593_v23  ;;  %v4376_v48 = vpop.f32.mrb[5].mxu1  ;;  %v4596_v51 = vpop.f32.mrb[66].mxu0 }
 0x27d   : > { %v6314_v54 = vadd.f32 %v4376_v48, %v4375_v33  ;;  %v4378_v5 = vpop.f32.mrb[6].mxu1  ;;  %v4597_v12 = vpop.f32.mrb[67].mxu0  ;;  %3393 = vmatmul.mubr.bf16.gmra.mrb[72].mxu1 %v5922_v59 }
 0x27e   : > { %v6317_v29 = vadd.f32 %v4597_v12, %v4596_v51  ;;  %v4379_v53 = vpop.f32.mrb[7].mxu1  ;;  %3400 = vmatprep.mubr.bf16.mxu1 %v6319_v2  ;;  %4698 = vmatpush3.bf16.msra.mxu1 %v5034_v20  ;;  %v6345_v12 = vld [vmem:[#allocation2 + $0x3c] sm:$0xff]  }
 0x27f   : > { %v6325_v11 = vadd.f32 %v4379_v53, %v4378_v5  ;;  %4699 = vmatprep.subr.bf16.mxu1 %v5035_v41  ;;  %v5040_v53 = vld [vmem:[%s6874_s3 + $0x1b8] sm:$0xff]  }
 0x280   : > { %4846 = vmatmul.mubr.bf16.gmra.mrb[132].mxu0 %v5984_v27 }
 0x281   : > { %4849 = vmatprep.mubr.bf16.mxu0 %v6009_v18 }
 0x282   : > { %v4599_v59 = vpop.f32.mrb[68].mxu0  ;;  %4700 = vmatpush3.bf16.msra.mxu1 %v5036_v0 }
 0x283   : > { %v4381_v28 = vpop.f32.mrb[8].mxu1  ;;  %v4600_v19 = vpop.f32.mrb[69].mxu0  ;;  %4701 = vmatprep.subr.bf16.mxu1 %v5037_v15 }
 0x284   : > { %v6338_v23 = vadd.f32 %v4600_v19, %v4599_v59  ;;  %v4382_v20 = vpop.f32.mrb[9].mxu1  ;;  %v4602_v33 = vpop.f32.mrb[70].mxu0 }
 0x285   : > { %v6340_v52 = vadd.f32 %v4382_v20, %v4381_v28  ;;  %v4384_v41 = vpop.f32.mrb[10].mxu1  ;;  %v4603_v48 = vpop.f32.mrb[71].mxu0  ;;  %3401 = vmatmul.mubr.bf16.gmra.mrb[76].mxu1 %v5938_v37  ;;  %v6356_v37 = vld [vmem:[#allocation2 + $0x48] sm:$0xff]  }
 0x286   : > { %v6343_v51 = vadd.f32 %v4603_v48, %v4602_v33  ;;  %v4385_v5 = vpop.f32.mrb[11].mxu1  ;;  %3408 = vmatprep.mubr.bf16.mxu1 %v6345_v12  ;;  %4702 = vmatpush3.bf16.msra.mxu1 %v5038_v31 }
 0x287   : > { %v6351_v0 = vadd.f32 %v4385_v5, %v4384_v41  ;;  %4703 = vmatprep.subr.bf16.mxu1 %v5039_v26 }
 0x288   : > { %4850 = vmatmul.mubr.bf16.gmra.mrb[136].mxu0 %v6051_v39 }
 0x289   : > { %4853 = vmatprep.mubr.bf16.mxu0 %v6079_v34 }
 0x28a   : > { %4704 = vmatpush3.bf16.msra.mxu1 %v5040_v53  ;;  %v6370_v53 = vld [vmem:[#allocation2 + $0x54] sm:$0xff]  }
 0x28d   : > { %3409 = vmatmul.mubr.bf16.gmra.mrb[80].mxu1 %v5957_v35 }
 0x28e   : > { %3416 = vmatprep.mubr.bf16.mxu1 %v6356_v37 }
 0x28f   : > { %v4605_v15 = vpop.f32.mrb[72].mxu0 }
 0x290   : > { %v4387_v59 = vpop.f32.mrb[12].mxu1  ;;  %v4606_v31 = vpop.f32.mrb[73].mxu0  ;;  %4854 = vmatmul.mubr.bf16.gmra.mrb[140].mxu0 %v6106_v3 }
 0x291   : > { %v6359_v28 = vadd.f32 %v4606_v31, %v4605_v15  ;;  %v4388_v19 = vpop.f32.mrb[13].mxu1  ;;  %v4608_v20 = vpop.f32.mrb[74].mxu0  ;;  %4857 = vmatprep.mubr.bf16.mxu0 %v6130_v61 }
 0x292   : > { %v6362_v26 = vadd.f32 %v4388_v19, %v4387_v59  ;;  %v4390_v33 = vpop.f32.mrb[14].mxu1  ;;  %v4609_v41 = vpop.f32.mrb[75].mxu0 }
 0x293   : > { %v6365_v35 = vadd.f32 %v4609_v41, %v4608_v20  ;;  %v4391_v48 = vpop.f32.mrb[15].mxu1 }
 0x294   : > { %6884 = vst [vmem:[#allocation3_spill] sm:$0xff] %v6362_v26  ;;  %v6367_v5 = vadd.f32 %v4391_v48, %v4390_v33 }
 0x295   : > { %6885 = vst [vmem:[#allocation4_spill] sm:$0xff] %v6365_v35  ;;  %3417 = vmatmul.mubr.bf16.gmra.mrb[84].mxu1 %v5984_v27 }
 0x296   : > { %6886 = vst [vmem:[#allocation5_spill] sm:$0xff] %v6367_v5  ;;  %3424 = vmatprep.mubr.bf16.mxu1 %v6370_v53 }
 0x298   : > { %4858 = vmatmul.mubr.bf16.gmra.mrb[144].mxu0 %v6157_v7 }
 0x299   : > { %4861 = vmatprep.mubr.bf16.mxu0 %v6176_v24 }
 0x29b   : > { %v4611_v15 = vpop.f32.mrb[76].mxu0 }
 0x29c   : > { %v4393_v59 = vpop.f32.mrb[16].mxu1  ;;  %v4612_v31 = vpop.f32.mrb[77].mxu0 }
 0x29d   : > { %3425 = vmatmul.mubr.bf16.gmra.mrb[88].mxu1 %v6009_v18  ;;  %v6376_v19 = vadd.f32 %v4612_v31, %v4611_v15  ;;  %v4394_v20 = vpop.f32.mrb[17].mxu1  ;;  %v4614_v33 = vpop.f32.mrb[78].mxu0 }
 0x29e   : > { %3432 = vmatprep.mubr.bf16.mxu1 %v6069_v14  ;;  %v6379_v27 = vadd.f32 %v4394_v20, %v4393_v59  ;;  %v4396_v41 = vpop.f32.mrb[18].mxu1  ;;  %v4615_v48 = vpop.f32.mrb[79].mxu0 }
 0x29f   : > { %v6381_v5 = vadd.f32 %v4615_v48, %v4614_v33  ;;  %v4397_v26 = vpop.f32.mrb[19].mxu1 }
 0x2a0   : > { %v6383_v35 = vadd.f32 %v4397_v26, %v4396_v41  ;;  %4862 = vmatmul.mubr.bf16.gmra.mrb[148].mxu0 %v6203_v38 }
 0x2a1   : > { %4865 = vmatprep.mubr.bf16.mxu0 %v6222_v43 }
 0x2a5   : > { %3433 = vmatmul.mubr.bf16.gmra.mrb[92].mxu1 %v6051_v39 }
 0x2a6   : > { %3440 = vmatprep.mubr.bf16.mxu1 %v6094_v4 }
 0x2a8   : > { %4866 = vmatmul.mubr.bf16.gmra.mrb[152].mxu0 %v6249_v17 }
 0x2a9   : > { %4869 = vmatprep.mubr.bf16.mxu0 %v6271_v9 }
 0x2ab   : > { %v4617_v18 = vpop.f32.mrb[80].mxu0 }
 0x2ac   : > { %v4399_v14 = vpop.f32.mrb[20].mxu1  ;;  %v4618_v15 = vpop.f32.mrb[81].mxu0 }
 0x2ad   : > { %v6391_v59 = vadd.f32 %v4618_v15, %v4617_v18  ;;  %v4400_v31 = vpop.f32.mrb[21].mxu1  ;;  %3441 = vmatmul.mubr.bf16.gmra.mrb[96].mxu1 %v6079_v34  ;;  %v4620_v26 = vpop.f32.mrb[82].mxu0 }
 0x2ae   : > { %v6394_v20 = vadd.f32 %v4400_v31, %v4399_v14  ;;  %v4402_v33 = vpop.f32.mrb[22].mxu1  ;;  %3448 = vmatprep.mubr.bf16.mxu1 %v6122_v36  ;;  %v4621_v39 = vpop.f32.mrb[83].mxu0 }
 0x2af   : > { %6887 = vst [vmem:[#allocation6_spill] sm:$0xff] %v6391_v59  ;;  %v6397_v4 = vadd.f32 %v4621_v39, %v4620_v26  ;;  %v4403_v41 = vpop.f32.mrb[23].mxu1 }
 0x2b0   : > { %6888 = vst [vmem:[#allocation7_spill] sm:$0xff] %v6394_v20  ;;  %v6399_v48 = vadd.f32 %v4403_v41, %v4402_v33 }
 0x2b5   : > { %3449 = vmatmul.mubr.bf16.gmra.mrb[100].mxu1 %v6106_v3 }
 0x2b6   : > { %3456 = vmatprep.mubr.bf16.mxu1 %v6145_v50 }
 0x2b7   : > { %v4623_v9 = vpop.f32.mrb[84].mxu0 }
 0x2b8   : > { %v4405_v18 = vpop.f32.mrb[24].mxu1  ;;  %v4624_v15 = vpop.f32.mrb[85].mxu0 }
 0x2b9   : > { %v6403_v34 = vadd.f32 %v4624_v15, %v4623_v9  ;;  %v4406_v14 = vpop.f32.mrb[25].mxu1  ;;  %v4626_v31 = vpop.f32.mrb[86].mxu0 }
 0x2ba   : > { %v6405_v20 = vadd.f32 %v4406_v14, %v4405_v18  ;;  %v4408_v36 = vpop.f32.mrb[26].mxu1  ;;  %v4627_v59 = vpop.f32.mrb[87].mxu0 }
 0x2bb   : > { %v6407_v26 = vadd.f32 %v4627_v59, %v4626_v31  ;;  %v4409_v39 = vpop.f32.mrb[27].mxu1 }
 0x2bc   : > { %6889 = vst [vmem:[#allocation8_spill] sm:$0xff] %v6405_v20  ;;  %v6409_v33 = vadd.f32 %v4409_v39, %v4408_v36 }
 0x2bd   : > { %3457 = vmatmul.mubr.bf16.gmra.mrb[104].mxu1 %v6130_v61 }
 0x2be   : > { %6890 = vst [vmem:[#allocation9_spill] sm:$0xff] %v6409_v33  ;;  %3464 = vmatprep.mubr.bf16.mxu1 %v6168_v44 }
 0x2c5   : > { %3465 = vmatmul.mubr.bf16.gmra.mrb[108].mxu1 %v6157_v7 }
 0x2c6   : > { %3472 = vmatprep.mubr.bf16.mxu1 %v6191_v57 }
 0x2c7   : > { %v4629_v3 = vpop.f32.mrb[88].mxu0 }
 0x2c8   : > { %v4411_v41 = vpop.f32.mrb[28].mxu1  ;;  %v4630_v9 = vpop.f32.mrb[89].mxu0 }
 0x2c9   : > { %v6415_v18 = vadd.f32 %v4630_v9, %v4629_v3  ;;  %v4412_v15 = vpop.f32.mrb[29].mxu1  ;;  %v4632_v14 = vpop.f32.mrb[90].mxu0 }
 0x2ca   : > { %v6417_v59 = vadd.f32 %v4412_v15, %v4411_v41  ;;  %v4414_v31 = vpop.f32.mrb[30].mxu1  ;;  %v4633_v36 = vpop.f32.mrb[91].mxu0 }
 0x2cb   : > { %6891 = vst [vmem:[#allocation10_spill] sm:$0xff] %v6415_v18  ;;  %v6419_v39 = vadd.f32 %v4633_v36, %v4632_v14  ;;  %v4415_v61 = vpop.f32.mrb[31].mxu1 }
 0x2cc   : > { %6892 = vst [vmem:[#allocation11_spill] sm:$0xff] %v6417_v59  ;;  %v6421_v33 = vadd.f32 %v4415_v61, %v4414_v31 }
 0x2cd   : > { %6893 = vst [vmem:[#allocation12_spill] sm:$0xff] %v6419_v39  ;;  %3473 = vmatmul.mubr.bf16.gmra.mrb[112].mxu1 %v6176_v24 }
 0x2ce   : > { %6894 = vst [vmem:[#allocation13_spill] sm:$0xff] %v6421_v33  ;;  %3480 = vmatprep.mubr.bf16.mxu1 %v6214_v1 }
 0x2d3   : > { %v4635_v7 = vpop.f32.mrb[92].mxu0 }
 0x2d4   : > { %v4417_v20 = vpop.f32.mrb[32].mxu1  ;;  %v4636_v3 = vpop.f32.mrb[93].mxu0 }
 0x2d5   : > { %3481 = vmatmul.mubr.bf16.gmra.mrb[116].mxu1 %v6203_v38  ;;  %v6426_v9 = vadd.f32 %v4636_v3, %v4635_v7  ;;  %v4418_v41 = vpop.f32.mrb[33].mxu1  ;;  %v4638_v15 = vpop.f32.mrb[94].mxu0  ;;  %v6437_v38 = vld [vmem:[#allocation2 + $0xcc] sm:$0xff]   ;;  %v6439_v7 = vld [vmem:[#allocation2 + $0xd4] ss:$0 sps:$4 sm:$0x11]  }
 0x2d6   : > { %3488 = vmatprep.mubr.bf16.mxu1 %v6237_v21  ;;  %v6429_v14 = vadd.f32 %v4418_v41, %v4417_v20  ;;  %v4420_v36 = vpop.f32.mrb[34].mxu1  ;;  %v4639_v31 = vpop.f32.mrb[95].mxu0  ;;  %v2596_v3 = vrot.slane %v6437_v38, 1  ;;  %v2597_v20 = vrot.slane %v6439_v7, 1 }
 0x2d7   : > { %6895 = vst [vmem:[#allocation14_spill] sm:$0xff] %v6426_v9  ;;  %v6431_v61 = vadd.f32 %v4639_v31, %v4638_v15  ;;  %v4421_v24 = vpop.f32.mrb[35].mxu1 }
 0x2d8   : > { %6896 = vst [vmem:[#allocation15_spill] sm:$0xff] %v6429_v14  ;;  %v6433_v33 = vadd.f32 %v4421_v24, %v4420_v36  ;;  %v2598_v14 = vsel %vm633_vm0, %v2596_v3, %v2597_v20 }
 0x2d9   : > { %6897 = vst [vmem:[#allocation16_spill] sm:$0xff] %v6431_v61  ;;  %4870 = vmatmul.mubr.bf16.gmra.mrb[156].mxu0 %v2598_v14 }
 0x2da   : > { %6898 = vst [vmem:[#allocation17_spill] sm:$0xff] %v6433_v33 }
 0x2dd   : > { %3489 = vmatmul.mubr.bf16.gmra.mrb[120].mxu1 %v6222_v43 }
 0x2de   : > { %3496 = vmatprep.mubr.bf16.mxu1 %v6258_v55 }
 0x2e3   : > { %v4641_v41 = vpop.f32.mrb[96].mxu0 }
 0x2e4   : > { %v4423_v15 = vpop.f32.mrb[36].mxu1  ;;  %v4642_v31 = vpop.f32.mrb[97].mxu0 }
 0x2e5   : > { %v6444_v36 = vadd.f32 %v4642_v31, %v4641_v41  ;;  %v4424_v24 = vpop.f32.mrb[37].mxu1  ;;  %3497 = vmatmul.mubr.bf16.gmra.mrb[124].mxu1 %v6249_v17  ;;  %v4644_v43 = vpop.f32.mrb[98].mxu0 }
 0x2e6   : > { %v6447_v33 = vadd.f32 %v4424_v24, %v4423_v15  ;;  %v4426_v61 = vpop.f32.mrb[38].mxu1  ;;  %v4645_v9 = vpop.f32.mrb[99].mxu0  ;;  %3698 = vmatprep.mubr.bf16.mxu1 %v5927_v22 }
 0x2e7   : > { %v6450_v59 = vadd.f32 %v4645_v9, %v4644_v43  ;;  %v4427_v39 = vpop.f32.mrb[39].mxu1 }
 0x2e8   : > { %v6452_v18 = vadd.f32 %v4427_v39, %v4426_v61 }
 0x2ed   : > { %3699 = vmatmul.mubr.bf16.vlgmr.msra.gmra.mrb[128].mxu1 %v6273_v8 }
 0x2ee   : > { %3706 = vmatprep.mubr.bf16.mxu1 %v5950_v46 }
 0x2ef   : > { %v4647_v14 = vpop.f32.mrb[100].mxu0 }
 0x2f0   : > { %v4429_v3 = vpop.f32.mrb[40].mxu1  ;;  %v4648_v20 = vpop.f32.mrb[101].mxu0 }
 0x2f1   : > { %v6456_v17 = vadd.f32 %v4648_v20, %v4647_v14  ;;  %v4430_v41 = vpop.f32.mrb[41].mxu1  ;;  %v4650_v15 = vpop.f32.mrb[102].mxu0 }
 0x2f2   : > { %v6458_v31 = vadd.f32 %v4430_v41, %v4429_v3  ;;  %v4432_v24 = vpop.f32.mrb[42].mxu1  ;;  %v4651_v22 = vpop.f32.mrb[103].mxu0 }
 0x2f3   : > { %v6460_v9 = vadd.f32 %v4651_v22, %v4650_v15  ;;  %v4433_v43 = vpop.f32.mrb[43].mxu1 }
 0x2f4   : > { %v6462_v39 = vadd.f32 %v4433_v43, %v4432_v24 }
 0x2f5   : > { %3707 = vmatmul.mubr.bf16.gmra.mrb[132].mxu1 %v6295_v32 }
 0x2f6   : > { %3714 = vmatprep.mubr.bf16.mxu1 %v5973_v30 }
 0x2fd   : > { %3715 = vmatmul.mubr.bf16.gmra.mrb[136].mxu1 %v6319_v2 }
 0x2fe   : > { %3722 = vmatprep.mubr.bf16.mxu1 %v5996_v10 }
 0x2ff   : > { %v4653_v46 = vpop.f32.mrb[104].mxu0 }
 0x300   : > { %v4435_v8 = vpop.f32.mrb[44].mxu1  ;;  %v4654_v61 = vpop.f32.mrb[105].mxu0 }
 0x301   : > { %v6468_v14 = vadd.f32 %v4654_v61, %v4653_v46  ;;  %v4436_v3 = vpop.f32.mrb[45].mxu1  ;;  %v4656_v20 = vpop.f32.mrb[106].mxu0 }
 0x302   : > { %v6470_v41 = vadd.f32 %v4436_v3, %v4435_v8  ;;  %v4438_v15 = vpop.f32.mrb[46].mxu1  ;;  %v4657_v24 = vpop.f32.mrb[107].mxu0 }
 0x303   : > { %v6472_v22 = vadd.f32 %v4657_v24, %v4656_v20  ;;  %v4439_v32 = vpop.f32.mrb[47].mxu1 }
 0x304   : > { %v6474_v43 = vadd.f32 %v4439_v32, %v4438_v15 }
 0x305   : > { %3723 = vmatmul.mubr.bf16.gmra.mrb[140].mxu1 %v6345_v12 }
 0x306   : > { %3730 = vmatprep.mubr.bf16.mxu1 %v6028_v58 }
 0x30b   : > { %v4659_v30 = vpop.f32.mrb[108].mxu0 }
 0x30c   : > { %v4441_v10 = vpop.f32.mrb[48].mxu1  ;;  %v4660_v2 = vpop.f32.mrb[109].mxu0 }
 0x30d   : > { %3731 = vmatmul.mubr.bf16.gmra.mrb[144].mxu1 %v6356_v37  ;;  %v6479_v46 = vadd.f32 %v4660_v2, %v4659_v30  ;;  %v4442_v8 = vpop.f32.mrb[49].mxu1  ;;  %v4662_v61 = vpop.f32.mrb[110].mxu0 }
 0x30e   : > { %3738 = vmatprep.mubr.bf16.mxu1 %v6060_v42  ;;  %v6482_v3 = vadd.f32 %v4442_v8, %v4441_v10  ;;  %v4444_v20 = vpop.f32.mrb[50].mxu1  ;;  %v4663_v15 = vpop.f32.mrb[111].mxu0  ;;  %v5053_v10 = vld [vmem:[#allocation2 + $0x60] sm:$0xff]  }
 0x30f   : > { %6899 = vst [vmem:[#allocation18_spill] sm:$0xff] %v6479_v46  ;;  %v6484_v24 = vadd.f32 %v4663_v15, %v4662_v61  ;;  %v4445_v12 = vpop.f32.mrb[51].mxu1 }
 0x310   : > { %v6486_v32 = vadd.f32 %v4445_v12, %v4444_v20 }
 0x312   : > { %6900 = vst [vmem:[#allocation19_spill] sm:$0xff] %v6486_v32 }
 0x315   : > { %3739 = vmatmul.mubr.bf16.gmra.mrb[148].mxu1 %v6370_v53 }
 0x316   : > { %3746 = vmatprep.mubr.bf16.mxu1 %v6089_v45  ;;  %v5054_v45 = vld [vmem:[#allocation2 + $0x6c] sm:$0xff]  }
 0x31b   : > { %v4665_v58 = vpop.f32.mrb[112].mxu0 }
 0x31c   : > { %v4447_v37 = vpop.f32.mrb[52].mxu1  ;;  %v4666_v30 = vpop.f32.mrb[113].mxu0 }
 0x31d   : > { %v6490_v2 = vadd.f32 %v4666_v30, %v4665_v58  ;;  %v4448_v46 = vpop.f32.mrb[53].mxu1  ;;  %v4668_v42 = vpop.f32.mrb[114].mxu0  ;;  %3747 = vmatmul.mubr.bf16.gmra.mrb[152].mxu1 %v5053_v10 }
 0x31e   : > { %v6492_v8 = vadd.f32 %v4448_v46, %v4447_v37  ;;  %v4450_v61 = vpop.f32.mrb[54].mxu1  ;;  %v4669_v15 = vpop.f32.mrb[115].mxu0  ;;  %3754 = vmatprep.mubr.bf16.mxu1 %v6117_v40 }
 0x31f   : > { %6901 = vst [vmem:[#allocation20_spill] sm:$0xff] %v6490_v2  ;;  %v6495_v20 = vadd.f32 %v4669_v15, %v4668_v42  ;;  %v4451_v53 = vpop.f32.mrb[55].mxu1 }
 0x320   : > { %6902 = vst [vmem:[#allocation21_spill] sm:$0xff] %v6492_v8  ;;  %v6497_v12 = vadd.f32 %v4451_v53, %v4450_v61  ;;  %v5055_v53 = vld [vmem:[#allocation2 + $0x78] sm:$0xff]  }
 0x325   : > { %3755 = vmatmul.mubr.bf16.gmra.mrb[156].mxu1 %v5054_v45 }
 0x326   : > { %3762 = vmatprep.mubr.bf16.mxu1 %v6140_v63 }
 0x327   : > { %v4671_v58 = vpop.f32.mrb[116].mxu0 }
 0x328   : > { %v4453_v30 = vpop.f32.mrb[56].mxu1  ;;  %v4672_v2 = vpop.f32.mrb[117].mxu0 }
 0x329   : > { %v6500_v32 = vadd.f32 %v4672_v2, %v4671_v58  ;;  %v4454_v46 = vpop.f32.mrb[57].mxu1  ;;  %v4674_v37 = vpop.f32.mrb[118].mxu0 }
 0x32a   : > { %v6502_v10 = vadd.f32 %v4454_v46, %v4453_v30  ;;  %v4456_v8 = vpop.f32.mrb[58].mxu1  ;;  %v4675_v40 = vpop.f32.mrb[119].mxu0 }
 0x32b   : > { %v6504_v42 = vadd.f32 %v4675_v40, %v4674_v37  ;;  %v4457_v15 = vpop.f32.mrb[59].mxu1 }
 0x32c   : > { %v6506_v61 = vadd.f32 %v4457_v15, %v4456_v8 }
 0x32d   : > { %3763 = vmatmul.mubr.bf16.gmra.mrb[160].mxu1 %v5055_v53 }
 0x32e   : > { %6903 = vst [vmem:[#allocation22_spill] sm:$0xff] %v6506_v61  ;;  %3770 = vmatprep.mubr.bf16.mxu1 %v6163_v49  ;;  %v6524_v49 = vld [vmem:[%s6875_s4] ss:$0 sm:$0xff] }
 0x335   : > { %3771 = vmatmul.mubr.bf16.gmra.mrb[164].mxu1 %v6145_v50 }
 0x336   : > { %3778 = vmatprep.mubr.bf16.mxu1 %v6186_v6 }
 0x337   : > { %v4677_v63 = vpop.f32.mrb[120].mxu0 }
 0x338   : > { %v4459_v2 = vpop.f32.mrb[60].mxu1  ;;  %v4678_v45 = vpop.f32.mrb[121].mxu0 }
 0x339   : > { %v6511_v58 = vadd.f32 %v4678_v45, %v4677_v63  ;;  %v4460_v30 = vpop.f32.mrb[61].mxu1  ;;  %v4680_v46 = vpop.f32.mrb[122].mxu0  ;;  %v3218_v63 = vadd.f32 %v6067_v62, %v6524_v49 }
 0x33a   : > { %v6513_v37 = vadd.f32 %v4460_v30, %v4459_v2  ;;  %v4462_v40 = vpop.f32.mrb[62].mxu1  ;;  %v4681_v8 = vpop.f32.mrb[123].mxu0 }
 0x33b   : > { %v6515_v15 = vadd.f32 %v4681_v8, %v4680_v46  ;;  %v4463_v53 = vpop.f32.mrb[63].mxu1  ;;  %v3221_v46 = vadd.f32 %v6073_v13, %v6524_v49 }
 0x33c   : > { %6904 = vst [vmem:[#allocation23_spill] sm:$0xff] %v6513_v37  ;;  %v6517_v61 = vadd.f32 %v4463_v53, %v4462_v40 }
 0x33d   : > { %6905 = vst [vmem:[#allocation24_spill] sm:$0xff] %v6515_v15  ;;  %3779 = vmatmul.mubr.bf16.gmra.mrb[168].mxu1 %v6168_v44 }
 0x33e   : > { %6906 = vst [vmem:[#allocation25_spill] sm:$0xff] %v6517_v61  ;;  %3786 = vmatprep.mubr.bf16.mxu1 %v6209_v56 }
 0x340   : > { %v4481_v50 = vpop.f32.mrb[64].mxu1 }
 0x341   : > { %v4482_v6 = vpop.f32.mrb[65].mxu1 }
 0x342   : > { %v4483_v2 = vadd.f32 %v4482_v6, %v4481_v50  ;;  %v4484_v45 = vpop.f32.mrb[66].mxu1 }
 0x343   : > { %v4485_v30 = vpop.f32.mrb[67].mxu1  ;;  %v4683_v8 = vpop.f32.mrb[124].mxu0 }
 0x344   : > { %v3379_v40 = vadd.f32 %v4483_v2, %v3218_v63  ;;  %v4486_v44 = vadd.f32 %v4485_v30, %v4484_v45  ;;  %v4684_v56 = vpop.f32.mrb[125].mxu0  ;;  %v3229_v30 = vadd.f32 %v6325_v11, %v6524_v49  ;;  %v2586_v11 = vshll.u32 %v6437_v38, 16 }
 0x345   : > { %3787 = vmatmul.mubr.bf16.gmra.mrb[172].mxu1 %v6191_v57  ;;  %v6532_v61 = vadd.f32 %v4684_v56, %v4683_v8  ;;  %v4686_v37 = vpop.f32.mrb[126].mxu0  ;;  %v3226_v57 = vadd.f32 %v6314_v54, %v6524_v49 }
 0x346   : > { %v3382_v53 = vadd.f32 %v4486_v44, %v3221_v46  ;;  %3794 = vmatprep.mubr.bf16.mxu1 %v6232_v60  ;;  %v6535_v62 = vadd.f32 %v6312_v47, %v3379_v40  ;;  %v4687_v50 = vpop.f32.mrb[127].mxu0 }
 0x347   : > { %v6537_v15 = vadd.f32 %v4687_v50, %v4686_v37 }
 0x348   : > { %v4487_v6 = vpop.f32.mrb[68].mxu1  ;;  %v6540_v13 = vadd.f32 %v6317_v29, %v3382_v53 }
 0x349   : > { %v4488_v63 = vpop.f32.mrb[69].mxu1 }
 0x34a   : > { %v4489_v2 = vadd.f32 %v4488_v63, %v4487_v6  ;;  %v4490_v45 = vpop.f32.mrb[70].mxu1 }
 0x34b   : > { %v4491_v60 = vpop.f32.mrb[71].mxu1  ;;  %v6546_v40 = vpop.f32.mrb[128].mxu0 }
 0x34c   : > { %v3387_v46 = vadd.f32 %v4489_v2, %v3226_v57  ;;  %v4492_v47 = vadd.f32 %v4491_v60, %v4490_v45  ;;  %v6549_v37 = vpop.f32.mrb[129].mxu0  ;;  %v2584_v57 = vshrl.u32 %v6437_v38, 16  ;;  %v2588_v2 = vrot.slane %v2586_v11, 1 }
 0x34d   : > { %3795 = vmatmul.mubr.bf16.gmra.mrb[176].mxu1 %v6214_v1  ;;  %v6552_v44 = vpop.f32.mrb[130].mxu0  ;;  %v3234_v1 = vadd.f32 %v6340_v52, %v6524_v49  ;;  %v3237_v45 = vadd.f32 %v6351_v0, %v6524_v49 }
 0x34e   : > { %v3390_v29 = vadd.f32 %v4492_v47, %v3229_v30  ;;  %3802 = vmatprep.mubr.bf16.mxu1 %v6253_v25  ;;  %v6555_v54 = vadd.f32 %v6338_v23, %v3387_v46  ;;  %v6557_v8 = vpop.f32.mrb[131].mxu0  ;;  %v2591_v23 = vshll.u32 %v6439_v7, 16  ;;  %v2589_v11 = vor.u32 %v2588_v2, %v2584_v57 }
 0x350   : > { %v4493_v56 = vpop.f32.mrb[72].mxu1  ;;  %v6561_v53 = vadd.f32 %v6343_v51, %v3390_v29  ;;  %v2593_v0 = vrot.slane %v2591_v23, 1 }
 0x351   : > { %v4494_v50 = vpop.f32.mrb[73].mxu1 }
 0x352   : > { %v4495_v6 = vadd.f32 %v4494_v50, %v4493_v56  ;;  %v4496_v63 = vpop.f32.mrb[74].mxu1  ;;  %v6909_v50 = vld [vmem:[#allocation4_spill] sm:$0xff] }
 0x353   : > { %v4497_v25 = vpop.f32.mrb[75].mxu1  ;;  %v6569_v46 = vpop.f32.mrb[132].mxu0 }
 0x354   : > { %v3395_v60 = vadd.f32 %v4495_v6, %v3234_v1  ;;  %v4498_v30 = vadd.f32 %v4497_v25, %v4496_v63  ;;  %6907 = vst [vmem:[#allocation26_spill] sm:$0xff] %v6569_v46  ;;  %v6572_v51 = vpop.f32.mrb[133].mxu0 }
 0x355   : > { %3803 = vmatmul.mubr.bf16.gmra.mrb[180].mxu1 %v6237_v21  ;;  %v6575_v47 = vpop.f32.mrb[134].mxu0  ;;  %v6910_v21 = vld [vmem:[#allocation3_spill] sm:$0xff] }
 0x356   : > { %v3398_v52 = vadd.f32 %v4498_v30, %v3237_v45  ;;  %3810 = vmatprep.mubr.bf16.mxu1 %v6284_v16  ;;  %6908 = vst [vmem:[#allocation27_spill] sm:$0xff] %v6575_v47  ;;  %v6578_v29 = vadd.f32 %v6359_v28, %v3395_v60  ;;  %v6580_v7 = vpop.f32.mrb[135].mxu0  ;;  %v3242_v63 = vadd.f32 %v6910_v21, %v6524_v49  ;;  %v6911_v28 = vld [vmem:[#allocation5_spill] sm:$0xff] }
 0x357   : > { %v2594_v30 = vsel %vm408_vm1, %v2589_v11, %v2593_v0  ;;  %v3245_v60 = vadd.f32 %v6911_v28, %v6524_v49  ;;  %v3250_v21 = vadd.f32 %v6379_v27, %v6524_v49  ;;  %v6915_v28 = vld [vmem:[#allocation6_spill] sm:$0xff] }
 0x358   : > { %v4499_v56 = vpop.f32.mrb[76].mxu1  ;;  %v6583_v1 = vadd.f32 %v6909_v50, %v3398_v52 }
 0x359   : > { %v4500_v6 = vpop.f32.mrb[77].mxu1 }
 0x35a   : > { %v4501_v25 = vadd.f32 %v4500_v6, %v4499_v56  ;;  %v4502_v45 = vpop.f32.mrb[78].mxu1 }
 0x35b   : > { %v4503_v16 = vpop.f32.mrb[79].mxu1  ;;  %v6590_v57 = vpop.f32.mrb[136].mxu0 }
 0x35c   : > { %v3403_v47 = vadd.f32 %v4501_v25, %v3242_v63  ;;  %v4504_v46 = vadd.f32 %v4503_v16, %v4502_v45  ;;  %v6593_v2 = vpop.f32.mrb[137].mxu0 }
 0x35d   : > { %3811 = vmatmul.mubr.bf16.gmra.mrb[184].mxu1 %v6258_v55  ;;  %v6595_v52 = vpop.f32.mrb[138].mxu0 }
 0x35e   : > { %v3406_v23 = vadd.f32 %v4504_v46, %v3245_v60  ;;  %3818 = vmatprep.mubr.bf16.mxu1 %v2594_v30  ;;  %v6598_v56 = vadd.f32 %v6376_v19, %v3403_v47  ;;  %v6600_v50 = vpop.f32.mrb[139].mxu0  ;;  %v3253_v46 = vadd.f32 %v6383_v35, %v6524_v49 }
 0x360   : > { %v4505_v11 = vpop.f32.mrb[80].mxu1  ;;  %v6603_v0 = vadd.f32 %v6381_v5, %v3406_v23 }
 0x361   : > { %v4506_v6 = vpop.f32.mrb[81].mxu1 }
 0x362   : > { %v4507_v55 = vadd.f32 %v4506_v6, %v4505_v11  ;;  %v4508_v63 = vpop.f32.mrb[82].mxu1  ;;  %v6917_v6 = vld [vmem:[#allocation7_spill] sm:$0xff] }
 0x363   : > { %v4509_v25 = vpop.f32.mrb[83].mxu1  ;;  %v6609_v19 = vpop.f32.mrb[140].mxu0 }
 0x364   : > { %v3411_v45 = vadd.f32 %v4507_v55, %v3250_v21  ;;  %v4510_v16 = vadd.f32 %v4509_v25, %v4508_v63  ;;  %6912 = vst [vmem:[#allocation4_spill] sm:$0xff] %v6609_v19  ;;  %v6612_v47 = vpop.f32.mrb[141].mxu0  ;;  %v3258_v21 = vadd.f32 %v6917_v6, %v6524_v49  ;;  %v3261_v25 = vadd.f32 %v6399_v48, %v6524_v49  ;;  %v6922_v48 = vld [vmem:[#allocation8_spill] sm:$0xff] }
 0x365   : > { %3819 = vmatmul.mubr.bf16.gmra.mrb[188].mxu1 %v6437_v38  ;;  %6913 = vst [vmem:[#allocation3_spill] sm:$0xff] %v6612_v47  ;;  %v6614_v30 = vpop.f32.mrb[142].mxu0 }
 0x366   : > { %v3414_v5 = vadd.f32 %v4510_v16, %v3253_v46  ;;  %6914 = vst [vmem:[#allocation5_spill] sm:$0xff] %v6614_v30  ;;  %v6617_v60 = vadd.f32 %v6915_v28, %v3411_v45  ;;  %v6619_v27 = vpop.f32.mrb[143].mxu0 }
 0x367   : > { %6916 = vst [vmem:[#allocation6_spill] sm:$0xff] %v6619_v27 }
 0x368   : > { %v4511_v23 = vpop.f32.mrb[84].mxu1  ;;  %v6622_v11 = vadd.f32 %v6397_v4, %v3414_v5 }
 0x369   : > { %v4512_v35 = vpop.f32.mrb[85].mxu1 }
 0x36a   : > { %v4513_v55 = vadd.f32 %v4512_v35, %v4511_v23  ;;  %v4514_v38 = vpop.f32.mrb[86].mxu1 }
 0x36b   : > { %v4515_v63 = vpop.f32.mrb[87].mxu1  ;;  %v6628_v45 = vpop.f32.mrb[144].mxu0 }
 0x36c   : > { %v3419_v46 = vadd.f32 %v4513_v55, %v3258_v21  ;;  %v4516_v16 = vadd.f32 %v4515_v63, %v4514_v38  ;;  %6918 = vst [vmem:[#allocation7_spill] sm:$0xff] %v6628_v45  ;;  %v6630_v28 = vpop.f32.mrb[145].mxu0  ;;  %v3266_v21 = vadd.f32 %v6922_v48, %v6524_v49 }
 0x36d   : > { %6919 = vst [vmem:[#allocation28_spill] sm:$0xff] %v6630_v28  ;;  %v6632_v19 = vpop.f32.mrb[146].mxu0 }
 0x36e   : > { %v3422_v30 = vadd.f32 %v4516_v16, %v3261_v25  ;;  %6920 = vst [vmem:[#allocation29_spill] sm:$0xff] %v6632_v19  ;;  %v6635_v4 = vadd.f32 %v6403_v34, %v3419_v46  ;;  %v6637_v5 = vpop.f32.mrb[147].mxu0  ;;  %v6923_v25 = vld [vmem:[#allocation9_spill] sm:$0xff] }
 0x36f   : > { %6921 = vst [vmem:[#allocation30_spill] sm:$0xff] %v6637_v5  ;;  %v3269_v16 = vadd.f32 %v6923_v25, %v6524_v49 }
 0x370   : > { %v4517_v23 = vpop.f32.mrb[88].mxu1  ;;  %v6640_v35 = vadd.f32 %v6407_v26, %v3422_v30  ;;  %v6927_v26 = vld [vmem:[#allocation10_spill] sm:$0xff] }
 0x371   : > { %v4518_v6 = vpop.f32.mrb[89].mxu1 }
 0x372   : > { %v4519_v55 = vadd.f32 %v4518_v6, %v4517_v23  ;;  %v4520_v38 = vpop.f32.mrb[90].mxu1  ;;  %v6930_v6 = vld [vmem:[#allocation12_spill] sm:$0xff] }
 0x373   : > { %v4521_v63 = vpop.f32.mrb[91].mxu1  ;;  %v6646_v34 = vpop.f32.mrb[148].mxu0 }
 0x374   : > { %v3427_v19 = vadd.f32 %v4519_v55, %v3266_v21  ;;  %v4522_v45 = vadd.f32 %v4521_v63, %v4520_v38  ;;  %6924 = vst [vmem:[#allocation8_spill] sm:$0xff] %v6646_v34  ;;  %v6648_v46 = vpop.f32.mrb[149].mxu0  ;;  %v6932_v21 = vld [vmem:[#allocation11_spill] sm:$0xff] }
 0x375   : > { %6925 = vst [vmem:[#allocation9_spill] sm:$0xff] %v6648_v46  ;;  %v6650_v28 = vpop.f32.mrb[150].mxu0  ;;  %v3274_v55 = vadd.f32 %v6932_v21, %v6524_v49 }
 0x376   : > { %v3430_v5 = vadd.f32 %v4522_v45, %v3269_v16  ;;  %6926 = vst [vmem:[#allocation31_spill] sm:$0xff] %v6650_v28  ;;  %v6653_v30 = vadd.f32 %v6927_v26, %v3427_v19  ;;  %v6655_v27 = vpop.f32.mrb[151].mxu0  ;;  %v6933_v45 = vld [vmem:[#allocation13_spill] sm:$0xff] }
 0x377   : > { %6929 = vst [vmem:[#allocation32_spill] sm:$0xff] %v6655_v27  ;;  %v3277_v16 = vadd.f32 %v6933_v45, %v6524_v49 }
 0x378   : > { %6928 = vst [vmem:[#allocation10_spill] sm:$0xff] %v6653_v30  ;;  %v4523_v23 = vpop.f32.mrb[92].mxu1  ;;  %v6658_v48 = vadd.f32 %v6930_v6, %v3430_v5  ;;  %v6937_v5 = vld [vmem:[#allocation14_spill] sm:$0xff] }
 0x379   : > { %v4524_v47 = vpop.f32.mrb[93].mxu1 }
 0x37a   : > { %6931 = vst [vmem:[#allocation12_spill] sm:$0xff] %v6658_v48  ;;  %v4525_v38 = vadd.f32 %v4524_v47, %v4523_v23  ;;  %v4526_v63 = vpop.f32.mrb[94].mxu1  ;;  %v6939_v23 = vld [vmem:[#allocation16_spill] sm:$0xff] }
 0x37b   : > { %v4527_v25 = vpop.f32.mrb[95].mxu1  ;;  %v6664_v19 = vpop.f32.mrb[152].mxu0 }
 0x37c   : > { %v3435_v28 = vadd.f32 %v4525_v38, %v3274_v55  ;;  %v4528_v34 = vadd.f32 %v4527_v25, %v4526_v63  ;;  %6934 = vst [vmem:[#allocation11_spill] sm:$0xff] %v6664_v19  ;;  %v6666_v26 = vpop.f32.mrb[153].mxu0  ;;  %v6940_v55 = vld [vmem:[#allocation15_spill] sm:$0xff] }
 0x37d   : > { %6935 = vst [vmem:[#allocation13_spill] sm:$0xff] %v6666_v26  ;;  %v6668_v46 = vpop.f32.mrb[154].mxu0  ;;  %v3282_v38 = vadd.f32 %v6940_v55, %v6524_v49  ;;  %v3290_v55 = vadd.f32 %v6447_v33, %v6524_v49  ;;  %v3298_v33 = vadd.f32 %v6458_v31, %v6524_v49  ;;  %v3306_v31 = vadd.f32 %v6470_v41, %v6524_v49 }
 0x37e   : > { %v3438_v27 = vadd.f32 %v4528_v34, %v3277_v16  ;;  %6936 = vst [vmem:[#allocation33_spill] sm:$0xff] %v6668_v46  ;;  %v6671_v6 = vadd.f32 %v6937_v5, %v3435_v28  ;;  %v6673_v48 = vpop.f32.mrb[155].mxu0  ;;  %v6941_v34 = vld [vmem:[#allocation17_spill] sm:$0xff]  ;;  %v3314_v41 = vadd.f32 %v6482_v3, %v6524_v49 }
 0x37f   : > { %6938 = vst [vmem:[#allocation14_spill] sm:$0xff] %v6673_v48  ;;  %v3285_v16 = vadd.f32 %v6941_v34, %v6524_v49  ;;  %v3293_v34 = vadd.f32 %v6452_v18, %v6524_v49  ;;  %v3301_v18 = vadd.f32 %v6462_v39, %v6524_v49  ;;  %v3309_v39 = vadd.f32 %v6474_v43, %v6524_v49 }
 0x380   : > { %v4529_v47 = vpop.f32.mrb[96].mxu1  ;;  %v6676_v21 = vadd.f32 %v6939_v23, %v3438_v27 }
 0x381   : > { %v4530_v30 = vpop.f32.mrb[97].mxu1 }
 0x382   : > { %v4531_v63 = vadd.f32 %v4530_v30, %v4529_v47  ;;  %v4532_v25 = vpop.f32.mrb[98].mxu1 }
 0x383   : > { %v4533_v45 = vpop.f32.mrb[99].mxu1 }
 0x384   : > { %v3443_v46 = vadd.f32 %v4531_v63, %v3282_v38  ;;  %v4534_v19 = vadd.f32 %v4533_v45, %v4532_v25 }
 0x386   : > { %v3446_v28 = vadd.f32 %v4534_v19, %v3285_v16  ;;  %v6683_v5 = vadd.f32 %v6444_v36, %v3443_v46 }
 0x388   : > { %v4535_v48 = vpop.f32.mrb[100].mxu1  ;;  %v6686_v27 = vadd.f32 %v6450_v59, %v3446_v28 }
 0x389   : > { %v4536_v23 = vpop.f32.mrb[101].mxu1 }
 0x38a   : > { %v4537_v30 = vadd.f32 %v4536_v23, %v4535_v48  ;;  %v4538_v47 = vpop.f32.mrb[102].mxu1 }
 0x38b   : > { %v4539_v26 = vpop.f32.mrb[103].mxu1 }
 0x38c   : > { %v3451_v38 = vadd.f32 %v4537_v30, %v3290_v55  ;;  %v4540_v63 = vadd.f32 %v4539_v26, %v4538_v47 }
 0x38e   : > { %v3454_v19 = vadd.f32 %v4540_v63, %v3293_v34  ;;  %v6693_v36 = vadd.f32 %v6456_v17, %v3451_v38 }
 0x390   : > { %v4541_v46 = vpop.f32.mrb[104].mxu1  ;;  %v6696_v59 = vadd.f32 %v6460_v9, %v3454_v19 }
 0x391   : > { %v4542_v25 = vpop.f32.mrb[105].mxu1 }
 0x392   : > { %v4543_v48 = vadd.f32 %v4542_v25, %v4541_v46  ;;  %v4544_v45 = vpop.f32.mrb[106].mxu1  ;;  %v6942_v25 = vld [vmem:[#allocation18_spill] sm:$0xff] }
 0x393   : > { %v4545_v16 = vpop.f32.mrb[107].mxu1 }
 0x394   : > { %v3459_v28 = vadd.f32 %v4543_v48, %v3298_v33  ;;  %v4546_v26 = vadd.f32 %v4545_v16, %v4544_v45 }
 0x396   : > { %v3462_v23 = vadd.f32 %v4546_v26, %v3301_v18  ;;  %v6703_v17 = vadd.f32 %v6468_v14, %v3459_v28  ;;  %v6943_v28 = vld [vmem:[#allocation19_spill] sm:$0xff] }
 0x397   : > { %v3317_v43 = vadd.f32 %v6943_v28, %v6524_v49 }
 0x398   : > { %v4547_v55 = vpop.f32.mrb[108].mxu1  ;;  %v6706_v9 = vadd.f32 %v6472_v22, %v3462_v23 }
 0x399   : > { %v4548_v30 = vpop.f32.mrb[109].mxu1 }
 0x39a   : > { %v4549_v47 = vadd.f32 %v4548_v30, %v4547_v55  ;;  %v4550_v34 = vpop.f32.mrb[110].mxu1  ;;  %v6944_v30 = vld [vmem:[#allocation20_spill] sm:$0xff] }
 0x39b   : > { %v4551_v38 = vpop.f32.mrb[111].mxu1 }
 0x39c   : > { %v3467_v63 = vadd.f32 %v4549_v47, %v3306_v31  ;;  %v4552_v19 = vadd.f32 %v4551_v38, %v4550_v34  ;;  %v6945_v38 = vld [vmem:[#allocation21_spill] sm:$0xff] }
 0x39d   : > { %v3322_v3 = vadd.f32 %v6945_v38, %v6524_v49 }
 0x39e   : > { %v3470_v46 = vadd.f32 %v4552_v19, %v3309_v39  ;;  %v6713_v14 = vadd.f32 %v6942_v25, %v3467_v63 }
 0x3a0   : > { %v4553_v33 = vpop.f32.mrb[112].mxu1  ;;  %v6716_v22 = vadd.f32 %v6484_v24, %v3470_v46  ;;  %v3325_v46 = vadd.f32 %v6497_v12, %v6524_v49 }
 0x3a1   : > { %v4554_v48 = vpop.f32.mrb[113].mxu1 }
 0x3a2   : > { %v4555_v45 = vadd.f32 %v4554_v48, %v4553_v33  ;;  %v4556_v16 = vpop.f32.mrb[114].mxu1 }
 0x3a3   : > { %v4557_v18 = vpop.f32.mrb[115].mxu1 }
 0x3a4   : > { %v3475_v26 = vadd.f32 %v4555_v45, %v3314_v41  ;;  %v4558_v23 = vadd.f32 %v4557_v18, %v4556_v16  ;;  %v3330_v18 = vadd.f32 %v6502_v10, %v6524_v49 }
 0x3a6   : > { %v3478_v55 = vadd.f32 %v4558_v23, %v3317_v43  ;;  %v6723_v31 = vadd.f32 %v6944_v30, %v3475_v26  ;;  %v6946_v23 = vld [vmem:[#allocation22_spill] sm:$0xff] }
 0x3a7   : > { %v3333_v12 = vadd.f32 %v6946_v23, %v6524_v49 }
 0x3a8   : > { %v4559_v47 = vpop.f32.mrb[116].mxu1  ;;  %v6726_v24 = vadd.f32 %v6495_v20, %v3478_v55 }
 0x3a9   : > { %v4560_v34 = vpop.f32.mrb[117].mxu1 }
 0x3aa   : > { %v4561_v39 = vadd.f32 %v4560_v34, %v4559_v47  ;;  %v4562_v63 = vpop.f32.mrb[118].mxu1 }
 0x3ab   : > { %v4563_v19 = vpop.f32.mrb[119].mxu1 }
 0x3ac   : > { %v3483_v25 = vadd.f32 %v4561_v39, %v3322_v3  ;;  %v4564_v33 = vadd.f32 %v4563_v19, %v4562_v63  ;;  %v6745_v34 = vpop.f32.mrb[156].mxu0  ;;  %v6947_v3 = vld [vmem:[#allocation24_spill] sm:$0xff]  ;;  %v6948_v19 = vld [vmem:[#allocation23_spill] sm:$0xff] }
 0x3ad   : > { %v6747_v38 = vpop.f32.mrb[157].mxu0 }
 0x3ae   : > { %v3486_v48 = vadd.f32 %v4564_v33, %v3325_v46  ;;  %v6733_v41 = vadd.f32 %v6500_v32, %v3483_v25  ;;  %v6752_v63 = vpop.f32.mrb[158].mxu0  ;;  %v3338_v46 = vadd.f32 %v6948_v19, %v6524_v49 }
 0x3b0   : > { %v4565_v45 = vpop.f32.mrb[120].mxu1  ;;  %v6736_v20 = vadd.f32 %v6504_v42, %v3486_v48  ;;  %v6756_v48 = vpop.f32.mrb[159].mxu0 }
 0x3b1   : > { %v4566_v16 = vpop.f32.mrb[121].mxu1 }
 0x3b2   : > { %v4567_v28 = vadd.f32 %v4566_v16, %v4565_v45  ;;  %v4568_v43 = vpop.f32.mrb[122].mxu1  ;;  %v6949_v45 = vld [vmem:[#allocation25_spill] sm:$0xff] }
 0x3b3   : > { %v4569_v26 = vpop.f32.mrb[123].mxu1  ;;  %v3341_v16 = vadd.f32 %v6949_v45, %v6524_v49 }
 0x3b4   : > { %v3491_v55 = vadd.f32 %v4567_v28, %v3330_v18  ;;  %v4570_v30 = vadd.f32 %v4569_v26, %v4568_v43 }
 0x3b6   : > { %v3494_v47 = vadd.f32 %v4570_v30, %v3333_v12  ;;  %v6743_v32 = vadd.f32 %v6511_v58, %v3491_v55 }
 0x3b8   : > { %v4571_v42 = vpop.f32.mrb[124].mxu1  ;;  %v6750_v39 = vadd.f32 %v6947_v3, %v3494_v47 }
 0x3b9   : > { %v4572_v10 = vpop.f32.mrb[125].mxu1 }
 0x3ba   : > { %v4573_v25 = vadd.f32 %v4572_v10, %v4571_v42  ;;  %v4574_v33 = vpop.f32.mrb[126].mxu1 }
 0x3bb   : > { %v4575_v58 = vpop.f32.mrb[127].mxu1 }
 0x3bc   : > { %v3499_v18 = vadd.f32 %v4573_v25, %v3338_v46  ;;  %v4576_v28 = vadd.f32 %v4575_v58, %v4574_v33 }
 0x3be   : > { %v3502_v43 = vadd.f32 %v4576_v28, %v3341_v16  ;;  %v6761_v26 = vadd.f32 %v6532_v61, %v3499_v18 }
 0x3c0   : > { %v4705_v23 = vpop.f32.mrb[128].mxu1  ;;  %v6764_v12 = vadd.f32 %v6537_v15, %v3502_v43 }
 0x3c1   : > { %v4706_v55 = vpop.f32.mrb[129].mxu1 }
 0x3c2   : > { %v4707_v30 = vadd.f32 %v4706_v55, %v4705_v23  ;;  %v4708_v47 = vpop.f32.mrb[130].mxu1 }
 0x3c3   : > { %v4709_v42 = vpop.f32.mrb[131].mxu1 }
 0x3c4   : > { %v3701_v3 = vadd.f32 %v4707_v30, %v6535_v62  ;;  %v4710_v10 = vadd.f32 %v4709_v42, %v4708_v47 }
 0x3c6   : > { %v3862_v49 = vadd.f32 %v6549_v37, %v3701_v3  ;;  %v3704_v19 = vadd.f32 %v4710_v10, %v6540_v13 }
 0x3c8   : > { %v3988_v61 = vmax.f32 %v3862_v49, 0.0  ;;  %v3865_v15 = vadd.f32 %v6557_v8, %v3704_v19  ;;  %v4711_v46 = vpop.f32.mrb[132].mxu1 }
 0x3c9   : > { %v4712_v25 = vpop.f32.mrb[133].mxu1 }
 0x3ca   : > { %4020 = vst [vmem:[%s6773_s22] sm:$0xff] %v3988_v61  ;;  %v3989_v62 = vmax.f32 %v3865_v15, 0.0  ;;  %v4713_v33 = vadd.f32 %v4712_v25, %v4711_v46  ;;  %v4714_v58 = vpop.f32.mrb[134].mxu1 }
 0x3cb   : > { %v4715_v37 = vpop.f32.mrb[135].mxu1 }
 0x3cc   : > { %4021 = vst [vmem:[%s6773_s22 + $0x8] sm:$0xff] %v3989_v62  ;;  %v3709_v13 = vadd.f32 %v4713_v33, %v6555_v54  ;;  %v4716_v45 = vadd.f32 %v4715_v37, %v4714_v58  ;;  %v6950_v33 = vld [vmem:[#allocation26_spill] sm:$0xff]  ;;  %v6951_v37 = vld [vmem:[#allocation27_spill] sm:$0xff] }
 0x3ce   : > { %v3870_v16 = vadd.f32 %v6546_v40, %v3709_v13  ;;  %v3712_v18 = vadd.f32 %v4716_v45, %v6561_v53 }
 0x3d0   : > { %v3990_v28 = vmax.f32 %v3870_v16, 0.0  ;;  %v3873_v8 = vadd.f32 %v6552_v44, %v3712_v18  ;;  %v4717_v43 = vpop.f32.mrb[136].mxu1 }
 0x3d1   : > { %v4718_v23 = vpop.f32.mrb[137].mxu1 }
 0x3d2   : > { %4022 = vst [vmem:[%s6773_s22 + $0x10] sm:$0xff] %v3990_v28  ;;  %v3991_v55 = vmax.f32 %v3873_v8, 0.0  ;;  %v4719_v30 = vadd.f32 %v4718_v23, %v4717_v43  ;;  %v4720_v47 = vpop.f32.mrb[138].mxu1 }
 0x3d3   : > { %v4721_v42 = vpop.f32.mrb[139].mxu1 }
 0x3d4   : > { %4023 = vst [vmem:[%s6773_s22 + $0x18] sm:$0xff] %v3991_v55  ;;  %v3717_v54 = vadd.f32 %v4719_v30, %v6578_v29  ;;  %v4722_v3 = vadd.f32 %v4721_v42, %v4720_v47 }
 0x3d6   : > { %v3878_v40 = vadd.f32 %v6572_v51, %v3717_v54  ;;  %v3720_v53 = vadd.f32 %v4722_v3, %v6583_v1 }
 0x3d8   : > { %v3992_v10 = vmax.f32 %v3878_v40, 0.0  ;;  %v3881_v44 = vadd.f32 %v6580_v7, %v3720_v53  ;;  %v4723_v49 = vpop.f32.mrb[140].mxu1 }
 0x3d9   : > { %v4724_v19 = vpop.f32.mrb[141].mxu1 }
 0x3da   : > { %4024 = vst [vmem:[%s6773_s22 + $0x20] sm:$0xff] %v3992_v10  ;;  %v3993_v61 = vmax.f32 %v3881_v44, 0.0  ;;  %v4725_v15 = vadd.f32 %v4724_v19, %v4723_v49  ;;  %v4726_v46 = vpop.f32.mrb[142].mxu1 }
 0x3db   : > { %v4727_v25 = vpop.f32.mrb[143].mxu1 }
 0x3dc   : > { %4025 = vst [vmem:[%s6773_s22 + $0x28] sm:$0xff] %v3993_v61  ;;  %v3725_v29 = vadd.f32 %v4725_v15, %v6598_v56  ;;  %v4728_v62 = vadd.f32 %v4727_v25, %v4726_v46 }
 0x3de   : > { %v3886_v51 = vadd.f32 %v6950_v33, %v3725_v29  ;;  %v3728_v1 = vadd.f32 %v4728_v62, %v6603_v0  ;;  %v6952_v29 = vld [vmem:[#allocation10_spill] sm:$0xff]  ;;  %v6953_v33 = vld [vmem:[#allocation3_spill] sm:$0xff] }
 0x3e0   : > { %v3994_v58 = vmax.f32 %v3886_v51, 0.0  ;;  %v3889_v7 = vadd.f32 %v6951_v37, %v3728_v1  ;;  %v4729_v13 = vpop.f32.mrb[144].mxu1  ;;  %v6954_v51 = vld [vmem:[#allocation12_spill] sm:$0xff] }
 0x3e1   : > { %v4730_v45 = vpop.f32.mrb[145].mxu1 }
 0x3e2   : > { %4026 = vst [vmem:[%s6773_s22 + $0x30] sm:$0xff] %v3994_v58  ;;  %v3995_v16 = vmax.f32 %v3889_v7, 0.0  ;;  %v4731_v18 = vadd.f32 %v4730_v45, %v4729_v13  ;;  %v4732_v28 = vpop.f32.mrb[146].mxu1  ;;  %v6955_v58 = vld [vmem:[#allocation6_spill] sm:$0xff] }
 0x3e3   : > { %v4733_v8 = vpop.f32.mrb[147].mxu1 }
 0x3e4   : > { %4027 = vst [vmem:[%s6773_s22 + $0x38] sm:$0xff] %v3995_v16  ;;  %v3733_v56 = vadd.f32 %v4731_v18, %v6617_v60  ;;  %v4734_v43 = vadd.f32 %v4733_v8, %v4732_v28 }
 0x3e6   : > { %v3894_v23 = vadd.f32 %v6593_v2, %v3733_v56  ;;  %v3736_v0 = vadd.f32 %v4734_v43, %v6622_v11  ;;  %v6956_v56 = vld [vmem:[#allocation4_spill] sm:$0xff] }
 0x3e8   : > { %v3996_v55 = vmax.f32 %v3894_v23, 0.0  ;;  %v3897_v30 = vadd.f32 %v6600_v50, %v3736_v0  ;;  %v4735_v47 = vpop.f32.mrb[148].mxu1 }
 0x3e9   : > { %v4736_v42 = vpop.f32.mrb[149].mxu1 }
 0x3ea   : > { %4028 = vst [vmem:[%s6773_s22 + $0x40] sm:$0xff] %v3996_v55  ;;  %v3997_v54 = vmax.f32 %v3897_v30, 0.0  ;;  %v4737_v3 = vadd.f32 %v4736_v42, %v4735_v47  ;;  %v4738_v40 = vpop.f32.mrb[150].mxu1  ;;  %v6957_v55 = vld [vmem:[#allocation5_spill] sm:$0xff] }
 0x3eb   : > { %v4739_v53 = vpop.f32.mrb[151].mxu1 }
 0x3ec   : > { %4029 = vst [vmem:[%s6773_s22 + $0x48] sm:$0xff] %v3997_v54  ;;  %v3741_v60 = vadd.f32 %v4737_v3, %v6635_v4  ;;  %v4740_v10 = vadd.f32 %v4739_v53, %v4738_v40 }
 0x3ee   : > { %v3902_v2 = vadd.f32 %v6590_v57, %v3741_v60  ;;  %v3744_v11 = vadd.f32 %v4740_v10, %v6640_v35  ;;  %v6958_v10 = vld [vmem:[#allocation28_spill] sm:$0xff] }
 0x3f0   : > { %v3998_v44 = vmax.f32 %v3902_v2, 0.0  ;;  %v3905_v50 = vadd.f32 %v6595_v52, %v3744_v11  ;;  %v4741_v49 = vpop.f32.mrb[152].mxu1 }
 0x3f1   : > { %v4742_v19 = vpop.f32.mrb[153].mxu1 }
 0x3f2   : > { %4030 = vst [vmem:[%s6773_s22 + $0x50] sm:$0xff] %v3998_v44  ;;  %v3999_v61 = vmax.f32 %v3905_v50, 0.0  ;;  %v4743_v15 = vadd.f32 %v4742_v19, %v4741_v49  ;;  %v4744_v46 = vpop.f32.mrb[154].mxu1  ;;  %v6959_v44 = vld [vmem:[#allocation30_spill] sm:$0xff] }
 0x3f3   : > { %v4745_v25 = vpop.f32.mrb[155].mxu1 }
 0x3f4   : > { %4031 = vst [vmem:[%s6773_s22 + $0x58] sm:$0xff] %v3999_v61  ;;  %v3749_v4 = vadd.f32 %v4743_v15, %v6952_v29  ;;  %v4746_v62 = vadd.f32 %v4745_v25, %v4744_v46 }
 0x3f6   : > { %v3910_v57 = vadd.f32 %v6953_v33, %v3749_v4  ;;  %v3752_v35 = vadd.f32 %v4746_v62, %v6954_v51  ;;  %v6960_v4 = vld [vmem:[#allocation7_spill] sm:$0xff] }
 0x3f8   : > { %v4000_v1 = vmax.f32 %v3910_v57, 0.0  ;;  %v3913_v52 = vadd.f32 %v6955_v58, %v3752_v35  ;;  %v4747_v37 = vpop.f32.mrb[156].mxu1  ;;  %v6961_v57 = vld [vmem:[#allocation29_spill] sm:$0xff] }
 0x3f9   : > { %v4748_v7 = vpop.f32.mrb[157].mxu1 }
 0x3fa   : > { %4032 = vst [vmem:[%s6773_s22 + $0x60] sm:$0xff] %v4000_v1  ;;  %v4001_v13 = vmax.f32 %v3913_v52, 0.0  ;;  %v4749_v45 = vadd.f32 %v4748_v7, %v4747_v37  ;;  %v4750_v16 = vpop.f32.mrb[158].mxu1 }
 0x3fb   : > { %v4751_v18 = vpop.f32.mrb[159].mxu1 }
 0x3fc   : > { %4033 = vst [vmem:[%s6773_s22 + $0x68] sm:$0xff] %v4001_v13  ;;  %v3757_v28 = vadd.f32 %v4749_v45, %v6671_v6  ;;  %v4752_v8 = vadd.f32 %v4751_v18, %v4750_v16  ;;  %v6962_v45 = vld [vmem:[#allocation9_spill] sm:$0xff] }
 0x3fe   : > { %v3918_v43 = vadd.f32 %v6956_v56, %v3757_v28  ;;  %v3760_v23 = vadd.f32 %v4752_v8, %v6676_v21  ;;  %v6963_v28 = vld [vmem:[#allocation32_spill] sm:$0xff] }
 0x400   : > { %v4002_v0 = vmax.f32 %v3918_v43, 0.0  ;;  %v3921_v30 = vadd.f32 %v6957_v55, %v3760_v23  ;;  %v4753_v47 = vpop.f32.mrb[160].mxu1 }
 0x401   : > { %v4754_v42 = vpop.f32.mrb[161].mxu1 }
 0x402   : > { %4034 = vst [vmem:[%s6773_s22 + $0x70] sm:$0xff] %v4002_v0  ;;  %v4003_v54 = vmax.f32 %v3921_v30, 0.0  ;;  %v4755_v3 = vadd.f32 %v4754_v42, %v4753_v47  ;;  %v4756_v40 = vpop.f32.mrb[162].mxu1  ;;  %v6964_v42 = vld [vmem:[#allocation8_spill] sm:$0xff] }
 0x403   : > { %v4757_v53 = vpop.f32.mrb[163].mxu1 }
 0x404   : > { %4035 = vst [vmem:[%s6773_s22 + $0x78] sm:$0xff] %v4003_v54  ;;  %v3765_v6 = vadd.f32 %v4755_v3, %v6683_v5  ;;  %v4758_v60 = vadd.f32 %v4757_v53, %v4756_v40  ;;  %v6965_v40 = vld [vmem:[#allocation31_spill] sm:$0xff] }
 0x406   : > { %v3926_v2 = vadd.f32 %v6958_v10, %v3765_v6  ;;  %v3768_v21 = vadd.f32 %v4758_v60, %v6686_v27 }
 0x408   : > { %v4004_v11 = vmax.f32 %v3926_v2, 0.0  ;;  %v3929_v50 = vadd.f32 %v6959_v44, %v3768_v21  ;;  %v4759_v49 = vpop.f32.mrb[164].mxu1 }
 0x409   : > { %v4760_v19 = vpop.f32.mrb[165].mxu1 }
 0x40a   : > { %4036 = vst [vmem:[%s6773_s22 + $0x80] sm:$0xff] %v4004_v11  ;;  %v4005_v61 = vmax.f32 %v3929_v50, 0.0  ;;  %v4761_v15 = vadd.f32 %v4760_v19, %v4759_v49  ;;  %v4762_v46 = vpop.f32.mrb[166].mxu1  ;;  %v6966_v50 = vld [vmem:[#allocation13_spill] sm:$0xff] }
 0x40b   : > { %v4763_v25 = vpop.f32.mrb[167].mxu1 }
 0x40c   : > { %4037 = vst [vmem:[%s6773_s22 + $0x88] sm:$0xff] %v4005_v61  ;;  %v3773_v5 = vadd.f32 %v4761_v15, %v6693_v36  ;;  %v4764_v29 = vadd.f32 %v4763_v25, %v4762_v46  ;;  %v6967_v61 = vld [vmem:[#allocation14_spill] sm:$0xff] }
 0x40e   : > { %v3934_v62 = vadd.f32 %v6960_v4, %v3773_v5  ;;  %v3776_v27 = vadd.f32 %v4764_v29, %v6696_v59 }
 0x410   : > { %v4006_v33 = vmax.f32 %v3934_v62, 0.0  ;;  %v3937_v51 = vadd.f32 %v6961_v57, %v3776_v27  ;;  %v4765_v35 = vpop.f32.mrb[168].mxu1 }
 0x411   : > { %v4766_v1 = vpop.f32.mrb[169].mxu1 }
 0x412   : > { %4038 = vst [vmem:[%s6773_s22 + $0x90] sm:$0xff] %v4006_v33  ;;  %v4007_v58 = vmax.f32 %v3937_v51, 0.0  ;;  %v4767_v52 = vadd.f32 %v4766_v1, %v4765_v35  ;;  %v4768_v37 = vpop.f32.mrb[170].mxu1  ;;  %v6968_v33 = vld [vmem:[#allocation11_spill] sm:$0xff]  ;;  %v6969_v35 = vld [vmem:[#allocation33_spill] sm:$0xff] }
 0x413   : > { %v4769_v7 = vpop.f32.mrb[171].mxu1 }
 0x414   : > { %4039 = vst [vmem:[%s6773_s22 + $0x98] sm:$0xff] %v4007_v58  ;;  %v3781_v36 = vadd.f32 %v4767_v52, %v6703_v17  ;;  %v4770_v13 = vadd.f32 %v4769_v7, %v4768_v37 }
 0x416   : > { %v3942_v16 = vadd.f32 %v6962_v45, %v3781_v36  ;;  %v3784_v59 = vadd.f32 %v4770_v13, %v6706_v9 }
 0x418   : > { %v4008_v18 = vmax.f32 %v3942_v16, 0.0  ;;  %v3945_v8 = vadd.f32 %v6963_v28, %v3784_v59  ;;  %v4771_v56 = vpop.f32.mrb[172].mxu1 }
 0x419   : > { %v4772_v43 = vpop.f32.mrb[173].mxu1 }
 0x41a   : > { %4040 = vst [vmem:[%s6773_s22 + $0xa0] sm:$0xff] %v4008_v18  ;;  %v4009_v23 = vmax.f32 %v3945_v8, 0.0  ;;  %v4773_v0 = vadd.f32 %v4772_v43, %v4771_v56  ;;  %v4774_v55 = vpop.f32.mrb[174].mxu1 }
 0x41b   : > { %v4775_v30 = vpop.f32.mrb[175].mxu1 }
 0x41c   : > { %4041 = vst [vmem:[%s6773_s22 + $0xa8] sm:$0xff] %v4009_v23  ;;  %v3789_v17 = vadd.f32 %v4773_v0, %v6713_v14  ;;  %v4776_v47 = vadd.f32 %v4775_v30, %v4774_v55 }
 0x41e   : > { %v3950_v54 = vadd.f32 %v6964_v42, %v3789_v17  ;;  %v3792_v9 = vadd.f32 %v4776_v47, %v6716_v22 }
 0x420   : > { %v4010_v3 = vmax.f32 %v3950_v54, 0.0  ;;  %v3953_v53 = vadd.f32 %v6965_v40, %v3792_v9  ;;  %v4777_v6 = vpop.f32.mrb[176].mxu1 }
 0x421   : > { %v4778_v60 = vpop.f32.mrb[177].mxu1 }
 0x422   : > { %4042 = vst [vmem:[%s6773_s22 + $0xb0] sm:$0xff] %v4010_v3  ;;  %v4011_v10 = vmax.f32 %v3953_v53, 0.0  ;;  %v4779_v2 = vadd.f32 %v4778_v60, %v4777_v6  ;;  %v4780_v21 = vpop.f32.mrb[178].mxu1 }
 0x423   : > { %v4781_v11 = vpop.f32.mrb[179].mxu1 }
 0x424   : > { %4043 = vst [vmem:[%s6773_s22 + $0xb8] sm:$0xff] %v4011_v10  ;;  %v3797_v14 = vadd.f32 %v4779_v2, %v6723_v31  ;;  %v4782_v44 = vadd.f32 %v4781_v11, %v4780_v21 }
 0x426   : > { %v3958_v49 = vadd.f32 %v6966_v50, %v3797_v14  ;;  %v3800_v22 = vadd.f32 %v4782_v44, %v6726_v24 }
 0x428   : > { %v4012_v19 = vmax.f32 %v3958_v49, 0.0  ;;  %v3961_v15 = vadd.f32 %v6967_v61, %v3800_v22  ;;  %v4783_v46 = vpop.f32.mrb[180].mxu1 }
 0x429   : > { %v4784_v25 = vpop.f32.mrb[181].mxu1 }
 0x42a   : > { %4044 = vst [vmem:[%s6773_s22 + $0xc0] sm:$0xff] %v4012_v19  ;;  %v4013_v5 = vmax.f32 %v3961_v15, 0.0  ;;  %v4785_v29 = vadd.f32 %v4784_v25, %v4783_v46  ;;  %v4786_v4 = vpop.f32.mrb[182].mxu1 }
 0x42b   : > { %v4787_v62 = vpop.f32.mrb[183].mxu1 }
 0x42c   : > { %4045 = vst [vmem:[%s6773_s22 + $0xc8] sm:$0xff] %v4013_v5  ;;  %v3805_v31 = vadd.f32 %v4785_v29, %v6733_v41  ;;  %v4788_v27 = vadd.f32 %v4787_v62, %v4786_v4 }
 0x42e   : > { %v3966_v57 = vadd.f32 %v6968_v33, %v3805_v31  ;;  %v3808_v24 = vadd.f32 %v4788_v27, %v6736_v20 }
 0x430   : > { %v4014_v51 = vmax.f32 %v3966_v57, 0.0  ;;  %v3969_v1 = vadd.f32 %v6969_v35, %v3808_v24  ;;  %v4789_v58 = vpop.f32.mrb[184].mxu1 }
 0x431   : > { %v4790_v52 = vpop.f32.mrb[185].mxu1 }
 0x432   : > { %4046 = vst [vmem:[%s6773_s22 + $0xd0] sm:$0xff] %v4014_v51  ;;  %v4015_v37 = vmax.f32 %v3969_v1, 0.0  ;;  %v4791_v7 = vadd.f32 %v4790_v52, %v4789_v58  ;;  %v4792_v36 = vpop.f32.mrb[186].mxu1 }
 0x433   : > { %v4793_v13 = vpop.f32.mrb[187].mxu1 }
 0x434   : > { %4047 = vst [vmem:[%s6773_s22 + $0xd8] sm:$0xff] %v4015_v37  ;;  %v4794_v45 = vadd.f32 %v4793_v13, %v4792_v36  ;;  %v3813_v41 = vadd.f32 %v4791_v7, %v6743_v32 }
 0x436   : > { %v3974_v16 = vadd.f32 %v6747_v38, %v3813_v41  ;;  %v3816_v20 = vadd.f32 %v4794_v45, %v6750_v39 }
 0x438   : > { %v4016_v59 = vmax.f32 %v3974_v16, 0.0  ;;  %v3977_v18 = vadd.f32 %v6756_v48, %v3816_v20  ;;  %v4795_v28 = vpop.f32.mrb[188].mxu1 }
 0x439   : > { %v4796_v8 = vpop.f32.mrb[189].mxu1 }
 0x43a   : > { %4048 = vst [vmem:[%s6773_s22 + $0xe0] sm:$0xff] %v4016_v59  ;;  %v4017_v56 = vmax.f32 %v3977_v18, 0.0  ;;  %v4797_v43 = vadd.f32 %v4796_v8, %v4795_v28  ;;  %v4798_v23 = vpop.f32.mrb[190].mxu1 }
 0x43b   : > { %v4799_v0 = vpop.f32.mrb[191].mxu1 }
 0x43c   : > { %4049 = vst [vmem:[%s6773_s22 + $0xe8] sm:$0xff] %v4017_v56  ;;  %v3821_v55 = vadd.f32 %v4797_v43, %v6761_v26  ;;  %v4800_v32 = vadd.f32 %v4799_v0, %v4798_v23 }
 0x43e   : > { %v3982_v38 = vadd.f32 %v6745_v34, %v3821_v55  ;;  %v3824_v39 = vadd.f32 %v4800_v32, %v6764_v12 }
 0x440   : > { %v4018_v30 = vmax.f32 %v3982_v38, 0.0  ;;  %v3985_v17 = vadd.f32 %v6752_v63, %v3824_v39 }
 0x442   : > { %4050 = vst [vmem:[%s6773_s22 + $0xf0] sm:$0xff] %v4018_v30  ;;  %v4019_v48 = vmax.f32 %v3985_v17, 0.0 }
 0x444   : > { %4051 = vst [vmem:[%s6773_s22 + $0xf8] sm:$0xff] %v4019_v48 }
 0x445 PF: > { %s15_s18 = sadd.s32 1, %s5062_s18  }
 0x446   : > { %p12_p4 = scmp.ge.s32.totalorder %s15_s18, 4  }
 0x448   :  { %14 = sbr.rel (!%p12_p4) target bundleno = 1 (0x1), region = 71 }

</bundles_post_ra>
